<compile_context>
chip_gen: v6e
topology: v6e:2x2x1
jax: 0.10.0
libtpu: 0.0.40
codegen_flags: <defaults>
</compile_context>

<pallas_src>
import numpy as np

import jax
import jax.numpy as jnp
from jax.experimental import pallas as pl
from jax.experimental.pallas import tpu as pltpu

# ---------------------------------------------------------------------------
# Static geometry of the network.
# ---------------------------------------------------------------------------
NUM_CLASSES = 10
H_IN = W_IN = 28
C_IN = 3
C1, C2 = 4, 8
OH1 = OW1 = 14                 # conv1 output spatial
OH2 = OW2 = 7                  # conv2 output spatial
BAND_K = 3 * W_IN * C_IN       # 252  values per conv1 input band (3 rows)
BAND_K_PAD = 256               # lane-padded band width
BAND_N = OW1 * C1              # 56   conv1 outputs per output row
BAND_N_PAD = 64                # padded per-row slot width in h1
H1_W = OH1 * BAND_N_PAD        # 896  (lane-dense, 7x128)
FC_IN = OH2 * OW2 * C2         # 392  real conv2 outputs / fc inputs
H2_W = 512                     # lane-padded conv2 output width (4x128)
OUT_PAD = 128                  # lane-dense padded kernel output width


def _round_up(x, m):
    return ((x + m - 1) // m) * m


# ---------------------------------------------------------------------------
# One-time parameter prep (host numpy): fold convs into (small) matmuls.
# ---------------------------------------------------------------------------
def _conv_as_dense_cl(w_oihw, bias, in_h, in_w, stride, pad):
    """Dense A, b with: channel_last_flat(conv(x)) = channel_last_flat(x) @ A + b.
    Input rows ordered (iy, ix, ci); output columns ordered (oy, ox, co)."""
    wk = np.asarray(w_oihw, np.float32)
    cout, cin, kh, kw = wk.shape
    oh = (in_h + 2 * pad - kh) // stride + 1
    ow = (in_w + 2 * pad - kw) // stride + 1
    a = np.zeros((in_h * in_w * cin, oh * ow * cout), np.float32)
    for oy in range(oh):
        for ox in range(ow):
            col = (oy * ow + ox) * cout
            for ky in range(kh):
                iy = oy * stride + ky - pad
                if iy < 0 or iy >= in_h:
                    continue
                for kx in range(kw):
                    ix = ox * stride + kx - pad
                    if ix < 0 or ix >= in_w:
                        continue
                    for ci in range(cin):
                        a[(iy * in_w + ix) * cin + ci, col:col + cout] = wk[:, ci, ky, kx]
    b_full = np.tile(np.asarray(bias, np.float32), oh * ow)
    return a, b_full, oh, ow


def prepare_params(params):
    """One-time prep: banded conv1 fold, dense conv2 fold, fc permutation,
    lane padding, and bf16 cast of all MXU operands (biases stay f32)."""
    w1, b1, w2, b2, wf, bf = [np.asarray(p, np.float32) for p in params]

    # conv1 -> shared band matrix: one output row (14 ox x 4 co) is produced
    # from a 3-input-row band whose 252 values are ordered (ky, ix, ci).
    w1b = np.zeros((BAND_K_PAD, BAND_N_PAD), np.float32)
    for ox in range(OW1):
        for co in range(C1):
            n = ox * C1 + co
            for ky in range(3):
                for kx in range(3):
                    ix = 2 * ox + kx - 1            # stride 2, pad 1
                    if 0 <= ix < W_IN:
                        for ci in range(C_IN):
                            w1b[ky * (W_IN * C_IN) + ix * C_IN + ci, n] = w1[co, ci, ky, kx]
    b1r = np.zeros((1, BAND_N_PAD), np.float32)
    b1r[0, :BAND_N] = np.tile(b1, OW1)              # (ox, co) order

    # conv2 -> dense fold, re-rowed for the h1 layout (64 padded slots per
    # conv1 output row; pad rows/cols are zero so they contribute nothing).
    a2d, b2f, oh2, ow2 = _conv_as_dense_cl(w2, b2, OH1, OW1, 2, 1)
    assert (oh2, ow2) == (OH2, OW2)
    a2 = np.zeros((H1_W, H2_W), np.float32)
    for iy in range(OH1):
        a2[iy * BAND_N_PAD:iy * BAND_N_PAD + BAND_N, :FC_IN] = a2d[iy * BAND_N:(iy + 1) * BAND_N, :]
    b2p = np.zeros((1, H2_W), np.float32)
    b2p[0, :FC_IN] = b2f

    # fc: permute columns so the kernel's (oy2, ox2, co2) flatten matches
    # torch's NCHW .view() order, then pad to a lane-dense [512, 128].
    wfn = wf.reshape(NUM_CLASSES, C2, OH2 * OW2)              # [j, c, spatial]
    wf_perm = np.transpose(wfn, (2, 1, 0)).reshape(FC_IN, NUM_CLASSES)
    wfp = np.zeros((H2_W, OUT_PAD), np.float32)
    wfp[:FC_IN, :NUM_CLASSES] = wf_perm
    bfp = np.zeros((1, OUT_PAD), np.float32)
    bfp[0, :NUM_CLASSES] = bf

    return (jnp.asarray(w1b, jnp.bfloat16), jnp.asarray(b1r),
            jnp.asarray(a2, jnp.bfloat16), jnp.asarray(b2p),
            jnp.asarray(wfp, jnp.bfloat16), jnp.asarray(bfp))


# ---------------------------------------------------------------------------
# Fused Pallas kernel: banded conv1+ReLU -> conv2+ReLU -> fc, all in VMEM.
# ---------------------------------------------------------------------------
def _fused_net_kernel(x_ref, w1b_ref, b1_ref, a2_ref, b2_ref, wf_ref, bf_ref,
                      o_ref, h1_ref):
    # x_ref : [bm, 14*256] bf16 (one 256-lane-aligned band per conv1 out row)
    # w1b   : [256, 64] bf16     a2: [896, 512] bf16     wf: [512, 128] bf16
    w1b = w1b_ref[...]
    b1r = b1_ref[...]
    # conv1 + ReLU: 14 small matmuls sharing the same tap matrix; every slice
    # and store is statically aligned (256 / 64-lane offsets).
    for oy in range(OH1):
        band = x_ref[:, oy * BAND_K_PAD:(oy + 1) * BAND_K_PAD]          # bf16
        h = jnp.dot(band, w1b, preferred_element_type=jnp.float32)      # [bm,64]
        h1_ref[:, oy * BAND_N_PAD:(oy + 1) * BAND_N_PAD] = jnp.maximum(h + b1r, 0.0)

    # conv2 + ReLU (dense fold over the lane-dense h1 layout), then fc.
    h1 = h1_ref[...].astype(jnp.bfloat16)
    h2 = jnp.dot(h1, a2_ref[...], preferred_element_type=jnp.float32)
    h2 = jnp.maximum(h2 + b2_ref[...], 0.0).astype(jnp.bfloat16)
    out = jnp.dot(h2, wf_ref[...], preferred_element_type=jnp.float32)
    o_ref[...] = (out + bf_ref[...]).astype(o_ref.dtype)


def net_forward(x, prepped, *, block_m=512, single_buffer_weights=True):
    """Forward pass matching PyTorch Net.forward.  x: [B, 3, 28, 28] NCHW."""
    w1b, b1r, a2, b2p, wfp, bfp = prepped
    b = x.shape[0]

    # ---- wrapper-side band build (tiny fused XLA copy, output in bf16) ----
    xcl = jnp.transpose(x, (0, 2, 3, 1)).reshape(b, H_IN, W_IN * C_IN)   # rows: (ix, ci)
    xp = jnp.pad(xcl, ((0, 0), (1, 0), (0, 0)))                          # top zero row -> 29 rows
    slabs = [xp[:, k:k + 2 * OH1 - 1:2, :] for k in range(3)]            # ky taps, each [b,14,84]
    xb = jnp.stack(slabs, axis=2).reshape(b, OH1, BAND_K)                # band order (ky, ix, ci)
    xb = jnp.pad(xb, ((0, 0), (0, 0), (0, BAND_K_PAD - BAND_K)))         # 252 -> 256 lanes/band
    xb = xb.reshape(b, OH1 * BAND_K_PAD).astype(jnp.bfloat16)            # [b, 3584] bf16

    # ---- block sizing: lane/sublane friendly, >=2 grid steps when big ----
    bm = min(block_m, _round_up(b, 16))
    if b >= 128 and pl.cdiv(b, bm) < 2:      # keep both v7x TensorCores busy
        bm = max(16, _round_up(pl.cdiv(b, 2), 16))
    b_pad = _round_up(b, bm)
    if b_pad != b:                           # pad batch -> no ragged blocks
        xb = jnp.pad(xb, ((0, b_pad - b), (0, 0)))
    grid = (b_pad // bm,)

    def wspec(arr):
        # Constant index_map -> the block never changes across grid steps;
        # single-buffer it (saves VMEM).  Fall back to default double
        # buffering if this jax build does not support Buffered(1).
        if single_buffer_weights and hasattr(pl, "Buffered"):
            return pl.BlockSpec(arr.shape, lambda i: (0, 0),
                                pipeline_mode=pl.Buffered(1))
        return pl.BlockSpec(arr.shape, lambda i: (0, 0))

    flops_per_row = (OH1 * 2 * BAND_K_PAD * BAND_N_PAD
                     + 2 * H1_W * H2_W + 2 * H2_W * OUT_PAD)
    bytes_accessed = int(xb.size * 2
                         + (w1b.size + a2.size + wfp.size) * 2
                         + (b1r.size + b2p.size + bfp.size) * 4
                         + b_pad * OUT_PAD * 4)

    out_pad = pl.pallas_call(
        _fused_net_kernel,
        out_shape=jax.ShapeDtypeStruct((b_pad, OUT_PAD), jnp.float32),
        grid_spec=pltpu.PrefetchScalarGridSpec(
            num_scalar_prefetch=0,
            grid=grid,
            in_specs=[
                pl.BlockSpec((bm, OH1 * BAND_K_PAD), lambda i: (i, 0)),  # batch-tiled input
                wspec(w1b), wspec(b1r),                                  # conv1 band weights
                wspec(a2), wspec(b2p),                                   # conv2 fold
                wspec(wfp), wspec(bfp),                                  # fc
            ],
            out_specs=pl.BlockSpec((bm, OUT_PAD), lambda i: (i, 0)),
            scratch_shapes=[pltpu.VMEM((bm, H1_W), jnp.float32)],        # h1
        ),
        compiler_params=pltpu.CompilerParams(
            dimension_semantics=("parallel",),          # shard batch over TCs (v7x)
            vmem_limit_bytes=48 * 1024 * 1024,          # headroom; fits v7x's 64 MiB
        ),
        cost_estimate=pl.CostEstimate(
            flops=int(flops_per_row * b_pad), transcendentals=0,
            bytes_accessed=bytes_accessed),
    )(xb, w1b, b1r, a2, b2p, wfp, bfp)

    return out_pad[:b, :NUM_CLASSES]


# ---------------------------------------------------------------------------
# Pure-JAX reference (for correctness check) and parameter init.
# ---------------------------------------------------------------------------
def ref_forward(x, params):
    w1, b1, w2, b2, wf, bf = params
    dn = ("NCHW", "OIHW", "NCHW")
    y = jax.lax.conv_general_dilated(x, w1, (2, 2), [(1, 1), (1, 1)],
                                     dimension_numbers=dn)
    y = jax.nn.relu(y + b1.reshape(1, -1, 1, 1))
    y = jax.lax.conv_general_dilated(y, w2, (2, 2), [(1, 1), (1, 1)],
                                     dimension_numbers=dn)
    y = jax.nn.relu(y + b2.reshape(1, -1, 1, 1))
    y = y.reshape(y.shape[0], -1)
    return y @ wf.T + bf


def init_params(key):
    k1, k2, k3, k4, k5, k6 = jax.random.split(key, 6)
    w1 = jax.random.normal(k1, (C1, C_IN, 3, 3), jnp.float32) * 0.1     # OIHW
    b1 = jax.random.normal(k2, (C1,), jnp.float32) * 0.1
    w2 = jax.random.normal(k3, (C2, C1, 3, 3), jnp.float32) * 0.1       # OIHW
    b2 = jax.random.normal(k4, (C2,), jnp.float32) * 0.1
    wf = jax.random.normal(k5, (NUM_CLASSES, FC_IN), jnp.float32) * 0.05
    bf = jax.random.normal(k6, (NUM_CLASSES,), jnp.float32) * 0.05
    return (w1, b1, w2, b2, wf, bf)


# TODO(synk): the module's Adam optimizer / iteration counter are training
# state, not part of forward(), so they are intentionally not implemented.

if __name__ == "__main__":
    key = jax.random.PRNGKey(0)
    kx, kp = jax.random.split(key)
    # Input must be 28x28x3 so the 7*7*8 fc input dimension matches the module.
    x = jax.random.normal(kx, (2, 3, 28, 28), jnp.float32)
    params = init_params(kp)
    prepped = prepare_params(params)          # one-time weight folding (bf16)

    fwd = jax.jit(net_forward)
    try:
        out = jax.block_until_ready(fwd(x, prepped))
    except Exception:
        # Some older jax/Mosaic builds reject single-buffered (Buffered(1))
        # inputs; the weights total ~1.2 MB, so double buffering is harmless.
        fwd = jax.jit(lambda xx, pp: net_forward(xx, pp, single_buffer_weights=False))
        out = jax.block_until_ready(fwd(x, prepped))

    assert out.shape == (2, NUM_CLASSES), out.shape

    ref = jax.block_until_ready(ref_forward(x, params))
    max_diff = float(jnp.max(jnp.abs(out - ref)))
    # bf16 MXU operands with f32 accumulation: allow a few bf16 ulps of drift.
    assert max_diff < 5e-3, f"max abs diff {max_diff}"

    print("KERNEL_OK")
</pallas_src>

<mosaic_0001>
module attributes {stable_mosaic.version = 11 : i64} {
  func.func @_fused_net_kernel(%arg0: i32, %arg1: memref<16x3584xbf16, #tpu.memory_space<vmem>>, %arg2: memref<256x64xbf16, #tpu.memory_space<vmem>>, %arg3: memref<1x64xf32, #tpu.memory_space<vmem>>, %arg4: memref<896x512xbf16, #tpu.memory_space<vmem>>, %arg5: memref<1x512xf32, #tpu.memory_space<vmem>>, %arg6: memref<512x128xbf16, #tpu.memory_space<vmem>>, %arg7: memref<1x128xf32, #tpu.memory_space<vmem>>, %arg8: memref<16x128xf32, #tpu.memory_space<vmem>>, %arg9: memref<16x896xf32, #tpu.memory_space<vmem>>) attributes {dimension_semantics = [#tpu.dimension_semantics<parallel>], iteration_bounds = array<i64: 1>, scalar_prefetch = 0 : i64, scratch_operands = 1 : i64, tpu.core_type = #tpu.core_type<tc>, window_params = [{transform_indices = @transform_0, window_bounds = array<i64: 16, 3584>}, {pipeline_mode = #tpu.pipeline_mode<synchronous>, transform_indices = @transform_1, window_bounds = array<i64: 256, 64>}, {pipeline_mode = #tpu.pipeline_mode<synchronous>, transform_indices = @transform_2, window_bounds = array<i64: 1, 64>}, {pipeline_mode = #tpu.pipeline_mode<synchronous>, transform_indices = @transform_3, window_bounds = array<i64: 896, 512>}, {pipeline_mode = #tpu.pipeline_mode<synchronous>, transform_indices = @transform_4, window_bounds = array<i64: 1, 512>}, {pipeline_mode = #tpu.pipeline_mode<synchronous>, transform_indices = @transform_5, window_bounds = array<i64: 512, 128>}, {pipeline_mode = #tpu.pipeline_mode<synchronous>, transform_indices = @transform_6, window_bounds = array<i64: 1, 128>}, {transform_indices = @transform_7, window_bounds = array<i64: 16, 128>}]} {
    %c0 = arith.constant 0 : index
    %c0_0 = arith.constant 0 : index
    %0 = vector.load %arg2[%c0, %c0_0] : memref<256x64xbf16, #tpu.memory_space<vmem>>, vector<256x64xbf16>
    %c0_1 = arith.constant 0 : index
    %c0_2 = arith.constant 0 : index
    %1 = vector.load %arg3[%c0_1, %c0_2] : memref<1x64xf32, #tpu.memory_space<vmem>>, vector<1x64xf32>
    %c0_3 = arith.constant 0 : index
    %c0_4 = arith.constant 0 : index
    %2 = vector.load %arg1[%c0_3, %c0_4] : memref<16x3584xbf16, #tpu.memory_space<vmem>>, vector<16x256xbf16>
    %cst = arith.constant dense<0.000000e+00> : vector<16x64xf32>
    %3 = tpu.matmul %2, %0, %cst {dimension_numbers = #tpu.dot_dimension_numbers<[1], [0], [0], [1], [0, 0, 1, 1], [], []>} : vector<16x256xbf16>, vector<256x64xbf16>, vector<16x64xf32> -> vector<16x64xf32>
    %4 = vector.broadcast %1 : vector<1x64xf32> to vector<16x64xf32>
    %5 = arith.addf %3, %4 : vector<16x64xf32>
    %cst_5 = arith.constant 0.000000e+00 : f32
    %6 = vector.broadcast %cst_5 : f32 to vector<16x64xf32>
    %7 = arith.maximumf %5, %6 : vector<16x64xf32>
    %c0_6 = arith.constant 0 : index
    %c0_7 = arith.constant 0 : index
    %8 = vector.load %arg9[%c0_6, %c0_7] : memref<16x896xf32, #tpu.memory_space<vmem>>, vector<16x64xf32>
    tpu.vector_store %arg9[%c0_6, %c0_7], %7 {strides = array<i32>} : memref<16x896xf32, #tpu.memory_space<vmem>>, vector<16x64xf32>,
    %c0_8 = arith.constant 0 : index
    %c256 = arith.constant 256 : index
    %9 = vector.load %arg1[%c0_8, %c256] : memref<16x3584xbf16, #tpu.memory_space<vmem>>, vector<16x256xbf16>
    %cst_9 = arith.constant dense<0.000000e+00> : vector<16x64xf32>
    %10 = tpu.matmul %9, %0, %cst_9 {dimension_numbers = #tpu.dot_dimension_numbers<[1], [0], [0], [1], [0, 0, 1, 1], [], []>} : vector<16x256xbf16>, vector<256x64xbf16>, vector<16x64xf32> -> vector<16x64xf32>
    %11 = vector.broadcast %1 : vector<1x64xf32> to vector<16x64xf32>
    %12 = arith.addf %10, %11 : vector<16x64xf32>
    %cst_10 = arith.constant 0.000000e+00 : f32
    %13 = vector.broadcast %cst_10 : f32 to vector<16x64xf32>
    %14 = arith.maximumf %12, %13 : vector<16x64xf32>
    %c0_11 = arith.constant 0 : index
    %c64 = arith.constant 64 : index
    %15 = vector.load %arg9[%c0_11, %c64] : memref<16x896xf32, #tpu.memory_space<vmem>>, vector<16x64xf32>
    tpu.vector_store %arg9[%c0_11, %c64], %14 {strides = array<i32>} : memref<16x896xf32, #tpu.memory_space<vmem>>, vector<16x64xf32>,
    %c0_12 = arith.constant 0 : index
    %c512 = arith.constant 512 : index
    %16 = vector.load %arg1[%c0_12, %c512] : memref<16x3584xbf16, #tpu.memory_space<vmem>>, vector<16x256xbf16>
    %cst_13 = arith.constant dense<0.000000e+00> : vector<16x64xf32>
    %17 = tpu.matmul %16, %0, %cst_13 {dimension_numbers = #tpu.dot_dimension_numbers<[1], [0], [0], [1], [0, 0, 1, 1], [], []>} : vector<16x256xbf16>, vector<256x64xbf16>, vector<16x64xf32> -> vector<16x64xf32>
    %18 = vector.broadcast %1 : vector<1x64xf32> to vector<16x64xf32>
    %19 = arith.addf %17, %18 : vector<16x64xf32>
    %cst_14 = arith.constant 0.000000e+00 : f32
    %20 = vector.broadcast %cst_14 : f32 to vector<16x64xf32>
    %21 = arith.maximumf %19, %20 : vector<16x64xf32>
    %c0_15 = arith.constant 0 : index
    %c128 = arith.constant 128 : index
    %22 = vector.load %arg9[%c0_15, %c128] : memref<16x896xf32, #tpu.memory_space<vmem>>, vector<16x64xf32>
    tpu.vector_store %arg9[%c0_15, %c128], %21 {strides = array<i32>} : memref<16x896xf32, #tpu.memory_space<vmem>>, vector<16x64xf32>,
    %c0_16 = arith.constant 0 : index
    %c768 = arith.constant 768 : index
    %23 = vector.load %arg1[%c0_16, %c768] : memref<16x3584xbf16, #tpu.memory_space<vmem>>, vector<16x256xbf16>
    %cst_17 = arith.constant dense<0.000000e+00> : vector<16x64xf32>
    %24 = tpu.matmul %23, %0, %cst_17 {dimension_numbers = #tpu.dot_dimension_numbers<[1], [0], [0], [1], [0, 0, 1, 1], [], []>} : vector<16x256xbf16>, vector<256x64xbf16>, vector<16x64xf32> -> vector<16x64xf32>
    %25 = vector.broadcast %1 : vector<1x64xf32> to vector<16x64xf32>
    %26 = arith.addf %24, %25 : vector<16x64xf32>
    %cst_18 = arith.constant 0.000000e+00 : f32
    %27 = vector.broadcast %cst_18 : f32 to vector<16x64xf32>
    %28 = arith.maximumf %26, %27 : vector<16x64xf32>
    %c0_19 = arith.constant 0 : index
    %c192 = arith.constant 192 : index
    %29 = vector.load %arg9[%c0_19, %c192] : memref<16x896xf32, #tpu.memory_space<vmem>>, vector<16x64xf32>
    tpu.vector_store %arg9[%c0_19, %c192], %28 {strides = array<i32>} : memref<16x896xf32, #tpu.memory_space<vmem>>, vector<16x64xf32>,
    %c0_20 = arith.constant 0 : index
    %c1024 = arith.constant 1024 : index
    %30 = vector.load %arg1[%c0_20, %c1024] : memref<16x3584xbf16, #tpu.memory_space<vmem>>, vector<16x256xbf16>
    %cst_21 = arith.constant dense<0.000000e+00> : vector<16x64xf32>
    %31 = tpu.matmul %30, %0, %cst_21 {dimension_numbers = #tpu.dot_dimension_numbers<[1], [0], [0], [1], [0, 0, 1, 1], [], []>} : vector<16x256xbf16>, vector<256x64xbf16>, vector<16x64xf32> -> vector<16x64xf32>
    %32 = vector.broadcast %1 : vector<1x64xf32> to vector<16x64xf32>
    %33 = arith.addf %31, %32 : vector<16x64xf32>
    %cst_22 = arith.constant 0.000000e+00 : f32
    %34 = vector.broadcast %cst_22 : f32 to vector<16x64xf32>
    %35 = arith.maximumf %33, %34 : vector<16x64xf32>
    %c0_23 = arith.constant 0 : index
    %c256_24 = arith.constant 256 : index
    %36 = vector.load %arg9[%c0_23, %c256_24] : memref<16x896xf32, #tpu.memory_space<vmem>>, vector<16x64xf32>
    tpu.vector_store %arg9[%c0_23, %c256_24], %35 {strides = array<i32>} : memref<16x896xf32, #tpu.memory_space<vmem>>, vector<16x64xf32>,
    %c0_25 = arith.constant 0 : index
    %c1280 = arith.constant 1280 : index
    %37 = vector.load %arg1[%c0_25, %c1280] : memref<16x3584xbf16, #tpu.memory_space<vmem>>, vector<16x256xbf16>
    %cst_26 = arith.constant dense<0.000000e+00> : vector<16x64xf32>
    %38 = tpu.matmul %37, %0, %cst_26 {dimension_numbers = #tpu.dot_dimension_numbers<[1], [0], [0], [1], [0, 0, 1, 1], [], []>} : vector<16x256xbf16>, vector<256x64xbf16>, vector<16x64xf32> -> vector<16x64xf32>
    %39 = vector.broadcast %1 : vector<1x64xf32> to vector<16x64xf32>
    %40 = arith.addf %38, %39 : vector<16x64xf32>
    %cst_27 = arith.constant 0.000000e+00 : f32
    %41 = vector.broadcast %cst_27 : f32 to vector<16x64xf32>
    %42 = arith.maximumf %40, %41 : vector<16x64xf32>
    %c0_28 = arith.constant 0 : index
    %c320 = arith.constant 320 : index
    %43 = vector.load %arg9[%c0_28, %c320] : memref<16x896xf32, #tpu.memory_space<vmem>>, vector<16x64xf32>
    tpu.vector_store %arg9[%c0_28, %c320], %42 {strides = array<i32>} : memref<16x896xf32, #tpu.memory_space<vmem>>, vector<16x64xf32>,
    %c0_29 = arith.constant 0 : index
    %c1536 = arith.constant 1536 : index
    %44 = vector.load %arg1[%c0_29, %c1536] : memref<16x3584xbf16, #tpu.memory_space<vmem>>, vector<16x256xbf16>
    %cst_30 = arith.constant dense<0.000000e+00> : vector<16x64xf32>
    %45 = tpu.matmul %44, %0, %cst_30 {dimension_numbers = #tpu.dot_dimension_numbers<[1], [0], [0], [1], [0, 0, 1, 1], [], []>} : vector<16x256xbf16>, vector<256x64xbf16>, vector<16x64xf32> -> vector<16x64xf32>
    %46 = vector.broadcast %1 : vector<1x64xf32> to vector<16x64xf32>
    %47 = arith.addf %45, %46 : vector<16x64xf32>
    %cst_31 = arith.constant 0.000000e+00 : f32
    %48 = vector.broadcast %cst_31 : f32 to vector<16x64xf32>
    %49 = arith.maximumf %47, %48 : vector<16x64xf32>
    %c0_32 = arith.constant 0 : index
    %c384 = arith.constant 384 : index
    %50 = vector.load %arg9[%c0_32, %c384] : memref<16x896xf32, #tpu.memory_space<vmem>>, vector<16x64xf32>
    tpu.vector_store %arg9[%c0_32, %c384], %49 {strides = array<i32>} : memref<16x896xf32, #tpu.memory_space<vmem>>, vector<16x64xf32>,
    %c0_33 = arith.constant 0 : index
    %c1792 = arith.constant 1792 : index
    %51 = vector.load %arg1[%c0_33, %c1792] : memref<16x3584xbf16, #tpu.memory_space<vmem>>, vector<16x256xbf16>
    %cst_34 = arith.constant dense<0.000000e+00> : vector<16x64xf32>
    %52 = tpu.matmul %51, %0, %cst_34 {dimension_numbers = #tpu.dot_dimension_numbers<[1], [0], [0], [1], [0, 0, 1, 1], [], []>} : vector<16x256xbf16>, vector<256x64xbf16>, vector<16x64xf32> -> vector<16x64xf32>
    %53 = vector.broadcast %1 : vector<1x64xf32> to vector<16x64xf32>
    %54 = arith.addf %52, %53 : vector<16x64xf32>
    %cst_35 = arith.constant 0.000000e+00 : f32
    %55 = vector.broadcast %cst_35 : f32 to vector<16x64xf32>
    %56 = arith.maximumf %54, %55 : vector<16x64xf32>
    %c0_36 = arith.constant 0 : index
    %c448 = arith.constant 448 : index
    %57 = vector.load %arg9[%c0_36, %c448] : memref<16x896xf32, #tpu.memory_space<vmem>>, vector<16x64xf32>
    tpu.vector_store %arg9[%c0_36, %c448], %56 {strides = array<i32>} : memref<16x896xf32, #tpu.memory_space<vmem>>, vector<16x64xf32>,
    %c0_37 = arith.constant 0 : index
    %c2048 = arith.constant 2048 : index
    %58 = vector.load %arg1[%c0_37, %c2048] : memref<16x3584xbf16, #tpu.memory_space<vmem>>, vector<16x256xbf16>
    %cst_38 = arith.constant dense<0.000000e+00> : vector<16x64xf32>
    %59 = tpu.matmul %58, %0, %cst_38 {dimension_numbers = #tpu.dot_dimension_numbers<[1], [0], [0], [1], [0, 0, 1, 1], [], []>} : vector<16x256xbf16>, vector<256x64xbf16>, vector<16x64xf32> -> vector<16x64xf32>
    %60 = vector.broadcast %1 : vector<1x64xf32> to vector<16x64xf32>
    %61 = arith.addf %59, %60 : vector<16x64xf32>
    %cst_39 = arith.constant 0.000000e+00 : f32
    %62 = vector.broadcast %cst_39 : f32 to vector<16x64xf32>
    %63 = arith.maximumf %61, %62 : vector<16x64xf32>
    %c0_40 = arith.constant 0 : index
    %c512_41 = arith.constant 512 : index
    %64 = vector.load %arg9[%c0_40, %c512_41] : memref<16x896xf32, #tpu.memory_space<vmem>>, vector<16x64xf32>
    tpu.vector_store %arg9[%c0_40, %c512_41], %63 {strides = array<i32>} : memref<16x896xf32, #tpu.memory_space<vmem>>, vector<16x64xf32>,
    %c0_42 = arith.constant 0 : index
    %c2304 = arith.constant 2304 : index
    %65 = vector.load %arg1[%c0_42, %c2304] : memref<16x3584xbf16, #tpu.memory_space<vmem>>, vector<16x256xbf16>
    %cst_43 = arith.constant dense<0.000000e+00> : vector<16x64xf32>
    %66 = tpu.matmul %65, %0, %cst_43 {dimension_numbers = #tpu.dot_dimension_numbers<[1], [0], [0], [1], [0, 0, 1, 1], [], []>} : vector<16x256xbf16>, vector<256x64xbf16>, vector<16x64xf32> -> vector<16x64xf32>
    %67 = vector.broadcast %1 : vector<1x64xf32> to vector<16x64xf32>
    %68 = arith.addf %66, %67 : vector<16x64xf32>
    %cst_44 = arith.constant 0.000000e+00 : f32
    %69 = vector.broadcast %cst_44 : f32 to vector<16x64xf32>
    %70 = arith.maximumf %68, %69 : vector<16x64xf32>
    %c0_45 = arith.constant 0 : index
    %c576 = arith.constant 576 : index
    %71 = vector.load %arg9[%c0_45, %c576] : memref<16x896xf32, #tpu.memory_space<vmem>>, vector<16x64xf32>
    tpu.vector_store %arg9[%c0_45, %c576], %70 {strides = array<i32>} : memref<16x896xf32, #tpu.memory_space<vmem>>, vector<16x64xf32>,
    %c0_46 = arith.constant 0 : index
    %c2560 = arith.constant 2560 : index
    %72 = vector.load %arg1[%c0_46, %c2560] : memref<16x3584xbf16, #tpu.memory_space<vmem>>, vector<16x256xbf16>
    %cst_47 = arith.constant dense<0.000000e+00> : vector<16x64xf32>
    %73 = tpu.matmul %72, %0, %cst_47 {dimension_numbers = #tpu.dot_dimension_numbers<[1], [0], [0], [1], [0, 0, 1, 1], [], []>} : vector<16x256xbf16>, vector<256x64xbf16>, vector<16x64xf32> -> vector<16x64xf32>
    %74 = vector.broadcast %1 : vector<1x64xf32> to vector<16x64xf32>
    %75 = arith.addf %73, %74 : vector<16x64xf32>
    %cst_48 = arith.constant 0.000000e+00 : f32
    %76 = vector.broadcast %cst_48 : f32 to vector<16x64xf32>
    %77 = arith.maximumf %75, %76 : vector<16x64xf32>
    %c0_49 = arith.constant 0 : index
    %c640 = arith.constant 640 : index
    %78 = vector.load %arg9[%c0_49, %c640] : memref<16x896xf32, #tpu.memory_space<vmem>>, vector<16x64xf32>
    tpu.vector_store %arg9[%c0_49, %c640], %77 {strides = array<i32>} : memref<16x896xf32, #tpu.memory_space<vmem>>, vector<16x64xf32>,
    %c0_50 = arith.constant 0 : index
    %c2816 = arith.constant 2816 : index
    %79 = vector.load %arg1[%c0_50, %c2816] : memref<16x3584xbf16, #tpu.memory_space<vmem>>, vector<16x256xbf16>
    %cst_51 = arith.constant dense<0.000000e+00> : vector<16x64xf32>
    %80 = tpu.matmul %79, %0, %cst_51 {dimension_numbers = #tpu.dot_dimension_numbers<[1], [0], [0], [1], [0, 0, 1, 1], [], []>} : vector<16x256xbf16>, vector<256x64xbf16>, vector<16x64xf32> -> vector<16x64xf32>
    %81 = vector.broadcast %1 : vector<1x64xf32> to vector<16x64xf32>
    %82 = arith.addf %80, %81 : vector<16x64xf32>
    %cst_52 = arith.constant 0.000000e+00 : f32
    %83 = vector.broadcast %cst_52 : f32 to vector<16x64xf32>
    %84 = arith.maximumf %82, %83 : vector<16x64xf32>
    %c0_53 = arith.constant 0 : index
    %c704 = arith.constant 704 : index
    %85 = vector.load %arg9[%c0_53, %c704] : memref<16x896xf32, #tpu.memory_space<vmem>>, vector<16x64xf32>
    tpu.vector_store %arg9[%c0_53, %c704], %84 {strides = array<i32>} : memref<16x896xf32, #tpu.memory_space<vmem>>, vector<16x64xf32>,
    %c0_54 = arith.constant 0 : index
    %c3072 = arith.constant 3072 : index
    %86 = vector.load %arg1[%c0_54, %c3072] : memref<16x3584xbf16, #tpu.memory_space<vmem>>, vector<16x256xbf16>
    %cst_55 = arith.constant dense<0.000000e+00> : vector<16x64xf32>
    %87 = tpu.matmul %86, %0, %cst_55 {dimension_numbers = #tpu.dot_dimension_numbers<[1], [0], [0], [1], [0, 0, 1, 1], [], []>} : vector<16x256xbf16>, vector<256x64xbf16>, vector<16x64xf32> -> vector<16x64xf32>
    %88 = vector.broadcast %1 : vector<1x64xf32> to vector<16x64xf32>
    %89 = arith.addf %87, %88 : vector<16x64xf32>
    %cst_56 = arith.constant 0.000000e+00 : f32
    %90 = vector.broadcast %cst_56 : f32 to vector<16x64xf32>
    %91 = arith.maximumf %89, %90 : vector<16x64xf32>
    %c0_57 = arith.constant 0 : index
    %c768_58 = arith.constant 768 : index
    %92 = vector.load %arg9[%c0_57, %c768_58] : memref<16x896xf32, #tpu.memory_space<vmem>>, vector<16x64xf32>
    tpu.vector_store %arg9[%c0_57, %c768_58], %91 {strides = array<i32>} : memref<16x896xf32, #tpu.memory_space<vmem>>, vector<16x64xf32>,
    %c0_59 = arith.constant 0 : index
    %c3328 = arith.constant 3328 : index
    %93 = vector.load %arg1[%c0_59, %c3328] : memref<16x3584xbf16, #tpu.memory_space<vmem>>, vector<16x256xbf16>
    %cst_60 = arith.constant dense<0.000000e+00> : vector<16x64xf32>
    %94 = tpu.matmul %93, %0, %cst_60 {dimension_numbers = #tpu.dot_dimension_numbers<[1], [0], [0], [1], [0, 0, 1, 1], [], []>} : vector<16x256xbf16>, vector<256x64xbf16>, vector<16x64xf32> -> vector<16x64xf32>
    %95 = vector.broadcast %1 : vector<1x64xf32> to vector<16x64xf32>
    %96 = arith.addf %94, %95 : vector<16x64xf32>
    %cst_61 = arith.constant 0.000000e+00 : f32
    %97 = vector.broadcast %cst_61 : f32 to vector<16x64xf32>
    %98 = arith.maximumf %96, %97 : vector<16x64xf32>
    %c0_62 = arith.constant 0 : index
    %c832 = arith.constant 832 : index
    %99 = vector.load %arg9[%c0_62, %c832] : memref<16x896xf32, #tpu.memory_space<vmem>>, vector<16x64xf32>
    tpu.vector_store %arg9[%c0_62, %c832], %98 {strides = array<i32>} : memref<16x896xf32, #tpu.memory_space<vmem>>, vector<16x64xf32>,
    %c0_63 = arith.constant 0 : index
    %c0_64 = arith.constant 0 : index
    %100 = vector.load %arg9[%c0_63, %c0_64] : memref<16x896xf32, #tpu.memory_space<vmem>>, vector<16x896xf32>
    %101 = arith.truncf %100 : vector<16x896xf32> to vector<16x896xbf16>
    %c0_65 = arith.constant 0 : index
    %c0_66 = arith.constant 0 : index
    %102 = vector.load %arg4[%c0_65, %c0_66] : memref<896x512xbf16, #tpu.memory_space<vmem>>, vector<896x512xbf16>
    %cst_67 = arith.constant dense<0.000000e+00> : vector<16x512xf32>
    %103 = tpu.matmul %101, %102, %cst_67 {dimension_numbers = #tpu.dot_dimension_numbers<[1], [0], [0], [1], [0, 0, 1, 1], [], []>} : vector<16x896xbf16>, vector<896x512xbf16>, vector<16x512xf32> -> vector<16x512xf32>
    %c0_68 = arith.constant 0 : index
    %c0_69 = arith.constant 0 : index
    %104 = vector.load %arg5[%c0_68, %c0_69] : memref<1x512xf32, #tpu.memory_space<vmem>>, vector<1x512xf32>
    %105 = vector.broadcast %104 : vector<1x512xf32> to vector<16x512xf32>
    %106 = arith.addf %103, %105 : vector<16x512xf32>
    %cst_70 = arith.constant 0.000000e+00 : f32
    %107 = vector.broadcast %cst_70 : f32 to vector<16x512xf32>
    %108 = arith.maximumf %106, %107 : vector<16x512xf32>
    %109 = arith.truncf %108 : vector<16x512xf32> to vector<16x512xbf16>
    %c0_71 = arith.constant 0 : index
    %c0_72 = arith.constant 0 : index
    %110 = vector.load %arg6[%c0_71, %c0_72] : memref<512x128xbf16, #tpu.memory_space<vmem>>, vector<512x128xbf16>
    %cst_73 = arith.constant dense<0.000000e+00> : vector<16x128xf32>
    %111 = tpu.matmul %109, %110, %cst_73 {dimension_numbers = #tpu.dot_dimension_numbers<[1], [0], [0], [1], [0, 0, 1, 1], [], []>} : vector<16x512xbf16>, vector<512x128xbf16>, vector<16x128xf32> -> vector<16x128xf32>
    %c0_74 = arith.constant 0 : index
    %c0_75 = arith.constant 0 : index
    %112 = vector.load %arg7[%c0_74, %c0_75] : memref<1x128xf32, #tpu.memory_space<vmem>>, vector<1x128xf32>
    %113 = vector.broadcast %112 : vector<1x128xf32> to vector<16x128xf32>
    %114 = arith.addf %111, %113 : vector<16x128xf32>
    %c0_76 = arith.constant 0 : index
    %c0_77 = arith.constant 0 : index
    %115 = vector.load %arg8[%c0_76, %c0_77] : memref<16x128xf32, #tpu.memory_space<vmem>>, vector<16x128xf32>
    tpu.vector_store %arg8[%c0_76, %c0_77], %114 {strides = array<i32>} : memref<16x128xf32, #tpu.memory_space<vmem>>, vector<16x128xf32>,
    return
  }
  func.func @transform_0(%arg0: i32) -> (i32, i32) {
    %c0_i32 = arith.constant 0 : i32
    %c0_i32_0 = arith.constant 0 : i32
    return %arg0, %c0_i32 : i32, i32
  }
  func.func @transform_1(%arg0: i32) -> (i32, i32) {
    %c0_i32 = arith.constant 0 : i32
    %c0_i32_0 = arith.constant 0 : i32
    %c0_i32_1 = arith.constant 0 : i32
    return %c0_i32, %c0_i32_0 : i32, i32
  }
  func.func @transform_2(%arg0: i32) -> (i32, i32) {
    %c0_i32 = arith.constant 0 : i32
    %c0_i32_0 = arith.constant 0 : i32
    %c0_i32_1 = arith.constant 0 : i32
    return %c0_i32, %c0_i32_0 : i32, i32
  }
  func.func @transform_3(%arg0: i32) -> (i32, i32) {
    %c0_i32 = arith.constant 0 : i32
    %c0_i32_0 = arith.constant 0 : i32
    %c0_i32_1 = arith.constant 0 : i32
    return %c0_i32, %c0_i32_0 : i32, i32
  }
  func.func @transform_4(%arg0: i32) -> (i32, i32) {
    %c0_i32 = arith.constant 0 : i32
    %c0_i32_0 = arith.constant 0 : i32
    %c0_i32_1 = arith.constant 0 : i32
    return %c0_i32, %c0_i32_0 : i32, i32
  }
  func.func @transform_5(%arg0: i32) -> (i32, i32) {
    %c0_i32 = arith.constant 0 : i32
    %c0_i32_0 = arith.constant 0 : i32
    %c0_i32_1 = arith.constant 0 : i32
    return %c0_i32, %c0_i32_0 : i32, i32
  }
  func.func @transform_6(%arg0: i32) -> (i32, i32) {
    %c0_i32 = arith.constant 0 : i32
    %c0_i32_0 = arith.constant 0 : i32
    %c0_i32_1 = arith.constant 0 : i32
    return %c0_i32, %c0_i32_0 : i32, i32
  }
  func.func @transform_7(%arg0: i32) -> (i32, i32) {
    %c0_i32 = arith.constant 0 : i32
    %c0_i32_0 = arith.constant 0 : i32
    return %arg0, %c0_i32 : i32, i32
  }
}

module attributes {stable_mosaic.version = 11 : i64} {
  func.func @_fused_net_kernel(%arg0: i32, %arg1: memref<16x3584xbf16, #tpu.memory_space<vmem>>, %arg2: memref<256x64xbf16, #tpu.memory_space<vmem>>, %arg3: memref<1x64xf32, #tpu.memory_space<vmem>>, %arg4: memref<896x512xbf16, #tpu.memory_space<vmem>>, %arg5: memref<1x512xf32, #tpu.memory_space<vmem>>, %arg6: memref<512x128xbf16, #tpu.memory_space<vmem>>, %arg7: memref<1x128xf32, #tpu.memory_space<vmem>>, %arg8: memref<16x128xf32, #tpu.memory_space<vmem>>, %arg9: memref<16x896xf32, #tpu.memory_space<vmem>>) attributes {dimension_semantics = [#tpu.dimension_semantics<parallel>], iteration_bounds = array<i64: 1>, scalar_prefetch = 0 : i64, scratch_operands = 1 : i64, tpu.core_type = #tpu.core_type<tc>, window_params = [{transform_indices = @transform_0, window_bounds = array<i64: 16, 3584>}, {pipeline_mode = #tpu.pipeline_mode<synchronous>, transform_indices = @transform_1, window_bounds = array<i64: 256, 64>}, {pipeline_mode = #tpu.pipeline_mode<synchronous>, transform_indices = @transform_2, window_bounds = array<i64: 1, 64>}, {pipeline_mode = #tpu.pipeline_mode<synchronous>, transform_indices = @transform_3, window_bounds = array<i64: 896, 512>}, {pipeline_mode = #tpu.pipeline_mode<synchronous>, transform_indices = @transform_4, window_bounds = array<i64: 1, 512>}, {pipeline_mode = #tpu.pipeline_mode<synchronous>, transform_indices = @transform_5, window_bounds = array<i64: 512, 128>}, {pipeline_mode = #tpu.pipeline_mode<synchronous>, transform_indices = @transform_6, window_bounds = array<i64: 1, 128>}, {transform_indices = @transform_7, window_bounds = array<i64: 16, 128>}]} {
    %c0 = arith.constant 0 : index
    %c0_0 = arith.constant 0 : index
    %0 = vector.load %arg2[%c0, %c0_0] : memref<256x64xbf16, #tpu.memory_space<vmem>>, vector<256x64xbf16>
    %c0_1 = arith.constant 0 : index
    %c0_2 = arith.constant 0 : index
    %1 = vector.load %arg3[%c0_1, %c0_2] : memref<1x64xf32, #tpu.memory_space<vmem>>, vector<1x64xf32>
    %c0_3 = arith.constant 0 : index
    %c0_4 = arith.constant 0 : index
    %2 = vector.load %arg1[%c0_3, %c0_4] : memref<16x3584xbf16, #tpu.memory_space<vmem>>, vector<16x256xbf16>
    %cst = arith.constant dense<0.000000e+00> : vector<16x64xf32>
    %3 = tpu.matmul %2, %0, %cst {dimension_numbers = #tpu.dot_dimension_numbers<[1], [0], [0], [1], [0, 0, 1, 1], [], []>} : vector<16x256xbf16>, vector<256x64xbf16>, vector<16x64xf32> -> vector<16x64xf32>
    %4 = vector.broadcast %1 : vector<1x64xf32> to vector<16x64xf32>
    %5 = arith.addf %3, %4 : vector<16x64xf32>
    %cst_5 = arith.constant 0.000000e+00 : f32
    %6 = vector.broadcast %cst_5 : f32 to vector<16x64xf32>
    %7 = arith.maximumf %5, %6 : vector<16x64xf32>
    %c0_6 = arith.constant 0 : index
    %c0_7 = arith.constant 0 : index
    %8 = vector.load %arg9[%c0_6, %c0_7] : memref<16x896xf32, #tpu.memory_space<vmem>>, vector<16x64xf32>
    tpu.vector_store %arg9[%c0_6, %c0_7], %7 {strides = array<i32>} : memref<16x896xf32, #tpu.memory_space<vmem>>, vector<16x64xf32>,
    %c0_8 = arith.constant 0 : index
    %c256 = arith.constant 256 : index
    %9 = vector.load %arg1[%c0_8, %c256] : memref<16x3584xbf16, #tpu.memory_space<vmem>>, vector<16x256xbf16>
    %cst_9 = arith.constant dense<0.000000e+00> : vector<16x64xf32>
    %10 = tpu.matmul %9, %0, %cst_9 {dimension_numbers = #tpu.dot_dimension_numbers<[1], [0], [0], [1], [0, 0, 1, 1], [], []>} : vector<16x256xbf16>, vector<256x64xbf16>, vector<16x64xf32> -> vector<16x64xf32>
    %11 = vector.broadcast %1 : vector<1x64xf32> to vector<16x64xf32>
    %12 = arith.addf %10, %11 : vector<16x64xf32>
    %cst_10 = arith.constant 0.000000e+00 : f32
    %13 = vector.broadcast %cst_10 : f32 to vector<16x64xf32>
    %14 = arith.maximumf %12, %13 : vector<16x64xf32>
    %c0_11 = arith.constant 0 : index
    %c64 = arith.constant 64 : index
    %15 = vector.load %arg9[%c0_11, %c64] : memref<16x896xf32, #tpu.memory_space<vmem>>, vector<16x64xf32>
    tpu.vector_store %arg9[%c0_11, %c64], %14 {strides = array<i32>} : memref<16x896xf32, #tpu.memory_space<vmem>>, vector<16x64xf32>,
    %c0_12 = arith.constant 0 : index
    %c512 = arith.constant 512 : index
    %16 = vector.load %arg1[%c0_12, %c512] : memref<16x3584xbf16, #tpu.memory_space<vmem>>, vector<16x256xbf16>
    %cst_13 = arith.constant dense<0.000000e+00> : vector<16x64xf32>
    %17 = tpu.matmul %16, %0, %cst_13 {dimension_numbers = #tpu.dot_dimension_numbers<[1], [0], [0], [1], [0, 0, 1, 1], [], []>} : vector<16x256xbf16>, vector<256x64xbf16>, vector<16x64xf32> -> vector<16x64xf32>
    %18 = vector.broadcast %1 : vector<1x64xf32> to vector<16x64xf32>
    %19 = arith.addf %17, %18 : vector<16x64xf32>
    %cst_14 = arith.constant 0.000000e+00 : f32
    %20 = vector.broadcast %cst_14 : f32 to vector<16x64xf32>
    %21 = arith.maximumf %19, %20 : vector<16x64xf32>
    %c0_15 = arith.constant 0 : index
    %c128 = arith.constant 128 : index
    %22 = vector.load %arg9[%c0_15, %c128] : memref<16x896xf32, #tpu.memory_space<vmem>>, vector<16x64xf32>
    tpu.vector_store %arg9[%c0_15, %c128], %21 {strides = array<i32>} : memref<16x896xf32, #tpu.memory_space<vmem>>, vector<16x64xf32>,
    %c0_16 = arith.constant 0 : index
    %c768 = arith.constant 768 : index
    %23 = vector.load %arg1[%c0_16, %c768] : memref<16x3584xbf16, #tpu.memory_space<vmem>>, vector<16x256xbf16>
    %cst_17 = arith.constant dense<0.000000e+00> : vector<16x64xf32>
    %24 = tpu.matmul %23, %0, %cst_17 {dimension_numbers = #tpu.dot_dimension_numbers<[1], [0], [0], [1], [0, 0, 1, 1], [], []>} : vector<16x256xbf16>, vector<256x64xbf16>, vector<16x64xf32> -> vector<16x64xf32>
    %25 = vector.broadcast %1 : vector<1x64xf32> to vector<16x64xf32>
    %26 = arith.addf %24, %25 : vector<16x64xf32>
    %cst_18 = arith.constant 0.000000e+00 : f32
    %27 = vector.broadcast %cst_18 : f32 to vector<16x64xf32>
    %28 = arith.maximumf %26, %27 : vector<16x64xf32>
    %c0_19 = arith.constant 0 : index
    %c192 = arith.constant 192 : index
    %29 = vector.load %arg9[%c0_19, %c192] : memref<16x896xf32, #tpu.memory_space<vmem>>, vector<16x64xf32>
    tpu.vector_store %arg9[%c0_19, %c192], %28 {strides = array<i32>} : memref<16x896xf32, #tpu.memory_space<vmem>>, vector<16x64xf32>,
    %c0_20 = arith.constant 0 : index
    %c1024 = arith.constant 1024 : index
    %30 = vector.load %arg1[%c0_20, %c1024] : memref<16x3584xbf16, #tpu.memory_space<vmem>>, vector<16x256xbf16>
    %cst_21 = arith.constant dense<0.000000e+00> : vector<16x64xf32>
    %31 = tpu.matmul %30, %0, %cst_21 {dimension_numbers = #tpu.dot_dimension_numbers<[1], [0], [0], [1], [0, 0, 1, 1], [], []>} : vector<16x256xbf16>, vector<256x64xbf16>, vector<16x64xf32> -> vector<16x64xf32>
    %32 = vector.broadcast %1 : vector<1x64xf32> to vector<16x64xf32>
    %33 = arith.addf %31, %32 : vector<16x64xf32>
    %cst_22 = arith.constant 0.000000e+00 : f32
    %34 = vector.broadcast %cst_22 : f32 to vector<16x64xf32>
    %35 = arith.maximumf %33, %34 : vector<16x64xf32>
    %c0_23 = arith.constant 0 : index
    %c256_24 = arith.constant 256 : index
    %36 = vector.load %arg9[%c0_23, %c256_24] : memref<16x896xf32, #tpu.memory_space<vmem>>, vector<16x64xf32>
    tpu.vector_store %arg9[%c0_23, %c256_24], %35 {strides = array<i32>} : memref<16x896xf32, #tpu.memory_space<vmem>>, vector<16x64xf32>,
    %c0_25 = arith.constant 0 : index
    %c1280 = arith.constant 1280 : index
    %37 = vector.load %arg1[%c0_25, %c1280] : memref<16x3584xbf16, #tpu.memory_space<vmem>>, vector<16x256xbf16>
    %cst_26 = arith.constant dense<0.000000e+00> : vector<16x64xf32>
    %38 = tpu.matmul %37, %0, %cst_26 {dimension_numbers = #tpu.dot_dimension_numbers<[1], [0], [0], [1], [0, 0, 1, 1], [], []>} : vector<16x256xbf16>, vector<256x64xbf16>, vector<16x64xf32> -> vector<16x64xf32>
    %39 = vector.broadcast %1 : vector<1x64xf32> to vector<16x64xf32>
    %40 = arith.addf %38, %39 : vector<16x64xf32>
    %cst_27 = arith.constant 0.000000e+00 : f32
    %41 = vector.broadcast %cst_27 : f32 to vector<16x64xf32>
    %42 = arith.maximumf %40, %41 : vector<16x64xf32>
    %c0_28 = arith.constant 0 : index
    %c320 = arith.constant 320 : index
    %43 = vector.load %arg9[%c0_28, %c320] : memref<16x896xf32, #tpu.memory_space<vmem>>, vector<16x64xf32>
    tpu.vector_store %arg9[%c0_28, %c320], %42 {strides = array<i32>} : memref<16x896xf32, #tpu.memory_space<vmem>>, vector<16x64xf32>,
    %c0_29 = arith.constant 0 : index
    %c1536 = arith.constant 1536 : index
    %44 = vector.load %arg1[%c0_29, %c1536] : memref<16x3584xbf16, #tpu.memory_space<vmem>>, vector<16x256xbf16>
    %cst_30 = arith.constant dense<0.000000e+00> : vector<16x64xf32>
    %45 = tpu.matmul %44, %0, %cst_30 {dimension_numbers = #tpu.dot_dimension_numbers<[1], [0], [0], [1], [0, 0, 1, 1], [], []>} : vector<16x256xbf16>, vector<256x64xbf16>, vector<16x64xf32> -> vector<16x64xf32>
    %46 = vector.broadcast %1 : vector<1x64xf32> to vector<16x64xf32>
    %47 = arith.addf %45, %46 : vector<16x64xf32>
    %cst_31 = arith.constant 0.000000e+00 : f32
    %48 = vector.broadcast %cst_31 : f32 to vector<16x64xf32>
    %49 = arith.maximumf %47, %48 : vector<16x64xf32>
    %c0_32 = arith.constant 0 : index
    %c384 = arith.constant 384 : index
    %50 = vector.load %arg9[%c0_32, %c384] : memref<16x896xf32, #tpu.memory_space<vmem>>, vector<16x64xf32>
    tpu.vector_store %arg9[%c0_32, %c384], %49 {strides = array<i32>} : memref<16x896xf32, #tpu.memory_space<vmem>>, vector<16x64xf32>,
    %c0_33 = arith.constant 0 : index
    %c1792 = arith.constant 1792 : index
    %51 = vector.load %arg1[%c0_33, %c1792] : memref<16x3584xbf16, #tpu.memory_space<vmem>>, vector<16x256xbf16>
    %cst_34 = arith.constant dense<0.000000e+00> : vector<16x64xf32>
    %52 = tpu.matmul %51, %0, %cst_34 {dimension_numbers = #tpu.dot_dimension_numbers<[1], [0], [0], [1], [0, 0, 1, 1], [], []>} : vector<16x256xbf16>, vector<256x64xbf16>, vector<16x64xf32> -> vector<16x64xf32>
    %53 = vector.broadcast %1 : vector<1x64xf32> to vector<16x64xf32>
    %54 = arith.addf %52, %53 : vector<16x64xf32>
    %cst_35 = arith.constant 0.000000e+00 : f32
    %55 = vector.broadcast %cst_35 : f32 to vector<16x64xf32>
    %56 = arith.maximumf %54, %55 : vector<16x64xf32>
    %c0_36 = arith.constant 0 : index
    %c448 = arith.constant 448 : index
    %57 = vector.load %arg9[%c0_36, %c448] : memref<16x896xf32, #tpu.memory_space<vmem>>, vector<16x64xf32>
    tpu.vector_store %arg9[%c0_36, %c448], %56 {strides = array<i32>} : memref<16x896xf32, #tpu.memory_space<vmem>>, vector<16x64xf32>,
    %c0_37 = arith.constant 0 : index
    %c2048 = arith.constant 2048 : index
    %58 = vector.load %arg1[%c0_37, %c2048] : memref<16x3584xbf16, #tpu.memory_space<vmem>>, vector<16x256xbf16>
    %cst_38 = arith.constant dense<0.000000e+00> : vector<16x64xf32>
    %59 = tpu.matmul %58, %0, %cst_38 {dimension_numbers = #tpu.dot_dimension_numbers<[1], [0], [0], [1], [0, 0, 1, 1], [], []>} : vector<16x256xbf16>, vector<256x64xbf16>, vector<16x64xf32> -> vector<16x64xf32>
    %60 = vector.broadcast %1 : vector<1x64xf32> to vector<16x64xf32>
    %61 = arith.addf %59, %60 : vector<16x64xf32>
    %cst_39 = arith.constant 0.000000e+00 : f32
    %62 = vector.broadcast %cst_39 : f32 to vector<16x64xf32>
    %63 = arith.maximumf %61, %62 : vector<16x64xf32>
    %c0_40 = arith.constant 0 : index
    %c512_41 = arith.constant 512 : index
    %64 = vector.load %arg9[%c0_40, %c512_41] : memref<16x896xf32, #tpu.memory_space<vmem>>, vector<16x64xf32>
    tpu.vector_store %arg9[%c0_40, %c512_41], %63 {strides = array<i32>} : memref<16x896xf32, #tpu.memory_space<vmem>>, vector<16x64xf32>,
    %c0_42 = arith.constant 0 : index
    %c2304 = arith.constant 2304 : index
    %65 = vector.load %arg1[%c0_42, %c2304] : memref<16x3584xbf16, #tpu.memory_space<vmem>>, vector<16x256xbf16>
    %cst_43 = arith.constant dense<0.000000e+00> : vector<16x64xf32>
    %66 = tpu.matmul %65, %0, %cst_43 {dimension_numbers = #tpu.dot_dimension_numbers<[1], [0], [0], [1], [0, 0, 1, 1], [], []>} : vector<16x256xbf16>, vector<256x64xbf16>, vector<16x64xf32> -> vector<16x64xf32>
    %67 = vector.broadcast %1 : vector<1x64xf32> to vector<16x64xf32>
    %68 = arith.addf %66, %67 : vector<16x64xf32>
    %cst_44 = arith.constant 0.000000e+00 : f32
    %69 = vector.broadcast %cst_44 : f32 to vector<16x64xf32>
    %70 = arith.maximumf %68, %69 : vector<16x64xf32>
    %c0_45 = arith.constant 0 : index
    %c576 = arith.constant 576 : index
    %71 = vector.load %arg9[%c0_45, %c576] : memref<16x896xf32, #tpu.memory_space<vmem>>, vector<16x64xf32>
    tpu.vector_store %arg9[%c0_45, %c576], %70 {strides = array<i32>} : memref<16x896xf32, #tpu.memory_space<vmem>>, vector<16x64xf32>,
    %c0_46 = arith.constant 0 : index
    %c2560 = arith.constant 2560 : index
    %72 = vector.load %arg1[%c0_46, %c2560] : memref<16x3584xbf16, #tpu.memory_space<vmem>>, vector<16x256xbf16>
    %cst_47 = arith.constant dense<0.000000e+00> : vector<16x64xf32>
    %73 = tpu.matmul %72, %0, %cst_47 {dimension_numbers = #tpu.dot_dimension_numbers<[1], [0], [0], [1], [0, 0, 1, 1], [], []>} : vector<16x256xbf16>, vector<256x64xbf16>, vector<16x64xf32> -> vector<16x64xf32>
    %74 = vector.broadcast %1 : vector<1x64xf32> to vector<16x64xf32>
    %75 = arith.addf %73, %74 : vector<16x64xf32>
    %cst_48 = arith.constant 0.000000e+00 : f32
    %76 = vector.broadcast %cst_48 : f32 to vector<16x64xf32>
    %77 = arith.maximumf %75, %76 : vector<16x64xf32>
    %c0_49 = arith.constant 0 : index
    %c640 = arith.constant 640 : index
    %78 = vector.load %arg9[%c0_49, %c640] : memref<16x896xf32, #tpu.memory_space<vmem>>, vector<16x64xf32>
    tpu.vector_store %arg9[%c0_49, %c640], %77 {strides = array<i32>} : memref<16x896xf32, #tpu.memory_space<vmem>>, vector<16x64xf32>,
    %c0_50 = arith.constant 0 : index
    %c2816 = arith.constant 2816 : index
    %79 = vector.load %arg1[%c0_50, %c2816] : memref<16x3584xbf16, #tpu.memory_space<vmem>>, vector<16x256xbf16>
    %cst_51 = arith.constant dense<0.000000e+00> : vector<16x64xf32>
    %80 = tpu.matmul %79, %0, %cst_51 {dimension_numbers = #tpu.dot_dimension_numbers<[1], [0], [0], [1], [0, 0, 1, 1], [], []>} : vector<16x256xbf16>, vector<256x64xbf16>, vector<16x64xf32> -> vector<16x64xf32>
    %81 = vector.broadcast %1 : vector<1x64xf32> to vector<16x64xf32>
    %82 = arith.addf %80, %81 : vector<16x64xf32>
    %cst_52 = arith.constant 0.000000e+00 : f32
    %83 = vector.broadcast %cst_52 : f32 to vector<16x64xf32>
    %84 = arith.maximumf %82, %83 : vector<16x64xf32>
    %c0_53 = arith.constant 0 : index
    %c704 = arith.constant 704 : index
    %85 = vector.load %arg9[%c0_53, %c704] : memref<16x896xf32, #tpu.memory_space<vmem>>, vector<16x64xf32>
    tpu.vector_store %arg9[%c0_53, %c704], %84 {strides = array<i32>} : memref<16x896xf32, #tpu.memory_space<vmem>>, vector<16x64xf32>,
    %c0_54 = arith.constant 0 : index
    %c3072 = arith.constant 3072 : index
    %86 = vector.load %arg1[%c0_54, %c3072] : memref<16x3584xbf16, #tpu.memory_space<vmem>>, vector<16x256xbf16>
    %cst_55 = arith.constant dense<0.000000e+00> : vector<16x64xf32>
    %87 = tpu.matmul %86, %0, %cst_55 {dimension_numbers = #tpu.dot_dimension_numbers<[1], [0], [0], [1], [0, 0, 1, 1], [], []>} : vector<16x256xbf16>, vector<256x64xbf16>, vector<16x64xf32> -> vector<16x64xf32>
    %88 = vector.broadcast %1 : vector<1x64xf32> to vector<16x64xf32>
    %89 = arith.addf %87, %88 : vector<16x64xf32>
    %cst_56 = arith.constant 0.000000e+00 : f32
    %90 = vector.broadcast %cst_56 : f32 to vector<16x64xf32>
    %91 = arith.maximumf %89, %90 : vector<16x64xf32>
    %c0_57 = arith.constant 0 : index
    %c768_58 = arith.constant 768 : index
    %92 = vector.load %arg9[%c0_57, %c768_58] : memref<16x896xf32, #tpu.memory_space<vmem>>, vector<16x64xf32>
    tpu.vector_store %arg9[%c0_57, %c768_58], %91 {strides = array<i32>} : memref<16x896xf32, #tpu.memory_space<vmem>>, vector<16x64xf32>,
    %c0_59 = arith.constant 0 : index
    %c3328 = arith.constant 3328 : index
    %93 = vector.load %arg1[%c0_59, %c3328] : memref<16x3584xbf16, #tpu.memory_space<vmem>>, vector<16x256xbf16>
    %cst_60 = arith.constant dense<0.000000e+00> : vector<16x64xf32>
    %94 = tpu.matmul %93, %0, %cst_60 {dimension_numbers = #tpu.dot_dimension_numbers<[1], [0], [0], [1], [0, 0, 1, 1], [], []>} : vector<16x256xbf16>, vector<256x64xbf16>, vector<16x64xf32> -> vector<16x64xf32>
    %95 = vector.broadcast %1 : vector<1x64xf32> to vector<16x64xf32>
    %96 = arith.addf %94, %95 : vector<16x64xf32>
    %cst_61 = arith.constant 0.000000e+00 : f32
    %97 = vector.broadcast %cst_61 : f32 to vector<16x64xf32>
    %98 = arith.maximumf %96, %97 : vector<16x64xf32>
    %c0_62 = arith.constant 0 : index
    %c832 = arith.constant 832 : index
    %99 = vector.load %arg9[%c0_62, %c832] : memref<16x896xf32, #tpu.memory_space<vmem>>, vector<16x64xf32>
    tpu.vector_store %arg9[%c0_62, %c832], %98 {strides = array<i32>} : memref<16x896xf32, #tpu.memory_space<vmem>>, vector<16x64xf32>,
    %c0_63 = arith.constant 0 : index
    %c0_64 = arith.constant 0 : index
    %100 = vector.load %arg9[%c0_63, %c0_64] : memref<16x896xf32, #tpu.memory_space<vmem>>, vector<16x896xf32>
    %101 = arith.truncf %100 : vector<16x896xf32> to vector<16x896xbf16>
    %c0_65 = arith.constant 0 : index
    %c0_66 = arith.constant 0 : index
    %102 = vector.load %arg4[%c0_65, %c0_66] : memref<896x512xbf16, #tpu.memory_space<vmem>>, vector<896x512xbf16>
    %cst_67 = arith.constant dense<0.000000e+00> : vector<16x512xf32>
    %103 = tpu.matmul %101, %102, %cst_67 {dimension_numbers = #tpu.dot_dimension_numbers<[1], [0], [0], [1], [0, 0, 1, 1], [], []>} : vector<16x896xbf16>, vector<896x512xbf16>, vector<16x512xf32> -> vector<16x512xf32>
    %c0_68 = arith.constant 0 : index
    %c0_69 = arith.constant 0 : index
    %104 = vector.load %arg5[%c0_68, %c0_69] : memref<1x512xf32, #tpu.memory_space<vmem>>, vector<1x512xf32>
    %105 = vector.broadcast %104 : vector<1x512xf32> to vector<16x512xf32>
    %106 = arith.addf %103, %105 : vector<16x512xf32>
    %cst_70 = arith.constant 0.000000e+00 : f32
    %107 = vector.broadcast %cst_70 : f32 to vector<16x512xf32>
    %108 = arith.maximumf %106, %107 : vector<16x512xf32>
    %109 = arith.truncf %108 : vector<16x512xf32> to vector<16x512xbf16>
    %c0_71 = arith.constant 0 : index
    %c0_72 = arith.constant 0 : index
    %110 = vector.load %arg6[%c0_71, %c0_72] : memref<512x128xbf16, #tpu.memory_space<vmem>>, vector<512x128xbf16>
    %cst_73 = arith.constant dense<0.000000e+00> : vector<16x128xf32>
    %111 = tpu.matmul %109, %110, %cst_73 {dimension_numbers = #tpu.dot_dimension_numbers<[1], [0], [0], [1], [0, 0, 1, 1], [], []>} : vector<16x512xbf16>, vector<512x128xbf16>, vector<16x128xf32> -> vector<16x128xf32>
    %c0_74 = arith.constant 0 : index
    %c0_75 = arith.constant 0 : index
    %112 = vector.load %arg7[%c0_74, %c0_75] : memref<1x128xf32, #tpu.memory_space<vmem>>, vector<1x128xf32>
    %113 = vector.broadcast %112 : vector<1x128xf32> to vector<16x128xf32>
    %114 = arith.addf %111, %113 : vector<16x128xf32>
    %c0_76 = arith.constant 0 : index
    %c0_77 = arith.constant 0 : index
    %115 = vector.load %arg8[%c0_76, %c0_77] : memref<16x128xf32, #tpu.memory_space<vmem>>, vector<16x128xf32>
    tpu.vector_store %arg8[%c0_76, %c0_77], %114 {strides = array<i32>} : memref<16x128xf32, #tpu.memory_space<vmem>>, vector<16x128xf32>,
    return
  }
  func.func @transform_0(%arg0: i32) -> (i32, i32) {
    %c0_i32 = arith.constant 0 : i32
    %c0_i32_0 = arith.constant 0 : i32
    return %arg0, %c0_i32 : i32, i32
  }
  func.func @transform_1(%arg0: i32) -> (i32, i32) {
    %c0_i32 = arith.constant 0 : i32
    %c0_i32_0 = arith.constant 0 : i32
    %c0_i32_1 = arith.constant 0 : i32
    return %c0_i32, %c0_i32_0 : i32, i32
  }
  func.func @transform_2(%arg0: i32) -> (i32, i32) {
    %c0_i32 = arith.constant 0 : i32
    %c0_i32_0 = arith.constant 0 : i32
    %c0_i32_1 = arith.constant 0 : i32
    return %c0_i32, %c0_i32_0 : i32, i32
  }
  func.func @transform_3(%arg0: i32) -> (i32, i32) {
    %c0_i32 = arith.constant 0 : i32
    %c0_i32_0 = arith.constant 0 : i32
    %c0_i32_1 = arith.constant 0 : i32
    return %c0_i32, %c0_i32_0 : i32, i32
  }
  func.func @transform_4(%arg0: i32) -> (i32, i32) {
    %c0_i32 = arith.constant 0 : i32
    %c0_i32_0 = arith.constant 0 : i32
    %c0_i32_1 = arith.constant 0 : i32
    return %c0_i32, %c0_i32_0 : i32, i32
  }
  func.func @transform_5(%arg0: i32) -> (i32, i32) {
    %c0_i32 = arith.constant 0 : i32
    %c0_i32_0 = arith.constant 0 : i32
    %c0_i32_1 = arith.constant 0 : i32
    return %c0_i32, %c0_i32_0 : i32, i32
  }
  func.func @transform_6(%arg0: i32) -> (i32, i32) {
    %c0_i32 = arith.constant 0 : i32
    %c0_i32_0 = arith.constant 0 : i32
    %c0_i32_1 = arith.constant 0 : i32
    return %c0_i32, %c0_i32_0 : i32, i32
  }
  func.func @transform_7(%arg0: i32) -> (i32, i32) {
    %c0_i32 = arith.constant 0 : i32
    %c0_i32_0 = arith.constant 0 : i32
    return %arg0, %c0_i32 : i32, i32
  }
}

</mosaic_0001>

<bundles_post_ra>
// kernel: net_forward.1
= control target key start
LH: loop header
LB: loop body
LE: loop exit
PB: predicated region body
PF: predicated region fallthrough
CT: control target
= control target key end

     0   :  { %vm217_vm0 = vcmask 523264   ;;  %vm283_vm1 = vcmask 1048064   ;;  %s5528_s1 = inlined_call_operand.vmem [shape: bf16[256,64], index: 1, kind: input, shape index: {}]   ;;  %s5529_s0 = inlined_call_operand.vmem [shape: bf16[16,3584], index: 0, kind: input, shape index: {}]   ;;  %s5530_s2 = inlined_call_operand.vmem [shape: f32[1,64], index: 2, kind: input, shape index: {}]   ;;  %s5531_s3 = inlined_call_operand.vmem [shape: bf16[896,512], index: 3, kind: input, shape index: {}]   ;;  %s5532_s5 = inlined_call_operand.vmem [shape: bf16[512,128], index: 5, kind: input, shape index: {}]   ;;  %s5533_s4 = inlined_call_operand.vmem [shape: f32[1,512], index: 4, kind: input, shape index: {}]   ;;  %s5534_s6 = inlined_call_operand.vmem [shape: f32[1,128], index: 6, kind: input, shape index: {}]   ;;  %s5535_s7 = inlined_call_operand.vmem [shape: f32[16,128], index: 7, kind: output, shape index: {}]  }
   0x1   :  { %v4240_v0 = vld [vmem:[%s5528_s1 + $0x78] sm:$0xff]   ;;  %v4251_v2 = vld [vmem:[%s5528_s1 + $0x70] sm:$0xff]   ;;  %v4265_v4 = vld [vmem:[%s5528_s1 + $0x68] sm:$0xff]  }
   0x2   :  { %v4245_v1 = vld [vmem:[%s5528_s1 + $0x38] sm:$0xff]   ;;  %3436 = vmatprep.subr.bf16.mxu1 %v4240_v0  ;;  %3414 = vmatprep.subr.bf16.mxu0 %v4240_v0  ;;  %v4258_v3 = vld [vmem:[%s5528_s1 + $0x30] sm:$0xff]   ;;  %v4272_v5 = vld [vmem:[%s5528_s1 + $0x28] sm:$0xff]  }
   0x3   :  { %3437 = vmatpush3.bf16.msra.mxu1 %v4245_v1  ;;  %3415 = vmatpush3.bf16.msra.mxu0 %v4245_v1  ;;  %v4279_v6 = vld [vmem:[%s5528_s1 + $0x60] sm:$0xff]   ;;  %v4293_v8 = vld [vmem:[%s5528_s1 + $0x58] sm:$0xff]   ;;  %v4307_v10 = vld [vmem:[%s5528_s1 + $0x50] sm:$0xff]  }
   0x4   :  { %3438 = vmatprep.subr.bf16.mxu1 %v4251_v2  ;;  %3416 = vmatprep.subr.bf16.mxu0 %v4251_v2  ;;  %v4286_v7 = vld [vmem:[%s5528_s1 + $0x20] sm:$0xff]   ;;  %v4300_v9 = vld [vmem:[%s5528_s1 + $0x18] sm:$0xff]   ;;  %v4317_v12 = vld [vmem:[%s5528_s1 + $0x10] sm:$0xff]  }
   0x5   :  { %v3786_v11 = vld [vmem:[%s5529_s0 + $0xc] ss:$112 sps:$4 sm:$0xff]   ;;  %v4335_v15 = vld [vmem:[%s5528_s1 + $0x40] sm:$0xff]   ;;  %v3784_v18 = vld [vmem:[%s5529_s0 + $0x8] ss:$112 sps:$4 sm:$0xff]  }
   0x6   :  { %264 = vmatprep.mubr.bf16.mxu1 %v3786_v11  ;;  %v4323_v13 = vld [vmem:[%s5528_s1 + $0x48] sm:$0xff]   ;;  %v3798_v16 = vld [vmem:[%s5529_s0 + $0x4] ss:$112 sps:$4 sm:$0xff]   ;;  %v3796_v20 = vld [vmem:[%s5529_s0] ss:$112 sps:$4 sm:$0xff]  }
   0x7   :  { %3439 = vmatpush3.bf16.msra.mxu1 %v4258_v3  ;;  %3417 = vmatpush3.bf16.msra.mxu0 %v4258_v3  ;;  %v4329_v14 = vld [vmem:[%s5528_s1 + $0x8] sm:$0xff]   ;;  %v4346_v17 = vld [vmem:[%s5528_s1] sm:$0xff]  }
   0x8   :  { %3440 = vmatprep.subr.bf16.mxu1 %v4265_v4  ;;  %3418 = vmatprep.subr.bf16.mxu0 %v4265_v4  ;;  %v3789_v19 = vld [vmem:[%s5529_s0 + $0x1c] ss:$112 sps:$4 sm:$0xff]   ;;  %v3804_v21 = vld [vmem:[%s5529_s0 + $0x14] ss:$112 sps:$4 sm:$0xff]   ;;  %v3787_v22 = vld [vmem:[%s5529_s0 + $0x18] ss:$112 sps:$4 sm:$0xff]  }
   0x9   :  { %206 = vmatprep.mubr.bf16.mxu0 %v3798_v16  ;;  %v3792_v23 = vld [vmem:[%s5529_s0 + $0x2c] ss:$112 sps:$4 sm:$0xff]   ;;  %v3802_v24 = vld [vmem:[%s5529_s0 + $0x10] ss:$112 sps:$4 sm:$0xff]   ;;  %v3810_v25 = vld [vmem:[%s5529_s0 + $0x24] ss:$112 sps:$4 sm:$0xff]  }
   0xa   :  { %v3790_v26 = vld [vmem:[%s5529_s0 + $0x28] ss:$112 sps:$4 sm:$0xff]   ;;  %v3795_v27 = vld [vmem:[%s5529_s0 + $0x3c] ss:$112 sps:$4 sm:$0xff]   ;;  %v3808_v28 = vld [vmem:[%s5529_s0 + $0x20] ss:$112 sps:$4 sm:$0xff]  }
   0xb   :  { %3441 = vmatpush3.bf16.msra.mxu1 %v4272_v5  ;;  %3419 = vmatpush3.bf16.msra.mxu0 %v4272_v5  ;;  %v3816_v29 = vld [vmem:[%s5529_s0 + $0x34] ss:$112 sps:$4 sm:$0xff]   ;;  %v3793_v30 = vld [vmem:[%s5529_s0 + $0x38] ss:$112 sps:$4 sm:$0xff]   ;;  %v3801_v31 = vld [vmem:[%s5529_s0 + $0x4c] ss:$112 sps:$4 sm:$0xff]  }
   0xc   :  { %3442 = vmatprep.subr.bf16.mxu1 %v4279_v6  ;;  %3420 = vmatprep.subr.bf16.mxu0 %v4279_v6  ;;  %v3814_v32 = vld [vmem:[%s5529_s0 + $0x30] ss:$112 sps:$4 sm:$0xff]   ;;  %v3819_v33 = vld [vmem:[%s5529_s0 + $0x44] ss:$112 sps:$4 sm:$0xff]   ;;  %v3799_v34 = vld [vmem:[%s5529_s0 + $0x48] ss:$112 sps:$4 sm:$0xff]  }
   0xd   :  { %v3807_v35 = vld [vmem:[%s5529_s0 + $0x5c] ss:$112 sps:$4 sm:$0xff]   ;;  %v3817_v36 = vld [vmem:[%s5529_s0 + $0x40] ss:$112 sps:$4 sm:$0xff]   ;;  %v3822_v37 = vld [vmem:[%s5529_s0 + $0x54] ss:$112 sps:$4 sm:$0xff]  }
   0xe   :  { %v3805_v38 = vld [vmem:[%s5529_s0 + $0x58] ss:$112 sps:$4 sm:$0xff]   ;;  %v3813_v39 = vld [vmem:[%s5529_s0 + $0x6c] ss:$112 sps:$4 sm:$0xff]   ;;  %v3820_v40 = vld [vmem:[%s5529_s0 + $0x50] ss:$112 sps:$4 sm:$0xff]  }
   0xf   :  { %3443 = vmatpush3.bf16.msra.mxu1 %v4286_v7  ;;  %3421 = vmatpush3.bf16.msra.mxu0 %v4286_v7  ;;  %v3825_v41 = vld [vmem:[%s5529_s0 + $0x64] ss:$112 sps:$4 sm:$0xff]   ;;  %v3811_v42 = vld [vmem:[%s5529_s0 + $0x68] ss:$112 sps:$4 sm:$0xff]   ;;  %v3823_v43 = vld [vmem:[%s5529_s0 + $0x60] ss:$112 sps:$4 sm:$0xff]  }
  0x10   :  { %3444 = vmatprep.subr.bf16.mxu1 %v4293_v8  ;;  %3422 = vmatprep.subr.bf16.mxu0 %v4293_v8  ;;  %v4630_v50 = vld [vmem:[%s5530_s2] ss:$0 sm:$0xff]  ;;  %s4195_s0 = smov 64  }
  0x13   :  { %3445 = vmatpush3.bf16.msra.mxu1 %v4300_v9  ;;  %3423 = vmatpush3.bf16.msra.mxu0 %v4300_v9 }
  0x14   :  { %3446 = vmatprep.subr.bf16.mxu1 %v4307_v10  ;;  %3424 = vmatprep.subr.bf16.mxu0 %v4307_v10 }
  0x17   :  { %3447 = vmatpush3.bf16.msra.mxu1 %v4317_v12  ;;  %3425 = vmatpush3.bf16.msra.mxu0 %v4317_v12 }
  0x18   :  { %3448 = vmatprep.subr.bf16.mxu1 %v4323_v13  ;;  %3426 = vmatprep.subr.bf16.mxu0 %v4323_v13 }
  0x1b   :  { %3449 = vmatpush3.bf16.msra.mxu1 %v4329_v14  ;;  %3427 = vmatpush3.bf16.msra.mxu0 %v4329_v14 }
  0x1c   :  { %3450 = vmatprep.subr.bf16.mxu1 %v4335_v15  ;;  %3428 = vmatprep.subr.bf16.mxu0 %v4335_v15 }
  0x1f   :  { %3451 = vmatpush3.bf16.msra.mxu1 %v4346_v17  ;;  %3429 = vmatpush3.bf16.msra.mxu0 %v4346_v17 }
  0x20   :  { %3480 = vmatprep.subr.bf16.mxu1 %v4240_v0  ;;  %3458 = vmatprep.subr.bf16.mxu0 %v4240_v0 }
  0x22   :  { %265 = vmatmul.mubr.bf16.vlgmr.msra.gmra.mxu1 %v3784_v18  ;;  %207 = vmatmul.mubr.bf16.vlgmr.msra.gmra.mxu0 %v3796_v20  ;;  %v3831_v18 = vld [vmem:[%s5531_s3 + $0xe4] ss:$16 sps:$4 sm:$0xff]  }
  0x23   :  { %3481 = vmatpush3.bf16.msra.mxu1 %v4245_v1  ;;  %387 = vmatprep.mubr.bf16.mxu1 %v3789_v19  ;;  %v3832_v19 = vld [vmem:[%s5531_s3 + $0x2c0] ss:$16 sps:$4 sm:$0xff]   ;;  %v3834_v20 = vld [vmem:[%s5531_s3 + $0x2c4] ss:$16 sps:$4 sm:$0xff]  }
  0x24   :  { %3482 = vmatprep.subr.bf16.mxu1 %v4251_v2  ;;  %3459 = vmatpush3.bf16.msra.mxu0 %v4245_v1 }
  0x25   :  { %3460 = vmatprep.subr.bf16.mxu0 %v4251_v2  ;;  %330 = vmatprep.mubr.bf16.mxu0 %v3804_v21 }
  0x27   :  { %3483 = vmatpush3.bf16.msra.mxu1 %v4258_v3 }
  0x28   :  { %3484 = vmatprep.subr.bf16.mxu1 %v4265_v4  ;;  %3461 = vmatpush3.bf16.msra.mxu0 %v4258_v3 }
  0x29   :  { %3462 = vmatprep.subr.bf16.mxu0 %v4265_v4 }
  0x2b   :  { %3485 = vmatpush3.bf16.msra.mxu1 %v4272_v5 }
  0x2c   :  { %3486 = vmatprep.subr.bf16.mxu1 %v4279_v6  ;;  %3463 = vmatpush3.bf16.msra.mxu0 %v4272_v5 }
  0x2d   :  { %3464 = vmatprep.subr.bf16.mxu0 %v4279_v6 }
  0x2f   :  { %3487 = vmatpush3.bf16.msra.mxu1 %v4286_v7 }
  0x30   :  { %3488 = vmatprep.subr.bf16.mxu1 %v4293_v8  ;;  %3465 = vmatpush3.bf16.msra.mxu0 %v4286_v7 }
  0x31   :  { %3466 = vmatprep.subr.bf16.mxu0 %v4293_v8 }
  0x33   :  { %3489 = vmatpush3.bf16.msra.mxu1 %v4300_v9 }
  0x34   :  { %3490 = vmatprep.subr.bf16.mxu1 %v4307_v10  ;;  %3467 = vmatpush3.bf16.msra.mxu0 %v4300_v9 }
  0x35   :  { %3468 = vmatprep.subr.bf16.mxu0 %v4307_v10 }
  0x37   :  { %3491 = vmatpush3.bf16.msra.mxu1 %v4317_v12 }
  0x38   :  { %3492 = vmatprep.subr.bf16.mxu1 %v4323_v13  ;;  %3469 = vmatpush3.bf16.msra.mxu0 %v4317_v12 }
  0x39   :  { %3470 = vmatprep.subr.bf16.mxu0 %v4323_v13 }
  0x3b   :  { %3493 = vmatpush3.bf16.msra.mxu1 %v4329_v14 }
  0x3c   :  { %3494 = vmatprep.subr.bf16.mxu1 %v4335_v15  ;;  %3471 = vmatpush3.bf16.msra.mxu0 %v4329_v14 }
  0x3d   :  { %3472 = vmatprep.subr.bf16.mxu0 %v4335_v15 }
  0x3f   :  { %3495 = vmatpush3.bf16.msra.mxu1 %v4346_v17 }
  0x40   :  { %3524 = vmatprep.subr.bf16.mxu1 %v4240_v0  ;;  %3473 = vmatpush3.bf16.msra.mxu0 %v4346_v17 }
  0x41   :  { %3502 = vmatprep.subr.bf16.mxu0 %v4240_v0 }
  0x42   :  { %388 = vmatmul.mubr.bf16.vlgmr.msra.gmra.mxu1 %v3787_v22  ;;  %v3835_v22 = vld [vmem:[%s5531_s3 + $0xc0] ss:$16 sps:$4 sm:$0xff]  }
  0x43   :  { %3525 = vmatpush3.bf16.msra.mxu1 %v4245_v1  ;;  %509 = vmatprep.mubr.bf16.mxu1 %v3792_v23  ;;  %v3837_v23 = vld [vmem:[%s5531_s3 + $0xc4] ss:$16 sps:$4 sm:$0xff]  }
  0x44   :  { %3526 = vmatprep.subr.bf16.mxu1 %v4251_v2  ;;  %331 = vmatmul.mubr.bf16.vlgmr.msra.gmra.mxu0 %v3802_v24  ;;  %v3840_v24 = vld [vmem:[%s5531_s3 + $0x2a4] ss:$16 sps:$4 sm:$0xff]  }
  0x45   :  { %3503 = vmatpush3.bf16.msra.mxu0 %v4245_v1  ;;  %452 = vmatprep.mubr.bf16.mxu0 %v3810_v25  ;;  %v3838_v25 = vld [vmem:[%s5531_s3 + $0x2a0] ss:$16 sps:$4 sm:$0xff]  }
  0x46   :  { %3504 = vmatprep.subr.bf16.mxu0 %v4251_v2 }
  0x47   :  { %3527 = vmatpush3.bf16.msra.mxu1 %v4258_v3 }
  0x48   :  { %3528 = vmatprep.subr.bf16.mxu1 %v4265_v4 }
  0x49   :  { %3505 = vmatpush3.bf16.msra.mxu0 %v4258_v3 }
  0x4a   :  { %3506 = vmatprep.subr.bf16.mxu0 %v4265_v4 }
  0x4b   :  { %3529 = vmatpush3.bf16.msra.mxu1 %v4272_v5 }
  0x4c   :  { %3530 = vmatprep.subr.bf16.mxu1 %v4279_v6 }
  0x4d   :  { %3507 = vmatpush3.bf16.msra.mxu0 %v4272_v5 }
  0x4e   :  { %3508 = vmatprep.subr.bf16.mxu0 %v4279_v6 }
  0x4f   :  { %3531 = vmatpush3.bf16.msra.mxu1 %v4286_v7 }
  0x50   :  { %3532 = vmatprep.subr.bf16.mxu1 %v4293_v8 }
  0x51   :  { %3509 = vmatpush3.bf16.msra.mxu0 %v4286_v7 }
  0x52   :  { %3510 = vmatprep.subr.bf16.mxu0 %v4293_v8 }
  0x53   :  { %3533 = vmatpush3.bf16.msra.mxu1 %v4300_v9 }
  0x54   :  { %3534 = vmatprep.subr.bf16.mxu1 %v4307_v10 }
  0x55   :  { %3511 = vmatpush3.bf16.msra.mxu0 %v4300_v9 }
  0x56   :  { %3512 = vmatprep.subr.bf16.mxu0 %v4307_v10 }
  0x57   :  { %3535 = vmatpush3.bf16.msra.mxu1 %v4317_v12 }
  0x58   :  { %3536 = vmatprep.subr.bf16.mxu1 %v4323_v13 }
  0x59   :  { %3513 = vmatpush3.bf16.msra.mxu0 %v4317_v12 }
  0x5a   :  { %3514 = vmatprep.subr.bf16.mxu0 %v4323_v13 }
  0x5b   :  { %3537 = vmatpush3.bf16.msra.mxu1 %v4329_v14 }
  0x5c   :  { %3538 = vmatprep.subr.bf16.mxu1 %v4335_v15 }
  0x5d   :  { %3515 = vmatpush3.bf16.msra.mxu0 %v4329_v14 }
  0x5e   :  { %3516 = vmatprep.subr.bf16.mxu0 %v4335_v15 }
  0x5f   :  { %3539 = vmatpush3.bf16.msra.mxu1 %v4346_v17 }
  0x60   :  { %3568 = vmatprep.subr.bf16.mxu1 %v4240_v0 }
  0x61   :  { %3517 = vmatpush3.bf16.msra.mxu0 %v4346_v17 }
  0x62   :  { %510 = vmatmul.mubr.bf16.vlgmr.msra.gmra.mxu1 %v3790_v26  ;;  %3546 = vmatprep.subr.bf16.mxu0 %v4240_v0  ;;  %v3843_v26 = vld [vmem:[%s5531_s3 + $0xa4] ss:$16 sps:$4 sm:$0xff]  }
  0x63   :  { %3569 = vmatpush3.bf16.msra.mxu1 %v4245_v1  ;;  %631 = vmatprep.mubr.bf16.mxu1 %v3795_v27  ;;  %v3841_v27 = vld [vmem:[%s5531_s3 + $0xa0] ss:$16 sps:$4 sm:$0xff]  }
  0x64   :  { %3570 = vmatprep.subr.bf16.mxu1 %v4251_v2  ;;  %453 = vmatmul.mubr.bf16.vlgmr.msra.gmra.mxu0 %v3808_v28  ;;  %v3846_v28 = vld [vmem:[%s5531_s3 + $0x284] ss:$16 sps:$4 sm:$0xff]  }
  0x65   :  { %3547 = vmatpush3.bf16.msra.mxu0 %v4245_v1  ;;  %574 = vmatprep.mubr.bf16.mxu0 %v3816_v29  ;;  %v3844_v29 = vld [vmem:[%s5531_s3 + $0x280] ss:$16 sps:$4 sm:$0xff]  }
  0x66   :  { %3548 = vmatprep.subr.bf16.mxu0 %v4251_v2 }
  0x67   :  { %3571 = vmatpush3.bf16.msra.mxu1 %v4258_v3 }
  0x68   :  { %3572 = vmatprep.subr.bf16.mxu1 %v4265_v4 }
  0x69   :  { %3549 = vmatpush3.bf16.msra.mxu0 %v4258_v3 }
  0x6a   :  { %3550 = vmatprep.subr.bf16.mxu0 %v4265_v4 }
  0x6b   :  { %3573 = vmatpush3.bf16.msra.mxu1 %v4272_v5 }
  0x6c   :  { %3574 = vmatprep.subr.bf16.mxu1 %v4279_v6 }
  0x6d   :  { %3551 = vmatpush3.bf16.msra.mxu0 %v4272_v5 }
  0x6e   :  { %3552 = vmatprep.subr.bf16.mxu0 %v4279_v6 }
  0x6f   :  { %3575 = vmatpush3.bf16.msra.mxu1 %v4286_v7 }
  0x70   :  { %3576 = vmatprep.subr.bf16.mxu1 %v4293_v8 }
  0x71   :  { %3553 = vmatpush3.bf16.msra.mxu0 %v4286_v7 }
  0x72   :  { %3554 = vmatprep.subr.bf16.mxu0 %v4293_v8 }
  0x73   :  { %3577 = vmatpush3.bf16.msra.mxu1 %v4300_v9 }
  0x74   :  { %3578 = vmatprep.subr.bf16.mxu1 %v4307_v10 }
  0x75   :  { %3555 = vmatpush3.bf16.msra.mxu0 %v4300_v9 }
  0x76   :  { %3556 = vmatprep.subr.bf16.mxu0 %v4307_v10 }
  0x77   :  { %3579 = vmatpush3.bf16.msra.mxu1 %v4317_v12 }
  0x78   :  { %3580 = vmatprep.subr.bf16.mxu1 %v4323_v13 }
  0x79   :  { %3557 = vmatpush3.bf16.msra.mxu0 %v4317_v12 }
  0x7a   :  { %3558 = vmatprep.subr.bf16.mxu0 %v4323_v13 }
  0x7b   :  { %3581 = vmatpush3.bf16.msra.mxu1 %v4329_v14 }
  0x7c   :  { %3582 = vmatprep.subr.bf16.mxu1 %v4335_v15 }
  0x7d   :  { %3559 = vmatpush3.bf16.msra.mxu0 %v4329_v14 }
  0x7e   :  { %3560 = vmatprep.subr.bf16.mxu0 %v4335_v15 }
  0x7f   :  { %3583 = vmatpush3.bf16.msra.mxu1 %v4346_v17 }
  0x80   :  { %3612 = vmatprep.subr.bf16.mxu1 %v4240_v0 }
  0x81   :  { %3561 = vmatpush3.bf16.msra.mxu0 %v4346_v17 }
  0x82   :  { %632 = vmatmul.mubr.bf16.vlgmr.msra.gmra.mxu1 %v3793_v30  ;;  %3590 = vmatprep.subr.bf16.mxu0 %v4240_v0  ;;  %v3849_v30 = vld [vmem:[%s5531_s3 + $0x84] ss:$16 sps:$4 sm:$0xff]  }
  0x83   :  { %3613 = vmatpush3.bf16.msra.mxu1 %v4245_v1  ;;  %753 = vmatprep.mubr.bf16.mxu1 %v3801_v31  ;;  %v3847_v31 = vld [vmem:[%s5531_s3 + $0x80] ss:$16 sps:$4 sm:$0xff]  }
  0x84   :  { %3614 = vmatprep.subr.bf16.mxu1 %v4251_v2  ;;  %575 = vmatmul.mubr.bf16.vlgmr.msra.gmra.mxu0 %v3814_v32  ;;  %v3852_v32 = vld [vmem:[%s5531_s3 + $0x264] ss:$16 sps:$4 sm:$0xff]  }
  0x85   :  { %3591 = vmatpush3.bf16.msra.mxu0 %v4245_v1  ;;  %696 = vmatprep.mubr.bf16.mxu0 %v3819_v33  ;;  %v3850_v33 = vld [vmem:[%s5531_s3 + $0x260] ss:$16 sps:$4 sm:$0xff]  }
  0x86   :  { %3592 = vmatprep.subr.bf16.mxu0 %v4251_v2 }
  0x87   :  { %3615 = vmatpush3.bf16.msra.mxu1 %v4258_v3 }
  0x88   :  { %3616 = vmatprep.subr.bf16.mxu1 %v4265_v4 }
  0x89   :  { %3593 = vmatpush3.bf16.msra.mxu0 %v4258_v3 }
  0x8a   :  { %3594 = vmatprep.subr.bf16.mxu0 %v4265_v4 }
  0x8b   :  { %3617 = vmatpush3.bf16.msra.mxu1 %v4272_v5 }
  0x8c   :  { %3618 = vmatprep.subr.bf16.mxu1 %v4279_v6 }
  0x8d   :  { %3595 = vmatpush3.bf16.msra.mxu0 %v4272_v5 }
  0x8e   :  { %3596 = vmatprep.subr.bf16.mxu0 %v4279_v6 }
  0x8f   :  { %3619 = vmatpush3.bf16.msra.mxu1 %v4286_v7 }
  0x90   :  { %3620 = vmatprep.subr.bf16.mxu1 %v4293_v8 }
  0x91   :  { %3597 = vmatpush3.bf16.msra.mxu0 %v4286_v7 }
  0x92   :  { %3598 = vmatprep.subr.bf16.mxu0 %v4293_v8 }
  0x93   :  { %3621 = vmatpush3.bf16.msra.mxu1 %v4300_v9 }
  0x94   :  { %3622 = vmatprep.subr.bf16.mxu1 %v4307_v10 }
  0x95   :  { %3599 = vmatpush3.bf16.msra.mxu0 %v4300_v9 }
  0x96   :  { %3600 = vmatprep.subr.bf16.mxu0 %v4307_v10 }
  0x97   :  { %3623 = vmatpush3.bf16.msra.mxu1 %v4317_v12 }
  0x98   :  { %3624 = vmatprep.subr.bf16.mxu1 %v4323_v13 }
  0x99   :  { %3601 = vmatpush3.bf16.msra.mxu0 %v4317_v12 }
  0x9a   :  { %3602 = vmatprep.subr.bf16.mxu0 %v4323_v13 }
  0x9b   :  { %3625 = vmatpush3.bf16.msra.mxu1 %v4329_v14 }
  0x9c   :  { %3626 = vmatprep.subr.bf16.mxu1 %v4335_v15 }
  0x9d   :  { %3603 = vmatpush3.bf16.msra.mxu0 %v4329_v14 }
  0x9e   :  { %3604 = vmatprep.subr.bf16.mxu0 %v4335_v15 }
  0x9f   :  { %3627 = vmatpush3.bf16.msra.mxu1 %v4346_v17 }
  0xa0   :  { %3656 = vmatprep.subr.bf16.mxu1 %v4240_v0 }
  0xa1   :  { %3605 = vmatpush3.bf16.msra.mxu0 %v4346_v17 }
  0xa2   :  { %754 = vmatmul.mubr.bf16.vlgmr.msra.gmra.mxu1 %v3799_v34  ;;  %3634 = vmatprep.subr.bf16.mxu0 %v4240_v0  ;;  %v3853_v34 = vld [vmem:[%s5531_s3 + $0x60] ss:$16 sps:$4 sm:$0xff]  }
  0xa3   :  { %3657 = vmatpush3.bf16.msra.mxu1 %v4245_v1  ;;  %875 = vmatprep.mubr.bf16.mxu1 %v3807_v35  ;;  %v3855_v35 = vld [vmem:[%s5531_s3 + $0x64] ss:$16 sps:$4 sm:$0xff]  }
  0xa4   :  { %3658 = vmatprep.subr.bf16.mxu1 %v4251_v2  ;;  %697 = vmatmul.mubr.bf16.vlgmr.msra.gmra.mxu0 %v3817_v36  ;;  %v3856_v36 = vld [vmem:[%s5531_s3 + $0x240] ss:$16 sps:$4 sm:$0xff]  }
  0xa5   :  { %3635 = vmatpush3.bf16.msra.mxu0 %v4245_v1  ;;  %818 = vmatprep.mubr.bf16.mxu0 %v3822_v37  ;;  %v3858_v37 = vld [vmem:[%s5531_s3 + $0x244] ss:$16 sps:$4 sm:$0xff]  }
  0xa6   :  { %3636 = vmatprep.subr.bf16.mxu0 %v4251_v2 }
  0xa7   :  { %3659 = vmatpush3.bf16.msra.mxu1 %v4258_v3 }
  0xa8   :  { %3660 = vmatprep.subr.bf16.mxu1 %v4265_v4 }
  0xa9   :  { %3637 = vmatpush3.bf16.msra.mxu0 %v4258_v3 }
  0xaa   :  { %3638 = vmatprep.subr.bf16.mxu0 %v4265_v4 }
  0xab   :  { %3661 = vmatpush3.bf16.msra.mxu1 %v4272_v5 }
  0xac   :  { %3662 = vmatprep.subr.bf16.mxu1 %v4279_v6 }
  0xad   :  { %3639 = vmatpush3.bf16.msra.mxu0 %v4272_v5 }
  0xae   :  { %3640 = vmatprep.subr.bf16.mxu0 %v4279_v6 }
  0xaf   :  { %3663 = vmatpush3.bf16.msra.mxu1 %v4286_v7 }
  0xb0   :  { %3664 = vmatprep.subr.bf16.mxu1 %v4293_v8 }
  0xb1   :  { %3641 = vmatpush3.bf16.msra.mxu0 %v4286_v7 }
  0xb2   :  { %3642 = vmatprep.subr.bf16.mxu0 %v4293_v8 }
  0xb3   :  { %3665 = vmatpush3.bf16.msra.mxu1 %v4300_v9 }
  0xb4   :  { %3666 = vmatprep.subr.bf16.mxu1 %v4307_v10 }
  0xb5   :  { %3643 = vmatpush3.bf16.msra.mxu0 %v4300_v9 }
  0xb6   :  { %3644 = vmatprep.subr.bf16.mxu0 %v4307_v10 }
  0xb7   :  { %3667 = vmatpush3.bf16.msra.mxu1 %v4317_v12 }
  0xb8   :  { %3668 = vmatprep.subr.bf16.mxu1 %v4323_v13 }
  0xb9   :  { %3645 = vmatpush3.bf16.msra.mxu0 %v4317_v12 }
  0xba   :  { %3646 = vmatprep.subr.bf16.mxu0 %v4323_v13 }
  0xbb   :  { %3669 = vmatpush3.bf16.msra.mxu1 %v4329_v14 }
  0xbc   :  { %3670 = vmatprep.subr.bf16.mxu1 %v4335_v15 }
  0xbd   :  { %3647 = vmatpush3.bf16.msra.mxu0 %v4329_v14 }
  0xbe   :  { %3648 = vmatprep.subr.bf16.mxu0 %v4335_v15 }
  0xbf   :  { %3671 = vmatpush3.bf16.msra.mxu1 %v4346_v17 }
  0xc0   :  { %3700 = vmatprep.subr.bf16.mxu1 %v4240_v0 }
  0xc1   :  { %3649 = vmatpush3.bf16.msra.mxu0 %v4346_v17 }
  0xc2   :  { %876 = vmatmul.mubr.bf16.vlgmr.msra.gmra.mxu1 %v3805_v38  ;;  %3678 = vmatprep.subr.bf16.mxu0 %v4240_v0 }
  0xc3   :  { %3701 = vmatpush3.bf16.msra.mxu1 %v4245_v1  ;;  %997 = vmatprep.mubr.bf16.mxu1 %v3813_v39  ;;  %v3861_v39 = vld [vmem:[%s5531_s3 + $0x44] ss:$16 sps:$4 sm:$0xff]  }
  0xc4   :  { %3702 = vmatprep.subr.bf16.mxu1 %v4251_v2  ;;  %819 = vmatmul.mubr.bf16.vlgmr.msra.gmra.mxu0 %v3820_v40  ;;  %v3859_v40 = vld [vmem:[%s5531_s3 + $0x40] ss:$16 sps:$4 sm:$0xff]  }
  0xc5   :  { %3679 = vmatpush3.bf16.msra.mxu0 %v4245_v1  ;;  %940 = vmatprep.mubr.bf16.mxu0 %v3825_v41  ;;  %v3864_v41 = vld [vmem:[%s5531_s3 + $0x224] ss:$16 sps:$4 sm:$0xff]  }
  0xc6   :  { %3680 = vmatprep.subr.bf16.mxu0 %v4251_v2 }
  0xc7   :  { %3703 = vmatpush3.bf16.msra.mxu1 %v4258_v3 }
  0xc8   :  { %3704 = vmatprep.subr.bf16.mxu1 %v4265_v4 }
  0xc9   :  { %3681 = vmatpush3.bf16.msra.mxu0 %v4258_v3 }
  0xca   :  { %3682 = vmatprep.subr.bf16.mxu0 %v4265_v4 }
  0xcb   :  { %3705 = vmatpush3.bf16.msra.mxu1 %v4272_v5 }
  0xcc   :  { %3706 = vmatprep.subr.bf16.mxu1 %v4279_v6 }
  0xcd   :  { %3683 = vmatpush3.bf16.msra.mxu0 %v4272_v5 }
  0xce   :  { %3684 = vmatprep.subr.bf16.mxu0 %v4279_v6 }
  0xcf   :  { %3707 = vmatpush3.bf16.msra.mxu1 %v4286_v7 }
  0xd0   :  { %3708 = vmatprep.subr.bf16.mxu1 %v4293_v8 }
  0xd1   :  { %3685 = vmatpush3.bf16.msra.mxu0 %v4286_v7 }
  0xd2   :  { %3686 = vmatprep.subr.bf16.mxu0 %v4293_v8 }
  0xd3   :  { %3709 = vmatpush3.bf16.msra.mxu1 %v4300_v9 }
  0xd4   :  { %3710 = vmatprep.subr.bf16.mxu1 %v4307_v10 }
  0xd5   :  { %3687 = vmatpush3.bf16.msra.mxu0 %v4300_v9 }
  0xd6   :  { %3688 = vmatprep.subr.bf16.mxu0 %v4307_v10 }
  0xd7   :  { %3711 = vmatpush3.bf16.msra.mxu1 %v4317_v12 }
  0xd8   :  { %3712 = vmatprep.subr.bf16.mxu1 %v4323_v13 }
  0xd9   :  { %3689 = vmatpush3.bf16.msra.mxu0 %v4317_v12 }
  0xda   :  { %3690 = vmatprep.subr.bf16.mxu0 %v4323_v13  ;;  %v3828_v13 = vld [vmem:[%s5531_s3 + $0x2e4] ss:$16 sps:$4 sm:$0xff]  }
  0xdb   :  { %3713 = vmatpush3.bf16.msra.mxu1 %v4329_v14 }
  0xdc   :  { %3714 = vmatprep.subr.bf16.mxu1 %v4335_v15 }
  0xdd   :  { %3691 = vmatpush3.bf16.msra.mxu0 %v4329_v14  ;;  %v3826_v14 = vld [vmem:[%s5531_s3 + $0x2e0] ss:$16 sps:$4 sm:$0xff]  }
  0xde   :  { %3692 = vmatprep.subr.bf16.mxu0 %v4335_v15 }
  0xdf   :  { %3715 = vmatpush3.bf16.msra.mxu1 %v4346_v17 }
  0xe0   :  { %2448 = vmatprep.subr.bf16.mxu1 %v3828_v13  ;;  %v3882_v13 = vld [vmem:[%s5531_s3 + $0x3c4] ss:$16 sps:$4 sm:$0xff]  }
  0xe1   :  { %3693 = vmatpush3.bf16.msra.mxu0 %v4346_v17  ;;  %v3829_v17 = vld [vmem:[%s5531_s3 + $0xe0] ss:$16 sps:$4 sm:$0xff]  }
  0xe2   :  { %v3452_v44 = vpop.f32.mrf.mxu1  ;;  %998 = vmatmul.mubr.bf16.vlgmr.msra.gmra.mxu1 %v3811_v42  ;;  %v3430_v46 = vpop.f32.mrf.mxu0  ;;  %2405 = vmatprep.subr.bf16.mxu0 %v3831_v18  ;;  %v3888_v18 = vld [vmem:[%s5531_s3 + $0x3a4] ss:$16 sps:$4 sm:$0xff]  }
  0xe3   :  { %2449 = vmatpush1.bf16.msra.mxu1 %v3826_v14 }
  0xe4   :  { %v3453_v45 = vpop.f32.mrf.mxu1  ;;  %941 = vmatmul.mubr.bf16.vlgmr.msra.gmra.mxu0 %v3823_v43  ;;  %v3431_v48 = vpop.f32.mrf.mxu0  ;;  %2450 = vmatprep.subr.bf16.mxu1 %v3834_v20  ;;  %v3889_v20 = vld [vmem:[%s5531_s3 + $0x1a0] ss:$16 sps:$4 sm:$0xff]  }
  0xe5   :  { %v4625_v47 = vadd.f32 %v3453_v45, %v3452_v44  ;;  %v3432_v49 = vadd.f32 %v3431_v48, %v3430_v46  ;;  %2406 = vmatpush1.bf16.msra.mxu0 %v3829_v17  ;;  %v3862_v44 = vld [vmem:[%s5531_s3 + $0x220] ss:$16 sps:$4 sm:$0xff]  }
  0xe6   :  { %v3433_v51 = vpop.f32.mrf.mxu0  ;;  %v4636_v58 = vpop.f32.mrf.mxu1  ;;  %2407 = vmatprep.subr.bf16.mxu0 %v3837_v23  ;;  %v3886_v17 = vld [vmem:[%s5531_s3 + $0x3a0] ss:$16 sps:$4 sm:$0xff]  }
  0xe7   :  { %v209_v52 = vadd.f32 %v3432_v49, %v4630_v50  ;;  %2451 = vmatpush1.bf16.msra.mxu1 %v3832_v19  ;;  %v3867_v49 = vld [vmem:[%s5531_s3 + $0x24] ss:$16 sps:$4 sm:$0xff]   ;;  %v3895_v23 = vld [vmem:[%s5531_s3 + $0x180] ss:$16 sps:$4 sm:$0xff]  }
  0xe8   :  { %v3434_v53 = vpop.f32.mrf.mxu0  ;;  %v4638_v59 = vpop.f32.mrf.mxu1  ;;  %2452 = vmatprep.subr.bf16.mxu1 %v3840_v24  ;;  %v3891_v19 = vld [vmem:[%s5531_s3 + $0x1a4] ss:$16 sps:$4 sm:$0xff]  }
  0xe9   :  { %v215_v54 = vmax.f32 %v209_v52, 0.0  ;;  %v3435_v55 = vadd.f32 %v3434_v53, %v3433_v51  ;;  %2408 = vmatpush1.bf16.msra.mxu0 %v3835_v22  ;;  %v3865_v53 = vld [vmem:[%s5531_s3 + $0x20] ss:$16 sps:$4 sm:$0xff]   ;;  %v3894_v22 = vld [vmem:[%s5531_s3 + $0x384] ss:$16 sps:$4 sm:$0xff]  }
  0xea   :  { %2409 = vmatprep.subr.bf16.mxu0 %v3843_v26  ;;  %v3897_v24 = vld [vmem:[%s5531_s3 + $0x184] ss:$16 sps:$4 sm:$0xff]  }
  0xeb   :  { %v212_v56 = vadd.f32 %v3435_v55, %v4630_v50  ;;  %218 = vst.msk [vmem:[#allocation2] sm:$0xff] %vm217_vm0, %v215_v54  ;;  %2453 = vmatpush1.bf16.msra.mxu1 %v3838_v25  ;;  %v3870_v54 = vld [vmem:[%s5531_s3 + $0x204] ss:$16 sps:$4 sm:$0xff]   ;;  %v3898_v25 = vld [vmem:[%s5531_s3 + $0x360] ss:$16 sps:$4 sm:$0xff]  }
  0xec   :  { %2454 = vmatprep.subr.bf16.mxu1 %v3846_v28  ;;  %v3900_v26 = vld [vmem:[%s5531_s3 + $0x364] ss:$16 sps:$4 sm:$0xff]  }
  0xed   :  { %v216_v57 = vmax.f32 %v212_v56, 0.0  ;;  %2410 = vmatpush1.bf16.msra.mxu0 %v3841_v27  ;;  %v3901_v27 = vld [vmem:[%s5531_s3 + $0x160] ss:$16 sps:$4 sm:$0xff]   ;;  %v3903_v28 = vld [vmem:[%s5531_s3 + $0x164] ss:$16 sps:$4 sm:$0xff]  }
  0xee   :  { %2411 = vmatprep.subr.bf16.mxu0 %v3849_v30  ;;  %v3906_v30 = vld [vmem:[%s5531_s3 + $0x344] ss:$16 sps:$4 sm:$0xff]  }
  0xef   :  { %219 = vst.msk [vmem:[#allocation2 + $0x38] sm:$0xff] %vm217_vm0, %v216_v57  ;;  %2455 = vmatpush1.bf16.msra.mxu1 %v3844_v29  ;;  %v3868_v57 = vld [vmem:[%s5531_s3 + $0x200] ss:$16 sps:$4 sm:$0xff]  }
  0xf0   :  { %2456 = vmatprep.subr.bf16.mxu1 %v3852_v32  ;;  %v3904_v29 = vld [vmem:[%s5531_s3 + $0x340] ss:$16 sps:$4 sm:$0xff]  }
  0xf1   :  { %2412 = vmatpush1.bf16.msra.mxu0 %v3847_v31  ;;  %v3907_v32 = vld [vmem:[%s5531_s3 + $0x140] ss:$16 sps:$4 sm:$0xff]  }
  0xf2   :  { %2413 = vmatprep.subr.bf16.mxu0 %v3855_v35  ;;  %v3912_v35 = vld [vmem:[%s5531_s3 + $0x324] ss:$16 sps:$4 sm:$0xff]  }
  0xf3   :  { %2457 = vmatpush1.bf16.msra.mxu1 %v3850_v33  ;;  %v3909_v33 = vld [vmem:[%s5531_s3 + $0x144] ss:$16 sps:$4 sm:$0xff]  }
  0xf4   :  { %2458 = vmatprep.subr.bf16.mxu1 %v3858_v37 }
  0xf5   :  { %2414 = vmatpush1.bf16.msra.mxu0 %v3853_v34  ;;  %v3910_v34 = vld [vmem:[%s5531_s3 + $0x320] ss:$16 sps:$4 sm:$0xff]  }
  0xf6   :  { %2415 = vmatprep.subr.bf16.mxu0 %v3861_v39 }
  0xf7   :  { %2459 = vmatpush1.bf16.msra.mxu1 %v3856_v36 }
  0xf8   :  { %2460 = vmatprep.subr.bf16.mxu1 %v3864_v41  ;;  %v3913_v41 = vld [vmem:[%s5531_s3 + $0x120] ss:$16 sps:$4 sm:$0xff]  }
  0xf9   :  { %2416 = vmatpush1.bf16.msra.mxu0 %v3859_v40 }
  0xfa   :  { %2417 = vmatprep.subr.bf16.mxu0 %v3867_v49  ;;  %v3921_v49 = vld [vmem:[%s5531_s3 + $0x104] ss:$16 sps:$4 sm:$0xff]  }
  0xfb   :  { %2461 = vmatpush1.bf16.msra.mxu1 %v3862_v44 }
  0xfc   :  { %2462 = vmatprep.subr.bf16.mxu1 %v3870_v54 }
  0xfd   :  { %2418 = vmatpush1.bf16.msra.mxu0 %v3865_v53 }
  0xff   :  { %2463 = vmatpush1.bf16.msra.mxu1 %v3868_v57 }
 0x102   :  { %v3496_v60 = vpop.f32.mrf.mxu1 }
 0x104   :  { %v3497_v61 = vpop.f32.mrf.mxu1  ;;  %v3474_v62 = vpop.f32.mrf.mxu0 }
 0x105   :  { %v3498_v63 = vadd.f32 %v3497_v61, %v3496_v60  ;;  %v3457_v60 = vadd.f32 %v4638_v59, %v4636_v58  ;;  %v3871_v58 = vld [vmem:[%s5531_s3] ss:$16 sps:$4 sm:$0xff]   ;;  %v3876_v59 = vld [vmem:[%s5531_s3 + $0x3e4] ss:$16 sps:$4 sm:$0xff]  }
 0x106   :  { %v3499_v0 = vpop.f32.mrf.mxu1  ;;  %v3475_v1 = vpop.f32.mrf.mxu0  ;;  %2464 = vmatprep.subr.bf16.mxu1 %v3876_v59 }
 0x107   :  { %v390_v2 = vadd.f32 %v3498_v63, %v4630_v50  ;;  %v3476_v3 = vadd.f32 %v3475_v1, %v3474_v62  ;;  %v3873_v1 = vld [vmem:[%s5531_s3 + $0x4] ss:$16 sps:$4 sm:$0xff]  }
 0x108   :  { %v3500_v4 = vpop.f32.mrf.mxu1  ;;  %v3477_v5 = vpop.f32.mrf.mxu0  ;;  %2419 = vmatprep.subr.bf16.mxu0 %v3873_v1 }
 0x109   :  { %v3501_v6 = vadd.f32 %v3500_v4, %v3499_v0  ;;  %v396_v7 = vmax.f32 %v390_v2, 0.0  ;;  %v333_v8 = vadd.f32 %v3476_v3, %v4630_v50  ;;  %2420 = vmatpush1.bf16.msra.mxu0 %v3871_v58  ;;  %v3945_v58 = vld [vmem:[%s5531_s3 + $0x6e4] ss:$16 sps:$4 sm:$0xff]  }
 0x10a   :  { %v3478_v9 = vpop.f32.mrf.mxu0 }
 0x10b   :  { %400 = vrot.lane.b32.xlu0 %v396_v7, %s4195_s0  ;;  %v393_v10 = vadd.f32 %v3501_v6, %v4630_v50  ;;  %v339_v11 = vmax.f32 %v333_v8, 0.0  ;;  %v3479_v12 = vadd.f32 %v3478_v9, %v3477_v5  ;;  %v3874_v5 = vld [vmem:[%s5531_s3 + $0x3e0] ss:$16 sps:$4 sm:$0xff]   ;;  %v270_v6 = vadd.f32 %v3457_v60, %v4630_v50  ;;  %v3879_v9 = vld [vmem:[%s5531_s3 + $0x1e4] ss:$16 sps:$4 sm:$0xff]  }
 0x10c   :  { %2465 = vmatpush2.bf16.msra.mxu1 %v3874_v5  ;;  %2421 = vmatprep.subr.bf16.mxu0 %v3879_v9 }
 0x10d   :  { %v397_v15 = vmax.f32 %v393_v10, 0.0  ;;  %v336_v16 = vadd.f32 %v3479_v12, %v4630_v50  ;;  %341 = vst.msk [vmem:[#allocation2 + $0x8] sm:$0xff] %vm217_vm0, %v339_v11  ;;  %v3877_v11 = vld [vmem:[%s5531_s3 + $0x1e0] ss:$16 sps:$4 sm:$0xff]   ;;  %v274_v14 = vmax.f32 %v270_v6, 0.0  ;;  %2466 = vmatprep.subr.bf16.mxu1 %v3882_v13 }
 0x10e   :  { %v3880_v12 = vld [vmem:[%s5531_s3 + $0x3c0] ss:$16 sps:$4 sm:$0xff]   ;;  %2422 = vmatpush2.bf16.msra.mxu0 %v3877_v11 }
 0x10f   :  { %402 = vrot.lane.b32.xlu1 %v397_v15, %s4195_s0  ;;  %v340_v21 = vmax.f32 %v336_v16, 0.0  ;;  %v3885_v15 = vld [vmem:[%s5531_s3 + $0x1c4] ss:$16 sps:$4 sm:$0xff]   ;;  %v3883_v16 = vld [vmem:[%s5531_s3 + $0x1c0] ss:$16 sps:$4 sm:$0xff]  }
 0x110   :  { %2467 = vmatpush2.bf16.msra.mxu1 %v3880_v12  ;;  %2423 = vmatprep.subr.bf16.mxu0 %v3885_v15 }
 0x111   :  { %342 = vst.msk [vmem:[#allocation2 + $0x40] sm:$0xff] %vm217_vm0, %v340_v21  ;;  %2468 = vmatprep.subr.bf16.mxu1 %v3888_v18  ;;  %v3892_v21 = vld [vmem:[%s5531_s3 + $0x380] ss:$16 sps:$4 sm:$0xff]  }
 0x112   :  { %2424 = vmatpush2.bf16.msra.mxu0 %v3883_v16 }
 0x113   :  { %2425 = vmatprep.subr.bf16.mxu0 %v3891_v19 }
 0x114   :  { %2469 = vmatpush2.bf16.msra.mxu1 %v3886_v17 }
 0x115   :  { %2470 = vmatprep.subr.bf16.mxu1 %v3894_v22 }
 0x116   :  { %2426 = vmatpush2.bf16.msra.mxu0 %v3889_v20 }
 0x117   :  { %2427 = vmatprep.subr.bf16.mxu0 %v3897_v24 }
 0x118   :  { %2471 = vmatpush2.bf16.msra.mxu1 %v3892_v21 }
 0x119   :  { %2472 = vmatprep.subr.bf16.mxu1 %v3900_v26 }
 0x11a   :  { %2428 = vmatpush2.bf16.msra.mxu0 %v3895_v23 }
 0x11b   :  { %2429 = vmatprep.subr.bf16.mxu0 %v3903_v28 }
 0x11c   :  { %2473 = vmatpush2.bf16.msra.mxu1 %v3898_v25 }
 0x11d   :  { %2474 = vmatprep.subr.bf16.mxu1 %v3906_v30 }
 0x11e   :  { %2430 = vmatpush2.bf16.msra.mxu0 %v3901_v27 }
 0x11f   :  { %2431 = vmatprep.subr.bf16.mxu0 %v3909_v33 }
 0x120   :  { %2475 = vmatpush2.bf16.msra.mxu1 %v3904_v29 }
 0x121   :  { %2476 = vmatprep.subr.bf16.mxu1 %v3912_v35 }
 0x122   :  { %v3540_v38 = vpop.f32.mrf.mxu1  ;;  %2432 = vmatpush2.bf16.msra.mxu0 %v3907_v32 }
 0x124   :  { %v3541_v42 = vpop.f32.mrf.mxu1  ;;  %v3518_v43 = vpop.f32.mrf.mxu0  ;;  %2477 = vmatpush2.bf16.msra.mxu1 %v3910_v34 }
 0x125   :  { %v3542_v45 = vadd.f32 %v3541_v42, %v3540_v38  ;;  %v3915_v42 = vld [vmem:[%s5531_s3 + $0x124] ss:$16 sps:$4 sm:$0xff]  }
 0x126   :  { %v3543_v46 = vpop.f32.mrf.mxu1  ;;  %v3519_v48 = vpop.f32.mrf.mxu0  ;;  %2433 = vmatprep.subr.bf16.mxu0 %v3915_v42 }
 0x127   :  { %v512_v51 = vadd.f32 %v3542_v45, %v4630_v50  ;;  %v3520_v52 = vadd.f32 %v3519_v48, %v3518_v43  ;;  %v3916_v43 = vld [vmem:[%s5531_s3 + $0x300] ss:$16 sps:$4 sm:$0xff]   ;;  %2434 = vmatpush2.bf16.msra.mxu0 %v3913_v41 }
 0x128   :  { %v3544_v55 = vpop.f32.mrf.mxu1  ;;  %v3521_v56 = vpop.f32.mrf.mxu0  ;;  %v3919_v48 = vld [vmem:[%s5531_s3 + $0x100] ss:$16 sps:$4 sm:$0xff]   ;;  %2435 = vmatprep.subr.bf16.mxu0 %v3921_v49 }
 0x129   :  { %v518_v61 = vmax.f32 %v512_v51, 0.0  ;;  %v3545_v62 = vadd.f32 %v3544_v55, %v3543_v46  ;;  %v455_v63 = vadd.f32 %v3520_v52, %v4630_v50  ;;  %v3918_v46 = vld [vmem:[%s5531_s3 + $0x304] ss:$16 sps:$4 sm:$0xff]  }
 0x12a   :  { %v3522_v0 = vpop.f32.mrf.mxu0  ;;  %2478 = vmatprep.subr.bf16.mxu1 %v3918_v46 }
 0x12b   :  { %v515_v2 = vadd.f32 %v3545_v62, %v4630_v50  ;;  %522 = vrot.lane.b32.xlu1 %v518_v61, %s4195_s0  ;;  %v461_v3 = vmax.f32 %v455_v63, 0.0  ;;  %v3523_v4 = vadd.f32 %v3522_v0, %v3521_v56  ;;  %2479 = vmatpush2.bf16.msra.mxu1 %v3916_v43  ;;  %v267_v62 = vadd.f32 %v4625_v47, %v4630_v50 }
 0x12c   :  { %2436 = vmatpush2.bf16.msra.mxu0 %v3919_v48  ;;  %2534 = vmatprep.subr.bf16.mxu1 %v3945_v58 }
 0x12d   :  { %v519_v7 = vmax.f32 %v515_v2, 0.0  ;;  %463 = vst.msk [vmem:[#allocation2 + $0x10] sm:$0xff] %vm217_vm0, %v461_v3  ;;  %v458_v8 = vadd.f32 %v3523_v4, %v4630_v50  ;;  %v3924_v2 = vld [vmem:[%s5531_s3 + $0x4e4] ss:$16 sps:$4 sm:$0xff]   ;;  %v273_v3 = vmax.f32 %v267_v62, 0.0 }
 0x12e   :  { %2491 = vmatprep.subr.bf16.mxu0 %v3924_v2 }
 0x12f   :  { %524 = vrot.lane.b32.xlu1 %v519_v7, %s4195_s0  ;;  %v462_v10 = vmax.f32 %v458_v8, 0.0 }
 0x131   :  { %464 = vst.msk [vmem:[#allocation2 + $0x48] sm:$0xff] %vm217_vm0, %v462_v10 }
 0x133   :  { %279 = vrot.lane.b32.xlu1 %v274_v14, %s4195_s0 }
 0x142   :  { %v3584_v31 = vpop.f32.mrf.mxu1 }
 0x144   :  { %v3585_v36 = vpop.f32.mrf.mxu1  ;;  %v3562_v37 = vpop.f32.mrf.mxu0 }
 0x145   :  { %v3586_v38 = vadd.f32 %v3585_v36, %v3584_v31 }
 0x146   :  { %v3587_v39 = vpop.f32.mrf.mxu1  ;;  %v3563_v40 = vpop.f32.mrf.mxu0 }
 0x147   :  { %v634_v44 = vadd.f32 %v3586_v38, %v4630_v50  ;;  %v3564_v45 = vadd.f32 %v3563_v40, %v3562_v37 }
 0x148   :  { %v3588_v51 = vpop.f32.mrf.mxu1  ;;  %v3565_v52 = vpop.f32.mrf.mxu0 }
 0x149   :  { %v640_v53 = vmax.f32 %v634_v44, 0.0  ;;  %v3589_v54 = vadd.f32 %v3588_v51, %v3587_v39  ;;  %v577_v55 = vadd.f32 %v3564_v45, %v4630_v50 }
 0x14a   :  { %v3566_v56 = vpop.f32.mrf.mxu0 }
 0x14b   :  { %v637_v57 = vadd.f32 %v3589_v54, %v4630_v50  ;;  %644 = vrot.lane.b32.xlu0 %v640_v53, %s4195_s0  ;;  %v583_v60 = vmax.f32 %v577_v55, 0.0  ;;  %v3567_v61 = vadd.f32 %v3566_v56, %v3565_v52  ;;  %v4194_v56 = vld [vmem:[%s5530_s2] ss:$0 sm:$0xff] }
 0x14d   :  { %v641_v63 = vmax.f32 %v637_v57, 0.0  ;;  %585 = vst.msk [vmem:[#allocation2 + $0x18] sm:$0xff] %vm217_vm0, %v583_v60  ;;  %v580_v0 = vadd.f32 %v3567_v61, %v4630_v50 }
 0x14f   :  { %646 = vrot.lane.b32.xlu0 %v641_v63, %s4195_s0  ;;  %v584_v1 = vmax.f32 %v580_v0, 0.0 }
 0x151   :  { %586 = vst.msk [vmem:[#allocation2 + $0x50] sm:$0xff] %vm217_vm0, %v584_v1 }
 0x153   :  { %277 = vrot.lane.b32.xlu0 %v273_v3, %s4195_s0 }
 0x162   :  { %v3628_v15 = vpop.f32.mrf.mxu1 }
 0x164   :  { %v3606_v47 = vpop.f32.mrf.mxu0  ;;  %v3629_v22 = vpop.f32.mrf.mxu1 }
 0x165   :  { %v3630_v48 = vadd.f32 %v3629_v22, %v3628_v15  ;;  %v3943_v15 = vld [vmem:[%s5531_s3 + $0x6e0] ss:$16 sps:$4 sm:$0xff]   ;;  %v3927_v22 = vld [vmem:[%s5531_s3 + $0x4c4] ss:$16 sps:$4 sm:$0xff]  }
 0x166   :  { %v3607_v4 = vpop.f32.mrf.mxu0  ;;  %v3631_v28 = vpop.f32.mrf.mxu1 }
 0x167   :  { %v3608_v59 = vadd.f32 %v3607_v4, %v3606_v47  ;;  %v756_v0 = vadd.f32 %v4194_v56, %v3630_v48  ;;  %v3940_v48 = vld [vmem:[%s5531_s3 + $0x420] ss:$16 sps:$4 sm:$0xff]  }
 0x168   :  { %v3609_v5 = vpop.f32.mrf.mxu0  ;;  %v3632_v30 = vpop.f32.mrf.mxu1 }
 0x169   :  { %v699_v6 = vadd.f32 %v3608_v59, %v4630_v50  ;;  %v3633_v1 = vadd.f32 %v3632_v30, %v3631_v28  ;;  %v762_v58 = vmax.f32 %v756_v0, 0.0  ;;  %v3930_v28 = vld [vmem:[%s5531_s3 + $0x4a4] ss:$16 sps:$4 sm:$0xff]  }
 0x16a   :  { %v3610_v7 = vpop.f32.mrf.mxu0  ;;  %v3963_v30 = vld [vmem:[%s5531_s3 + $0x684] ss:$16 sps:$4 sm:$0xff]  }
 0x16b   :  { %v705_v8 = vmax.f32 %v699_v6, 0.0  ;;  %v3611_v9 = vadd.f32 %v3610_v7, %v3609_v5  ;;  %v759_v59 = vadd.f32 %v4194_v56, %v3633_v1  ;;  %v3978_v0 = vld [vmem:[%s5531_s3 + $0x564] ss:$16 sps:$4 sm:$0xff]   ;;  %v3976_v1 = vld [vmem:[%s5531_s3 + $0x560] ss:$16 sps:$4 sm:$0xff]  }
 0x16d   :  { %707 = vst.msk [vmem:[#allocation2 + $0x20] sm:$0xff] %vm217_vm0, %v705_v8  ;;  %v702_v10 = vadd.f32 %v3611_v9, %v4630_v50  ;;  %v763_v6 = vmax.f32 %v759_v59, 0.0  ;;  %v4005_v59 = vld [vmem:[%s5531_s3 + $0x2ec] ss:$16 sps:$4 sm:$0xff]  }
 0x16f   :  { %v706_v11 = vmax.f32 %v702_v10, 0.0 }
 0x171   :  { %708 = vst.msk [vmem:[#allocation2 + $0x58] sm:$0xff] %vm217_vm0, %v706_v11 }
 0x17d   :  { %v401_v12 = vpop.permute.xlu0 %400 }
 0x17e   :  { %406 = vst.msk [vmem:[#allocation2 + $0x8] sm:$0xff] %vm283_vm1, %v401_v12 }
 0x181   :  { %v403_v13 = vpop.permute.xlu1 %402 }
 0x182   :  { %407 = vst.msk [vmem:[#allocation2 + $0x40] sm:$0xff] %vm283_vm1, %v403_v13  ;;  %v3672_v31 = vpop.f32.mrf.mxu1 }
 0x184   :  { %v3650_v14 = vpop.f32.mrf.mxu0  ;;  %v3673_v32 = vpop.f32.mrf.mxu1 }
 0x185   :  { %v1019_v19 = vld [vmem:[#allocation2 + $0x8] sm:$0xff]  ;;  %v3674_v38 = vadd.f32 %v3673_v32, %v3672_v31  ;;  %v3928_v31 = vld [vmem:[%s5531_s3 + $0x4a0] ss:$16 sps:$4 sm:$0xff]   ;;  %v3933_v32 = vld [vmem:[%s5531_s3 + $0x484] ss:$16 sps:$4 sm:$0xff]  }
 0x186   :  { %v3651_v16 = vpop.f32.mrf.mxu0  ;;  %v3675_v33 = vpop.f32.mrf.mxu1 }
 0x187   :  { %v3652_v17 = vadd.f32 %v3651_v16, %v3650_v14  ;;  %v878_v49 = vadd.f32 %v3674_v38, %v4630_v50  ;;  %v3975_v38 = vld [vmem:[%s5531_s3 + $0x644] ss:$16 sps:$4 sm:$0xff]  }
 0x188   :  { %v3653_v18 = vpop.f32.mrf.mxu0  ;;  %v3676_v35 = vpop.f32.mrf.mxu1 }
 0x189   :  { %v1026_v20 = vld [vmem:[#allocation2 + $0x40] sm:$0xff]  ;;  %v821_v21 = vadd.f32 %v3652_v17, %v4630_v50  ;;  %v3677_v53 = vadd.f32 %v3676_v35, %v3675_v33  ;;  %v884_v2 = vmax.f32 %v878_v49, 0.0 }
 0x18a   :  { %v4876_v23 = vpack.c.bf16 %v1026_v20, %v1019_v19  ;;  %v3654_v24 = vpop.f32.mrf.mxu0  ;;  %v3951_v17 = vld [vmem:[%s5531_s3 + $0x6c4] ss:$16 sps:$4 sm:$0xff]   ;;  %v3922_v20 = vld [vmem:[%s5531_s3 + $0x4e0] ss:$16 sps:$4 sm:$0xff]  }
 0x18b   :  { %v827_v25 = vmax.f32 %v821_v21, 0.0  ;;  %v3655_v26 = vadd.f32 %v3654_v24, %v3653_v18  ;;  %v3949_v24 = vld [vmem:[%s5531_s3 + $0x6c0] ss:$16 sps:$4 sm:$0xff]   ;;  %v3948_v49 = vld [vmem:[%s5531_s3 + $0x404] ss:$16 sps:$4 sm:$0xff]  }
 0x18c   :  { %2437 = vmatprep.mubr.bf16.mxu0 %v4876_v23  ;;  %v3961_v33 = vld [vmem:[%s5531_s3 + $0x680] ss:$16 sps:$4 sm:$0xff]  }
 0x18d   :  { %829 = vst.msk [vmem:[#allocation2 + $0x28] sm:$0xff] %vm217_vm0, %v827_v25  ;;  %v824_v27 = vadd.f32 %v3655_v26, %v4630_v50  ;;  %v4196_v25 = vmov 0   ;;  %v3957_v26 = vld [vmem:[%s5531_s3 + $0x6a4] ss:$16 sps:$4 sm:$0xff]   ;;  %v3931_v35 = vld [vmem:[%s5531_s3 + $0x480] ss:$16 sps:$4 sm:$0xff]  }
 0x18f   :  { %v828_v29 = vmax.f32 %v824_v27, 0.0  ;;  %v3925_v27 = vld [vmem:[%s5531_s3 + $0x4c0] ss:$16 sps:$4 sm:$0xff]  }
 0x191   :  { %830 = vst.msk [vmem:[#allocation2 + $0x60] sm:$0xff] %vm217_vm0, %v828_v29  ;;  %v3955_v29 = vld [vmem:[%s5531_s3 + $0x6a0] ss:$16 sps:$4 sm:$0xff]  }
 0x19d   :  { %v523_v34 = vpop.permute.xlu1 %522 }
 0x19e   :  { %528 = vst.msk [vmem:[#allocation2 + $0x10] sm:$0xff] %vm283_vm1, %v523_v34  ;;  %v3969_v34 = vld [vmem:[%s5531_s3 + $0x664] ss:$16 sps:$4 sm:$0xff]  }
 0x1a1   :  { %v525_v36 = vpop.permute.xlu1 %524 }
 0x1a2   :  { %529 = vst.msk [vmem:[#allocation2 + $0x48] sm:$0xff] %vm283_vm1, %v525_v36  ;;  %v3716_v37 = vpop.f32.mrf.mxu1  ;;  %v3936_v36 = vld [vmem:[%s5531_s3 + $0x464] ss:$16 sps:$4 sm:$0xff]  }
 0x1a4   :  { %v3717_v39 = vpop.f32.mrf.mxu1  ;;  %v3694_v40 = vpop.f32.mrf.mxu0 }
 0x1a5   :  { %v3718_v41 = vadd.f32 %v3717_v39, %v3716_v37  ;;  %v280_v42 = vpop.permute.xlu1 %279  ;;  %v1020_v14 = vld [vmem:[#allocation2 + $0x10] sm:$0xff] }
 0x1a6   :  { %285 = vst.msk [vmem:[#allocation2 + $0x38] sm:$0xff] %vm283_vm1, %v280_v42  ;;  %v3719_v43 = vpop.f32.mrf.mxu1  ;;  %v3695_v44 = vpop.f32.mrf.mxu0  ;;  %v3967_v37 = vld [vmem:[%s5531_s3 + $0x660] ss:$16 sps:$4 sm:$0xff]   ;;  %v3981_v42 = vld [vmem:[%s5531_s3 + $0x624] ss:$16 sps:$4 sm:$0xff]  }
 0x1a7   :  { %v1000_v45 = vadd.f32 %v3718_v41, %v4630_v50  ;;  %v3696_v46 = vadd.f32 %v3695_v44, %v3694_v40  ;;  %v881_v50 = vadd.f32 %v4194_v56, %v3677_v53  ;;  %v3934_v39 = vld [vmem:[%s5531_s3 + $0x460] ss:$16 sps:$4 sm:$0xff]   ;;  %v3939_v40 = vld [vmem:[%s5531_s3 + $0x444] ss:$16 sps:$4 sm:$0xff]  }
 0x1a8   :  { %v3720_v51 = vpop.f32.mrf.mxu1  ;;  %v3697_v52 = vpop.f32.mrf.mxu0  ;;  %v3973_v41 = vld [vmem:[%s5531_s3 + $0x640] ss:$16 sps:$4 sm:$0xff]   ;;  %v3942_v44 = vld [vmem:[%s5531_s3 + $0x424] ss:$16 sps:$4 sm:$0xff]  }
 0x1a9   :  { %v1006_v54 = vmax.f32 %v1000_v45, 0.0  ;;  %v3721_v55 = vadd.f32 %v3720_v51, %v3719_v43  ;;  %v943_v57 = vadd.f32 %v4194_v56, %v3696_v46  ;;  %v885_v5 = vmax.f32 %v881_v50, 0.0  ;;  %v1027_v10 = vld [vmem:[#allocation2 + $0x48] sm:$0xff]  ;;  %v3937_v43 = vld [vmem:[%s5531_s3 + $0x440] ss:$16 sps:$4 sm:$0xff]  }
 0x1aa   :  { %v3698_v60 = vpop.f32.mrf.mxu0  ;;  %v4906_v16 = vpack.c.bf16 %v1027_v10, %v1020_v14  ;;  %v3979_v45 = vld [vmem:[%s5531_s3 + $0x620] ss:$16 sps:$4 sm:$0xff]   ;;  %v3987_v46 = vld [vmem:[%s5531_s3 + $0x604] ss:$16 sps:$4 sm:$0xff]  }
 0x1ab   :  { %v1003_v61 = vadd.f32 %v4194_v56, %v3721_v55  ;;  %1010 = vrot.lane.b32.xlu0 %v1006_v54, %s4195_s0  ;;  %v949_v62 = vmax.f32 %v943_v57, 0.0  ;;  %v3699_v63 = vadd.f32 %v3698_v60, %v3697_v52  ;;  %v3985_v51 = vld [vmem:[%s5531_s3 + $0x600] ss:$16 sps:$4 sm:$0xff]   ;;  %v3993_v52 = vld [vmem:[%s5531_s3 + $0xec] ss:$16 sps:$4 sm:$0xff]  }
 0x1ac   :  { %v3946_v53 = vld [vmem:[%s5531_s3 + $0x400] ss:$16 sps:$4 sm:$0xff]   ;;  %v3954_v54 = vld [vmem:[%s5531_s3 + $0x5e4] ss:$16 sps:$4 sm:$0xff]  }
 0x1ad   :  { %v1007_v3 = vmax.f32 %v1003_v61, 0.0  ;;  %951 = vst.msk [vmem:[#allocation2 + $0x30] sm:$0xff] %vm217_vm0, %v949_v62  ;;  %v946_v47 = vadd.f32 %v4194_v56, %v3699_v63  ;;  %v1025_v19 = vld [vmem:[#allocation2 + $0x38] sm:$0xff]  ;;  %v3952_v55 = vld [vmem:[%s5531_s3 + $0x5e0] ss:$16 sps:$4 sm:$0xff]  }
 0x1ae   :  { %v3960_v56 = vld [vmem:[%s5531_s3 + $0x5c4] ss:$16 sps:$4 sm:$0xff]   ;;  %v3958_v57 = vld [vmem:[%s5531_s3 + $0x5c0] ss:$16 sps:$4 sm:$0xff]  }
 0x1af   :  { %1012 = vrot.lane.b32.xlu1 %v1007_v3, %s4195_s0  ;;  %888 = vrot.lane.b32.xlu0 %v884_v2, %s4195_s0  ;;  %v950_v4 = vmax.f32 %v946_v47, 0.0  ;;  %v3966_v60 = vld [vmem:[%s5531_s3 + $0x5a4] ss:$16 sps:$4 sm:$0xff]   ;;  %v3964_v61 = vld [vmem:[%s5531_s3 + $0x5a0] ss:$16 sps:$4 sm:$0xff]  }
 0x1b0   :  { %v3972_v62 = vld [vmem:[%s5531_s3 + $0x584] ss:$16 sps:$4 sm:$0xff]   ;;  %v3970_v63 = vld [vmem:[%s5531_s3 + $0x580] ss:$16 sps:$4 sm:$0xff]  }
 0x1b1   :  { %952 = vst.msk [vmem:[#allocation2 + $0x68] sm:$0xff] %vm217_vm0, %v950_v4  ;;  %v3984_v2 = vld [vmem:[%s5531_s3 + $0x544] ss:$16 sps:$4 sm:$0xff]   ;;  %v3982_v50 = vld [vmem:[%s5531_s3 + $0x540] ss:$16 sps:$4 sm:$0xff]  }
 0x1b2   :  { %v3990_v3 = vld [vmem:[%s5531_s3 + $0x524] ss:$16 sps:$4 sm:$0xff]   ;;  %v3988_v47 = vld [vmem:[%s5531_s3 + $0x520] ss:$16 sps:$4 sm:$0xff]  }
 0x1b3   :  { %890 = vrot.lane.b32.xlu1 %v885_v5, %s4195_s0  ;;  %766 = vrot.lane.b32.xlu0 %v762_v58, %s4195_s0  ;;  %v3996_v4 = vld [vmem:[%s5531_s3 + $0x504] ss:$16 sps:$4 sm:$0xff]   ;;  %v3994_v58 = vld [vmem:[%s5531_s3 + $0x500] ss:$16 sps:$4 sm:$0xff]  }
 0x1b7   :  { %768 = vrot.lane.b32.xlu1 %v763_v6, %s4195_s0 }
 0x1bd   :  { %v645_v7 = vpop.permute.xlu0 %644 }
 0x1be   :  { %650 = vst.msk [vmem:[#allocation2 + $0x18] sm:$0xff] %vm283_vm1, %v645_v7 }
 0x1c1   :  { %v647_v8 = vpop.permute.xlu0 %646 }
 0x1c2   :  { %651 = vst.msk [vmem:[#allocation2 + $0x50] sm:$0xff] %vm283_vm1, %v647_v8 }
 0x1c5   :  { %v278_v9 = vpop.permute.xlu0 %277  ;;  %v1021_v11 = vld [vmem:[#allocation2 + $0x18] sm:$0xff] }
 0x1c6   :  { %284 = vst.msk [vmem:[#allocation2] sm:$0xff] %vm283_vm1, %v278_v9 }
 0x1c9   :  { %v1028_v12 = vld [vmem:[#allocation2 + $0x50] sm:$0xff] }
 0x1ca   :  { %v4901_v13 = vpack.c.bf16 %v1028_v12, %v1021_v11  ;;  %v3991_v11 = vld [vmem:[%s5531_s3 + $0xe8] ss:$16 sps:$4 sm:$0xff]  }
 0x1cc   :  { %2480 = vmatprep.mubr.bf16.mxu1 %v4901_v13 }
 0x1cd   :  { %2481 = vmatmul.mubr.bf16.vlgmr.msra.gmra.mxu1 %v4906_v16  ;;  %v1018_v18 = vld [vmem:[#allocation2] sm:$0xff] }
 0x1ce   :  { %v4916_v21 = vpack.c.bf16 %v1025_v19, %v1018_v18  ;;  %2535 = vmatpush1.bf16.msra.mxu1 %v3943_v15  ;;  %2566 = vmatprep.mubr.bf16.mxu1 %v4196_v25  ;;  %v3997_v18 = vld [vmem:[%s5531_s3 + $0xc8] ss:$16 sps:$4 sm:$0xff]  }
 0x1cf   :  { %2536 = vmatprep.subr.bf16.mxu1 %v3951_v17  ;;  %v3999_v17 = vld [vmem:[%s5531_s3 + $0xcc] ss:$16 sps:$4 sm:$0xff]  }
 0x1d0   :  { %2438 = vmatmul.mubr.bf16.vlgmr.msra.gmra.mxu0 %v4916_v21 }
 0x1d1   :  { %2492 = vmatpush1.bf16.msra.mxu0 %v3922_v20 }
 0x1d2   :  { %2493 = vmatprep.subr.bf16.mxu0 %v3927_v22  ;;  %2537 = vmatpush1.bf16.msra.mxu1 %v3949_v24  ;;  %v4002_v24 = vld [vmem:[%s5531_s3 + $0xac] ss:$16 sps:$4 sm:$0xff]  }
 0x1d3   :  { %2538 = vmatprep.subr.bf16.mxu1 %v3957_v26  ;;  %v4000_v26 = vld [vmem:[%s5531_s3 + $0xa8] ss:$16 sps:$4 sm:$0xff]  }
 0x1d5   :  { %2494 = vmatpush1.bf16.msra.mxu0 %v3925_v27  ;;  %v4003_v27 = vld [vmem:[%s5531_s3 + $0x2e8] ss:$16 sps:$4 sm:$0xff]  }
 0x1d6   :  { %2495 = vmatprep.subr.bf16.mxu0 %v3930_v28  ;;  %2539 = vmatpush1.bf16.msra.mxu1 %v3955_v29 }
 0x1d7   :  { %2540 = vmatprep.subr.bf16.mxu1 %v3963_v30  ;;  %v4011_v30 = vld [vmem:[%s5531_s3 + $0x2cc] ss:$16 sps:$4 sm:$0xff]  }
 0x1d9   :  { %2496 = vmatpush1.bf16.msra.mxu0 %v3928_v31 }
 0x1da   :  { %2497 = vmatprep.subr.bf16.mxu0 %v3933_v32  ;;  %2541 = vmatpush1.bf16.msra.mxu1 %v3961_v33  ;;  %v4006_v32 = vld [vmem:[%s5531_s3 + $0x88] ss:$16 sps:$4 sm:$0xff]  }
 0x1db   :  { %2542 = vmatprep.subr.bf16.mxu1 %v3969_v34  ;;  %v4009_v33 = vld [vmem:[%s5531_s3 + $0x2c8] ss:$16 sps:$4 sm:$0xff]   ;;  %v4014_v34 = vld [vmem:[%s5531_s3 + $0x6c] ss:$16 sps:$4 sm:$0xff]  }
 0x1dd   :  { %2498 = vmatpush1.bf16.msra.mxu0 %v3931_v35  ;;  %v4017_v35 = vld [vmem:[%s5531_s3 + $0x2ac] ss:$16 sps:$4 sm:$0xff]  }
 0x1de   :  { %2499 = vmatprep.subr.bf16.mxu0 %v3936_v36  ;;  %2543 = vmatpush1.bf16.msra.mxu1 %v3967_v37  ;;  %v4012_v36 = vld [vmem:[%s5531_s3 + $0x68] ss:$16 sps:$4 sm:$0xff]  }
 0x1df   :  { %2544 = vmatprep.subr.bf16.mxu1 %v3975_v38  ;;  %v4015_v37 = vld [vmem:[%s5531_s3 + $0x2a8] ss:$16 sps:$4 sm:$0xff]   ;;  %v4020_v38 = vld [vmem:[%s5531_s3 + $0x4c] ss:$16 sps:$4 sm:$0xff]  }
 0x1e1   :  { %2500 = vmatpush1.bf16.msra.mxu0 %v3934_v39  ;;  %v4023_v39 = vld [vmem:[%s5531_s3 + $0x28c] ss:$16 sps:$4 sm:$0xff]  }
 0x1e2   :  { %2501 = vmatprep.subr.bf16.mxu0 %v3939_v40  ;;  %2545 = vmatpush1.bf16.msra.mxu1 %v3973_v41  ;;  %v4021_v40 = vld [vmem:[%s5531_s3 + $0x288] ss:$16 sps:$4 sm:$0xff]   ;;  %v4026_v41 = vld [vmem:[%s5531_s3 + $0x2c] ss:$16 sps:$4 sm:$0xff]  }
 0x1e3   :  { %2546 = vmatprep.subr.bf16.mxu1 %v3981_v42  ;;  %v4029_v42 = vld [vmem:[%s5531_s3 + $0x26c] ss:$16 sps:$4 sm:$0xff]  }
 0x1e5   :  { %2502 = vmatpush1.bf16.msra.mxu0 %v3937_v43  ;;  %v4024_v43 = vld [vmem:[%s5531_s3 + $0x28] ss:$16 sps:$4 sm:$0xff]  }
 0x1e6   :  { %2503 = vmatprep.subr.bf16.mxu0 %v3942_v44  ;;  %2547 = vmatpush1.bf16.msra.mxu1 %v3979_v45  ;;  %v4027_v44 = vld [vmem:[%s5531_s3 + $0x268] ss:$16 sps:$4 sm:$0xff]   ;;  %v4032_v45 = vld [vmem:[%s5531_s3 + $0xc] ss:$16 sps:$4 sm:$0xff]  }
 0x1e7   :  { %2548 = vmatprep.subr.bf16.mxu1 %v3987_v46  ;;  %v4035_v46 = vld [vmem:[%s5531_s3 + $0x24c] ss:$16 sps:$4 sm:$0xff]  }
 0x1e9   :  { %2504 = vmatpush1.bf16.msra.mxu0 %v3940_v48  ;;  %v4030_v48 = vld [vmem:[%s5531_s3 + $0x8] ss:$16 sps:$4 sm:$0xff]  }
 0x1ea   :  { %2505 = vmatprep.subr.bf16.mxu0 %v3948_v49  ;;  %2549 = vmatpush1.bf16.msra.mxu1 %v3985_v51  ;;  %v4033_v49 = vld [vmem:[%s5531_s3 + $0x248] ss:$16 sps:$4 sm:$0xff]   ;;  %v4038_v51 = vld [vmem:[%s5531_s3 + $0x1ec] ss:$16 sps:$4 sm:$0xff]  }
 0x1eb   :  { %2577 = vmatprep.subr.bf16.mxu1 %v3993_v52  ;;  %v4041_v52 = vld [vmem:[%s5531_s3 + $0x22c] ss:$16 sps:$4 sm:$0xff]  }
 0x1ed   :  { %2506 = vmatpush1.bf16.msra.mxu0 %v3946_v53  ;;  %v4036_v53 = vld [vmem:[%s5531_s3 + $0x1e8] ss:$16 sps:$4 sm:$0xff]  }
 0x1ee   :  { %2507 = vmatprep.subr.bf16.mxu0 %v3954_v54  ;;  %v4039_v54 = vld [vmem:[%s5531_s3 + $0x228] ss:$16 sps:$4 sm:$0xff]  }
 0x1f1   :  { %2508 = vmatpush2.bf16.msra.mxu0 %v3952_v55  ;;  %v4044_v55 = vld [vmem:[%s5531_s3 + $0x1cc] ss:$16 sps:$4 sm:$0xff]  }
 0x1f2   :  { %2509 = vmatprep.subr.bf16.mxu0 %v3960_v56  ;;  %v4047_v56 = vld [vmem:[%s5531_s3 + $0x20c] ss:$16 sps:$4 sm:$0xff]  }
 0x1f5   :  { %2510 = vmatpush2.bf16.msra.mxu0 %v3958_v57  ;;  %v4042_v57 = vld [vmem:[%s5531_s3 + $0x1c8] ss:$16 sps:$4 sm:$0xff]  }
 0x1f6   :  { %2511 = vmatprep.subr.bf16.mxu0 %v3966_v60  ;;  %v4045_v60 = vld [vmem:[%s5531_s3 + $0x208] ss:$16 sps:$4 sm:$0xff]  }
 0x1f9   :  { %2512 = vmatpush2.bf16.msra.mxu0 %v3964_v61  ;;  %v4050_v61 = vld [vmem:[%s5531_s3 + $0x1ac] ss:$16 sps:$4 sm:$0xff]  }
 0x1fa   :  { %2513 = vmatprep.subr.bf16.mxu0 %v3972_v62  ;;  %v4053_v62 = vld [vmem:[%s5531_s3 + $0x3ec] ss:$16 sps:$4 sm:$0xff]  }
 0x1fd   :  { %2514 = vmatpush2.bf16.msra.mxu0 %v3970_v63  ;;  %v4048_v63 = vld [vmem:[%s5531_s3 + $0x1a8] ss:$16 sps:$4 sm:$0xff]  }
 0x1fe   :  { %2515 = vmatprep.subr.bf16.mxu0 %v3978_v0  ;;  %v4051_v0 = vld [vmem:[%s5531_s3 + $0x3e8] ss:$16 sps:$4 sm:$0xff]  }
 0x201   :  { %2516 = vmatpush2.bf16.msra.mxu0 %v3976_v1  ;;  %v4056_v1 = vld [vmem:[%s5531_s3 + $0x18c] ss:$16 sps:$4 sm:$0xff]  }
 0x202   :  { %2517 = vmatprep.subr.bf16.mxu0 %v3984_v2  ;;  %v4059_v2 = vld [vmem:[%s5531_s3 + $0x3cc] ss:$16 sps:$4 sm:$0xff]  }
 0x205   :  { %2518 = vmatpush2.bf16.msra.mxu0 %v3982_v50  ;;  %v4054_v50 = vld [vmem:[%s5531_s3 + $0x188] ss:$16 sps:$4 sm:$0xff]  }
 0x206   :  { %2519 = vmatprep.subr.bf16.mxu0 %v3990_v3  ;;  %v4057_v3 = vld [vmem:[%s5531_s3 + $0x3c8] ss:$16 sps:$4 sm:$0xff]  }
 0x209   :  { %2520 = vmatpush2.bf16.msra.mxu0 %v3988_v47  ;;  %v4062_v47 = vld [vmem:[%s5531_s3 + $0x16c] ss:$16 sps:$4 sm:$0xff]  }
 0x20a   :  { %2521 = vmatprep.subr.bf16.mxu0 %v3996_v4  ;;  %v4065_v4 = vld [vmem:[%s5531_s3 + $0x3ac] ss:$16 sps:$4 sm:$0xff]  }
 0x20d   :  { %2522 = vmatpush2.bf16.msra.mxu0 %v3994_v58  ;;  %v4060_v58 = vld [vmem:[%s5531_s3 + $0x168] ss:$16 sps:$4 sm:$0xff]  }
 0x20e   :  { %2620 = vmatprep.subr.bf16.mxu0 %v4005_v59  ;;  %v4063_v59 = vld [vmem:[%s5531_s3 + $0x3a8] ss:$16 sps:$4 sm:$0xff]  }
 0x21d   :  { %v1011_v5 = vpop.permute.xlu0 %1010 }
 0x21e   :  { %1016 = vst.msk [vmem:[#allocation2 + $0x30] sm:$0xff] %vm283_vm1, %v1011_v5  ;;  %v4068_v5 = vld [vmem:[%s5531_s3 + $0x14c] ss:$16 sps:$4 sm:$0xff]  }
 0x221   :  { %v1013_v6 = vpop.permute.xlu1 %1012  ;;  %v889_v7 = vpop.permute.xlu0 %888 }
 0x222   :  { %1017 = vst.msk [vmem:[#allocation2 + $0x68] sm:$0xff] %vm283_vm1, %v1013_v6  ;;  %894 = vst.msk [vmem:[#allocation2 + $0x28] sm:$0xff] %vm283_vm1, %v889_v7  ;;  %v4071_v6 = vld [vmem:[%s5531_s3 + $0x38c] ss:$16 sps:$4 sm:$0xff]   ;;  %v4066_v7 = vld [vmem:[%s5531_s3 + $0x148] ss:$16 sps:$4 sm:$0xff]  }
 0x225   :  { %v891_v8 = vpop.permute.xlu1 %890  ;;  %v767_v9 = vpop.permute.xlu0 %766  ;;  %v1024_v12 = vld [vmem:[#allocation2 + $0x30] sm:$0xff] }
 0x226   :  { %895 = vst.msk [vmem:[#allocation2 + $0x60] sm:$0xff] %vm283_vm1, %v891_v8  ;;  %772 = vst.msk [vmem:[#allocation2 + $0x20] sm:$0xff] %vm283_vm1, %v767_v9  ;;  %v4069_v8 = vld [vmem:[%s5531_s3 + $0x388] ss:$16 sps:$4 sm:$0xff]   ;;  %v4074_v9 = vld [vmem:[%s5531_s3 + $0x12c] ss:$16 sps:$4 sm:$0xff]  }
 0x229   :  { %v769_v10 = vpop.permute.xlu1 %768  ;;  %v1031_v14 = vld [vmem:[#allocation2 + $0x68] sm:$0xff] }
 0x22a   :  { %773 = vst.msk [vmem:[#allocation2 + $0x58] sm:$0xff] %vm283_vm1, %v769_v10  ;;  %v5064_v15 = vpack.c.bf16 %v1031_v14, %v1024_v12  ;;  %v1023_v19 = vld [vmem:[#allocation2 + $0x28] sm:$0xff] }
 0x22b   :  { %v4077_v10 = vld [vmem:[%s5531_s3 + $0x36c] ss:$16 sps:$4 sm:$0xff]   ;;  %v4075_v12 = vld [vmem:[%s5531_s3 + $0x368] ss:$16 sps:$4 sm:$0xff]  }
 0x22c   :  { %2567 = vmatmul.mubr.bf16.vlgmr.msra.gmra.mxu1 %v5064_v15  ;;  %v4080_v14 = vld [vmem:[%s5531_s3 + $0x10c] ss:$16 sps:$4 sm:$0xff]  }
 0x22d   :  { %2578 = vmatpush1.bf16.msra.mxu1 %v3991_v11  ;;  %2609 = vmatprep.mubr.bf16.mxu1 %v4876_v23  ;;  %v1030_v20 = vld [vmem:[#allocation2 + $0x60] sm:$0xff]  ;;  %v4008_v23 = vld [vmem:[%s5531_s3 + $0x8c] ss:$16 sps:$4 sm:$0xff]   ;;  %v4072_v11 = vld [vmem:[%s5531_s3 + $0x128] ss:$16 sps:$4 sm:$0xff]  }
 0x22e   :  { %2579 = vmatprep.subr.bf16.mxu1 %v3999_v17  ;;  %v5074_v22 = vpack.c.bf16 %v1030_v20, %v1023_v19  ;;  %v1022_v28 = vld [vmem:[#allocation2 + $0x20] sm:$0xff]  ;;  %v4083_v17 = vld [vmem:[%s5531_s3 + $0x34c] ss:$16 sps:$4 sm:$0xff]   ;;  %v4081_v19 = vld [vmem:[%s5531_s3 + $0x348] ss:$16 sps:$4 sm:$0xff]  }
 0x22f   :  { %v4086_v20 = vld [vmem:[%s5531_s3 + $0x32c] ss:$16 sps:$4 sm:$0xff]  }
 0x230   :  { %2523 = vmatprep.mubr.bf16.mxu0 %v5074_v22 }
 0x231   :  { %2580 = vmatpush1.bf16.msra.mxu1 %v3997_v18  ;;  %v1029_v29 = vld [vmem:[#allocation2 + $0x58] sm:$0xff] }
 0x232   :  { %2581 = vmatprep.subr.bf16.mxu1 %v4002_v24  ;;  %v5092_v31 = vpack.c.bf16 %v1029_v29, %v1022_v28  ;;  %v4078_v18 = vld [vmem:[%s5531_s3 + $0x108] ss:$16 sps:$4 sm:$0xff]   ;;  %v4089_v24 = vld [vmem:[%s5531_s3 + $0x4ec] ss:$16 sps:$4 sm:$0xff]  }
 0x233   :  { %v4095_v28 = vld [vmem:[%s5531_s3 + $0x4cc] ss:$16 sps:$4 sm:$0xff]   ;;  %v4090_v29 = vld [vmem:[%s5531_s3 + $0x308] ss:$16 sps:$4 sm:$0xff]  }
 0x234   :  { %2524 = vmatmul.mubr.bf16.vlgmr.msra.gmra.mxu0 %v5092_v31 }
 0x235   :  { %2582 = vmatpush1.bf16.msra.mxu1 %v4000_v26  ;;  %2621 = vmatpush1.bf16.msra.mxu0 %v4003_v27  ;;  %v4084_v26 = vld [vmem:[%s5531_s3 + $0x328] ss:$16 sps:$4 sm:$0xff]  }
 0x236   :  { %2652 = vmatprep.mubr.bf16.mxu0 %v4901_v13  ;;  %2583 = vmatprep.subr.bf16.mxu1 %v4008_v23  ;;  %v4018_v13 = vld [vmem:[%s5531_s3 + $0x48] ss:$16 sps:$4 sm:$0xff]   ;;  %v4092_v23 = vld [vmem:[%s5531_s3 + $0x30c] ss:$16 sps:$4 sm:$0xff]  }
 0x237   :  { %2622 = vmatprep.subr.bf16.mxu0 %v4011_v30  ;;  %v4087_v27 = vld [vmem:[%s5531_s3 + $0x4e8] ss:$16 sps:$4 sm:$0xff]  }
 0x238   :  { %v4093_v30 = vld [vmem:[%s5531_s3 + $0x4c8] ss:$16 sps:$4 sm:$0xff]  }
 0x239   :  { %2584 = vmatpush1.bf16.msra.mxu1 %v4006_v32  ;;  %2623 = vmatpush1.bf16.msra.mxu0 %v4009_v33  ;;  %v4098_v32 = vld [vmem:[%s5531_s3 + $0x4ac] ss:$16 sps:$4 sm:$0xff]   ;;  %v4096_v33 = vld [vmem:[%s5531_s3 + $0x4a8] ss:$16 sps:$4 sm:$0xff]  }
 0x23a   :  { %2585 = vmatprep.subr.bf16.mxu1 %v4014_v34  ;;  %2624 = vmatprep.subr.bf16.mxu0 %v4017_v35  ;;  %v4104_v34 = vld [vmem:[%s5531_s3 + $0x48c] ss:$16 sps:$4 sm:$0xff]  }
 0x23b   :  { %v4107_v35 = vld [vmem:[%s5531_s3 + $0x6cc] ss:$16 sps:$4 sm:$0xff]  }
 0x23d   :  { %2586 = vmatpush1.bf16.msra.mxu1 %v4012_v36  ;;  %2625 = vmatpush1.bf16.msra.mxu0 %v4015_v37  ;;  %v4102_v36 = vld [vmem:[%s5531_s3 + $0x488] ss:$16 sps:$4 sm:$0xff]  }
 0x23e   :  { %2587 = vmatprep.subr.bf16.mxu1 %v4020_v38  ;;  %2626 = vmatprep.subr.bf16.mxu0 %v4023_v39  ;;  %v4105_v37 = vld [vmem:[%s5531_s3 + $0x6c8] ss:$16 sps:$4 sm:$0xff]   ;;  %v4110_v38 = vld [vmem:[%s5531_s3 + $0x46c] ss:$16 sps:$4 sm:$0xff]  }
 0x23f   :  { %v4108_v39 = vld [vmem:[%s5531_s3 + $0x468] ss:$16 sps:$4 sm:$0xff]  }
 0x241   :  { %2588 = vmatpush1.bf16.msra.mxu1 %v4018_v13  ;;  %2627 = vmatpush1.bf16.msra.mxu0 %v4021_v40  ;;  %v4111_v13 = vld [vmem:[%s5531_s3 + $0x6a8] ss:$16 sps:$4 sm:$0xff]   ;;  %v4116_v40 = vld [vmem:[%s5531_s3 + $0x44c] ss:$16 sps:$4 sm:$0xff]  }
 0x242   :  { %2589 = vmatprep.subr.bf16.mxu1 %v4026_v41  ;;  %2628 = vmatprep.subr.bf16.mxu0 %v4029_v42  ;;  %v4114_v41 = vld [vmem:[%s5531_s3 + $0x448] ss:$16 sps:$4 sm:$0xff]  }
 0x243   :  { %v4117_v42 = vld [vmem:[%s5531_s3 + $0x688] ss:$16 sps:$4 sm:$0xff]  }
 0x245   :  { %2590 = vmatpush1.bf16.msra.mxu1 %v4024_v43  ;;  %2629 = vmatpush1.bf16.msra.mxu0 %v4027_v44  ;;  %v4122_v43 = vld [vmem:[%s5531_s3 + $0x42c] ss:$16 sps:$4 sm:$0xff]  }
 0x246   :  { %2591 = vmatprep.subr.bf16.mxu1 %v4032_v45  ;;  %2630 = vmatprep.subr.bf16.mxu0 %v4035_v46  ;;  %v4125_v44 = vld [vmem:[%s5531_s3 + $0x66c] ss:$16 sps:$4 sm:$0xff]   ;;  %v4120_v45 = vld [vmem:[%s5531_s3 + $0x428] ss:$16 sps:$4 sm:$0xff]  }
 0x247   :  { %v4123_v46 = vld [vmem:[%s5531_s3 + $0x668] ss:$16 sps:$4 sm:$0xff]  }
 0x249   :  { %2592 = vmatpush1.bf16.msra.mxu1 %v4030_v48  ;;  %2631 = vmatpush1.bf16.msra.mxu0 %v4033_v49  ;;  %v4128_v48 = vld [vmem:[%s5531_s3 + $0x40c] ss:$16 sps:$4 sm:$0xff]  }
 0x24a   :  { %2593 = vmatprep.subr.bf16.mxu1 %v4038_v51  ;;  %2632 = vmatprep.subr.bf16.mxu0 %v4041_v52  ;;  %v4131_v49 = vld [vmem:[%s5531_s3 + $0x64c] ss:$16 sps:$4 sm:$0xff]   ;;  %v4126_v51 = vld [vmem:[%s5531_s3 + $0x408] ss:$16 sps:$4 sm:$0xff]  }
 0x24b   :  { %v4129_v52 = vld [vmem:[%s5531_s3 + $0x648] ss:$16 sps:$4 sm:$0xff]  }
 0x24d   :  { %2594 = vmatpush2.bf16.msra.mxu1 %v4036_v53  ;;  %2633 = vmatpush1.bf16.msra.mxu0 %v4039_v54  ;;  %v4134_v53 = vld [vmem:[%s5531_s3 + $0x5ec] ss:$16 sps:$4 sm:$0xff]  }
 0x24e   :  { %2595 = vmatprep.subr.bf16.mxu1 %v4044_v55  ;;  %2634 = vmatprep.subr.bf16.mxu0 %v4047_v56  ;;  %v4137_v54 = vld [vmem:[%s5531_s3 + $0x62c] ss:$16 sps:$4 sm:$0xff]   ;;  %v4132_v55 = vld [vmem:[%s5531_s3 + $0x5e8] ss:$16 sps:$4 sm:$0xff]  }
 0x24f   :  { %v4135_v56 = vld [vmem:[%s5531_s3 + $0x628] ss:$16 sps:$4 sm:$0xff]  }
 0x251   :  { %2596 = vmatpush2.bf16.msra.mxu1 %v4042_v57  ;;  %2635 = vmatpush1.bf16.msra.mxu0 %v4045_v60  ;;  %v4140_v57 = vld [vmem:[%s5531_s3 + $0x5cc] ss:$16 sps:$4 sm:$0xff]  }
 0x252   :  { %2597 = vmatprep.subr.bf16.mxu1 %v4050_v61  ;;  %2636 = vmatprep.subr.bf16.mxu0 %v4053_v62  ;;  %v4143_v60 = vld [vmem:[%s5531_s3 + $0x60c] ss:$16 sps:$4 sm:$0xff]   ;;  %v4138_v61 = vld [vmem:[%s5531_s3 + $0x5c8] ss:$16 sps:$4 sm:$0xff]  }
 0x253   :  { %v4141_v62 = vld [vmem:[%s5531_s3 + $0x608] ss:$16 sps:$4 sm:$0xff]  }
 0x255   :  { %2598 = vmatpush2.bf16.msra.mxu1 %v4048_v63  ;;  %2637 = vmatpush2.bf16.msra.mxu0 %v4051_v0  ;;  %v4146_v63 = vld [vmem:[%s5531_s3 + $0x5ac] ss:$16 sps:$4 sm:$0xff]  }
 0x256   :  { %2599 = vmatprep.subr.bf16.mxu1 %v4056_v1  ;;  %2638 = vmatprep.subr.bf16.mxu0 %v4059_v2  ;;  %v4162_v0 = vld [vmem:[%s5532_s5 + $0x78] sm:$0xff]  }
 0x257   :  { %v4144_v1 = vld [vmem:[%s5531_s3 + $0x5a8] ss:$16 sps:$4 sm:$0xff]  }
 0x258   :  { %v4163_v2 = vld [vmem:[%s5532_s5 + $0x38] sm:$0xff]  }
 0x259   :  { %2600 = vmatpush2.bf16.msra.mxu1 %v4054_v50  ;;  %2639 = vmatpush2.bf16.msra.mxu0 %v4057_v3  ;;  %v4149_v50 = vld [vmem:[%s5531_s3 + $0x58c] ss:$16 sps:$4 sm:$0xff]   ;;  %v4164_v3 = vld [vmem:[%s5532_s5 + $0x70] sm:$0xff]  }
 0x25a   :  { %2601 = vmatprep.subr.bf16.mxu1 %v4062_v47  ;;  %2640 = vmatprep.subr.bf16.mxu0 %v4065_v4  ;;  %v4147_v47 = vld [vmem:[%s5531_s3 + $0x588] ss:$16 sps:$4 sm:$0xff]   ;;  %v4165_v4 = vld [vmem:[%s5532_s5 + $0x30] sm:$0xff]  }
 0x25d   :  { %2602 = vmatpush2.bf16.msra.mxu1 %v4060_v58  ;;  %2641 = vmatpush2.bf16.msra.mxu0 %v4063_v59  ;;  %v4152_v58 = vld [vmem:[%s5531_s3 + $0x56c] ss:$16 sps:$4 sm:$0xff]   ;;  %v4150_v59 = vld [vmem:[%s5531_s3 + $0x568] ss:$16 sps:$4 sm:$0xff]  }
 0x25e   :  { %2603 = vmatprep.subr.bf16.mxu1 %v4068_v5  ;;  %2642 = vmatprep.subr.bf16.mxu0 %v4071_v6  ;;  %v4167_v5 = vld [vmem:[%s5532_s5 + $0x28] sm:$0xff]  }
 0x25f   :  { %v4155_v6 = vld [vmem:[%s5531_s3 + $0x54c] ss:$16 sps:$4 sm:$0xff]  }
 0x261   :  { %2604 = vmatpush2.bf16.msra.mxu1 %v4066_v7  ;;  %2643 = vmatpush2.bf16.msra.mxu0 %v4069_v8  ;;  %v4168_v7 = vld [vmem:[%s5532_s5 + $0x60] sm:$0xff]   ;;  %v4153_v8 = vld [vmem:[%s5531_s3 + $0x548] ss:$16 sps:$4 sm:$0xff]  }
 0x262   :  { %2605 = vmatprep.subr.bf16.mxu1 %v4074_v9  ;;  %2644 = vmatprep.subr.bf16.mxu0 %v4077_v10  ;;  %v4169_v9 = vld [vmem:[%s5532_s5 + $0x20] sm:$0xff]   ;;  %v4158_v10 = vld [vmem:[%s5531_s3 + $0x52c] ss:$16 sps:$4 sm:$0xff]  }
 0x265   :  { %2606 = vmatpush2.bf16.msra.mxu1 %v4072_v11  ;;  %2645 = vmatpush2.bf16.msra.mxu0 %v4075_v12  ;;  %v4170_v11 = vld [vmem:[%s5532_s5 + $0x58] sm:$0xff]  }
 0x266   :  { %2607 = vmatprep.subr.bf16.mxu1 %v4080_v14  ;;  %2646 = vmatprep.subr.bf16.mxu0 %v4083_v17  ;;  %v4156_v12 = vld [vmem:[%s5531_s3 + $0x528] ss:$16 sps:$4 sm:$0xff]   ;;  %v4161_v17 = vld [vmem:[%s5531_s3 + $0x50c] ss:$16 sps:$4 sm:$0xff]  }
 0x267   :  { %v4171_v14 = vld [vmem:[%s5532_s5 + $0x18] sm:$0xff]  }
 0x269   :  { %2608 = vmatpush2.bf16.msra.mxu1 %v4078_v18  ;;  %2647 = vmatpush2.bf16.msra.mxu0 %v4081_v19  ;;  %v4172_v18 = vld [vmem:[%s5532_s5 + $0x50] sm:$0xff]   ;;  %v4159_v19 = vld [vmem:[%s5531_s3 + $0x508] ss:$16 sps:$4 sm:$0xff]  }
 0x26a   :  { %2648 = vmatprep.subr.bf16.mxu0 %v4086_v20  ;;  %2663 = vmatprep.subr.bf16.mxu1 %v4089_v24  ;;  %v4173_v20 = vld [vmem:[%s5532_s5 + $0x10] sm:$0xff]   ;;  %v4174_v24 = vld [vmem:[%s5532_s5 + $0x48] sm:$0xff]  }
 0x26c   :  { %2610 = vmatmul.mubr.bf16.vlgmr.msra.gmra.mxu1 %v4916_v21  ;;  %v4101_v21 = vld [vmem:[%s5531_s3 + $0x6ec] ss:$16 sps:$4 sm:$0xff]  }
 0x26d   :  { %2649 = vmatpush2.bf16.msra.mxu0 %v4084_v26  ;;  %2664 = vmatpush1.bf16.msra.mxu1 %v4087_v27  ;;  %v4175_v26 = vld [vmem:[%s5532_s5 + $0x8] sm:$0xff]   ;;  %v4176_v27 = vld [vmem:[%s5532_s5 + $0x40] sm:$0xff]  }
 0x26e   :  { %2695 = vmatprep.mubr.bf16.mxu1 %v5074_v22  ;;  %2650 = vmatprep.subr.bf16.mxu0 %v4092_v23  ;;  %v4099_v22 = vld [vmem:[%s5531_s3 + $0x6e8] ss:$16 sps:$4 sm:$0xff]   ;;  %v4177_v23 = vld [vmem:[%s5532_s5] sm:$0xff]  }
 0x26f   :  { %2665 = vmatprep.subr.bf16.mxu1 %v4095_v28  ;;  %v4178_v28 = vld [vmem:[%s5532_s5 + $0xf8] sm:$0xff]  }
 0x271   :  { %2651 = vmatpush2.bf16.msra.mxu0 %v4090_v29  ;;  %2666 = vmatpush1.bf16.msra.mxu1 %v4093_v30  ;;  %v4179_v29 = vld [vmem:[%s5532_s5 + $0xb8] sm:$0xff]   ;;  %v4180_v30 = vld [vmem:[%s5532_s5 + $0xf0] sm:$0xff]  }
 0x272   :  { %2667 = vmatprep.subr.bf16.mxu1 %v4098_v32  ;;  %2706 = vmatprep.subr.bf16.mxu0 %v4101_v21  ;;  %v4182_v32 = vld [vmem:[%s5532_s5 + $0xe8] sm:$0xff]  }
 0x273   :  { %v4183_v21 = vld [vmem:[%s5532_s5 + $0xa8] sm:$0xff]  }
 0x274   :  { %2653 = vmatmul.mubr.bf16.vlgmr.msra.gmra.mxu0 %v4906_v16  ;;  %v4113_v16 = vld [vmem:[%s5531_s3 + $0x6ac] ss:$16 sps:$4 sm:$0xff]  }
 0x275   :  { %2668 = vmatpush1.bf16.msra.mxu1 %v4096_v33  ;;  %2707 = vmatpush1.bf16.msra.mxu0 %v4099_v22  ;;  %v1265_v22 = vlaneseq }
 0x276   :  { %2669 = vmatprep.subr.bf16.mxu1 %v4104_v34  ;;  %2708 = vmatprep.subr.bf16.mxu0 %v4107_v35  ;;  %v4184_v34 = vld [vmem:[%s5532_s5 + $0xe0] sm:$0xff]  }
 0x277   :  { %2738 = vmatprep.mubr.bf16.mxu0 %v4196_v25  ;;  %v4119_v25 = vld [vmem:[%s5531_s3 + $0x68c] ss:$16 sps:$4 sm:$0xff]   ;;  %v4185_v35 = vld [vmem:[%s5532_s5 + $0xa0] sm:$0xff]  }
 0x279   :  { %2670 = vmatpush1.bf16.msra.mxu1 %v4102_v36  ;;  %2709 = vmatpush1.bf16.msra.mxu0 %v4105_v37  ;;  %v5480_v37 = vshrl.u32 %v1265_v22, 7 }
 0x27a   :  { %2671 = vmatprep.subr.bf16.mxu1 %v4110_v38  ;;  %2710 = vmatprep.subr.bf16.mxu0 %v4113_v16 }
 0x27b   :  { %v1271_v16 = vsub.s32 1, %v5480_v37 }
 0x27d   :  { %2672 = vmatpush1.bf16.msra.mxu1 %v4108_v39  ;;  %2711 = vmatpush1.bf16.msra.mxu0 %v4111_v13  ;;  %v1267_v39 = vsub.s32 0, %v5480_v37 }
 0x27e   :  { %2673 = vmatprep.subr.bf16.mxu1 %v4116_v40  ;;  %2712 = vmatprep.subr.bf16.mxu0 %v4119_v25  ;;  %v5487_v25 = vld [vmem:[%s5533_s4] sm:$0xf] }
 0x281   :  { %2674 = vmatpush1.bf16.msra.mxu1 %v4114_v41  ;;  %2713 = vmatpush1.bf16.msra.mxu0 %v4117_v42  ;;  %v4186_v41 = vld [vmem:[%s5532_s5 + $0xd8] sm:$0xff]  }
 0x282   :  { %2675 = vmatprep.subr.bf16.mxu1 %v4122_v43  ;;  %2714 = vmatprep.subr.bf16.mxu0 %v4125_v44  ;;  %v4187_v42 = vld [vmem:[%s5532_s5 + $0x98] sm:$0xff]   ;;  %v1272_v43 = vrot.slane %v5487_v25, %v1271_v16  ;;  %v1268_v44 = vrot.slane %v5487_v25, %v1267_v39 }
 0x285   :  { %2676 = vmatpush1.bf16.msra.mxu1 %v4120_v45  ;;  %2715 = vmatpush1.bf16.msra.mxu0 %v4123_v46 }
 0x286   :  { %2677 = vmatprep.subr.bf16.mxu1 %v4128_v48  ;;  %2716 = vmatprep.subr.bf16.mxu0 %v4131_v49  ;;  %v4188_v48 = vld [vmem:[%s5532_s5 + $0xd0] sm:$0xff]  }
 0x289   :  { %2678 = vmatpush1.bf16.msra.mxu1 %v4126_v51  ;;  %2717 = vmatpush1.bf16.msra.mxu0 %v4129_v52  ;;  %v4189_v51 = vld [vmem:[%s5532_s5 + $0x90] sm:$0xff]  }
 0x28a   :  { %2679 = vmatprep.subr.bf16.mxu1 %v4134_v53  ;;  %2718 = vmatprep.subr.bf16.mxu0 %v4137_v54 }
 0x28d   :  { %2680 = vmatpush2.bf16.msra.mxu1 %v4132_v55  ;;  %2719 = vmatpush1.bf16.msra.mxu0 %v4135_v56  ;;  %v2482_v33 = vpop.f32.mrf.mxu1  ;;  %v4190_v56 = vld [vmem:[%s5532_s5 + $0xc8] sm:$0xff]  }
 0x28e   :  { %2681 = vmatprep.subr.bf16.mxu1 %v4140_v57  ;;  %2720 = vmatprep.subr.bf16.mxu0 %v4143_v60 }
 0x28f   :  { %v2484_v36 = vpop.f32.mrf.mxu1 }
 0x290   :  { %v2439_v38 = vpop.f32.mrf.mxu0 }
 0x291   :  { %2682 = vmatpush2.bf16.msra.mxu1 %v4138_v61  ;;  %2721 = vmatpush1.bf16.msra.mxu0 %v4141_v62  ;;  %v2486_v13 = vpop.f32.mrf.mxu1  ;;  %v2440_v53 = vadd.f32 %v2439_v38, %v1268_v44  ;;  %v4191_v61 = vld [vmem:[%s5532_s5 + $0x88] sm:$0xff]  }
 0x292   :  { %2683 = vmatprep.subr.bf16.mxu1 %v4146_v63  ;;  %3722 = vmatprep.subr.bf16.mxu0 %v4162_v0  ;;  %v2441_v40 = vpop.f32.mrf.mxu0 }
 0x293   :  { %v2488_v45 = vpop.f32.mrf.mxu1  ;;  %v2442_v52 = vadd.f32 %v2441_v40, %v1272_v43  ;;  %v2483_v0 = vadd.f32 %v2482_v33, %v2440_v53 }
 0x294   :  { %2739 = vmatmul.mubr.bf16.vlgmr.msra.gmra.mxu0 %v5064_v15  ;;  %v4166_v15 = vld [vmem:[%s5532_s5 + $0x68] sm:$0xff]   ;;  %v2443_v46 = vpop.f32.mrf.mxu0 }
 0x295   :  { %2684 = vmatpush2.bf16.msra.mxu1 %v4144_v1  ;;  %3723 = vmatpush3.bf16.msra.mxu0 %v4163_v2  ;;  %v2444_v55 = vadd.f32 %v2443_v46, %v1268_v44  ;;  %v2485_v63 = vadd.f32 %v2484_v36, %v2442_v52 }
 0x296   :  { %2685 = vmatprep.subr.bf16.mxu1 %v4149_v50  ;;  %3724 = vmatprep.subr.bf16.mxu0 %v4164_v3  ;;  %v2445_v54 = vpop.f32.mrf.mxu0  ;;  %v4192_v3 = vld [vmem:[%s5532_s5 + $0xc0] sm:$0xff]  }
 0x297   :  { %v2446_v62 = vadd.f32 %v2445_v54, %v1272_v43  ;;  %v2487_v50 = vadd.f32 %v2486_v13, %v2444_v55 }
 0x299   :  { %2686 = vmatpush2.bf16.msra.mxu1 %v4147_v47  ;;  %3725 = vmatpush3.bf16.msra.mxu0 %v4165_v4  ;;  %v4193_v47 = vld [vmem:[%s5532_s5 + $0x80] sm:$0xff]  }
 0x29a   :  { %2687 = vmatprep.subr.bf16.mxu1 %v4152_v58  ;;  %3726 = vmatprep.subr.bf16.mxu0 %v4166_v15 }
 0x29d   :  { %2688 = vmatpush2.bf16.msra.mxu1 %v4150_v59  ;;  %3727 = vmatpush3.bf16.msra.mxu0 %v4167_v5  ;;  %v2489_v5 = vadd.f32 %v2488_v45, %v2446_v62 }
 0x29e   :  { %2689 = vmatprep.subr.bf16.mxu1 %v4155_v6  ;;  %3728 = vmatprep.subr.bf16.mxu0 %v4168_v7 }
 0x2a1   :  { %2690 = vmatpush2.bf16.msra.mxu1 %v4153_v8  ;;  %3729 = vmatpush3.bf16.msra.mxu0 %v4169_v9 }
 0x2a2   :  { %2691 = vmatprep.subr.bf16.mxu1 %v4158_v10  ;;  %3730 = vmatprep.subr.bf16.mxu0 %v4170_v11 }
 0x2a5   :  { %2692 = vmatpush2.bf16.msra.mxu1 %v4156_v12  ;;  %3731 = vmatpush3.bf16.msra.mxu0 %v4171_v14 }
 0x2a6   :  { %2693 = vmatprep.subr.bf16.mxu1 %v4161_v17  ;;  %3732 = vmatprep.subr.bf16.mxu0 %v4172_v18 }
 0x2a9   :  { %2694 = vmatpush2.bf16.msra.mxu1 %v4159_v19  ;;  %3733 = vmatpush3.bf16.msra.mxu0 %v4173_v20 }
 0x2aa   :  { %3734 = vmatprep.subr.bf16.mxu0 %v4174_v24  ;;  %3744 = vmatprep.subr.bf16.mxu1 %v4178_v28 }
 0x2ac   :  { %2696 = vmatmul.mubr.bf16.vlgmr.msra.gmra.mxu1 %v5092_v31  ;;  %v4181_v31 = vld [vmem:[%s5532_s5 + $0xb0] sm:$0xff]  }
 0x2ad   :  { %3735 = vmatpush3.bf16.msra.mxu0 %v4175_v26  ;;  %3745 = vmatpush3.bf16.msra.mxu1 %v4179_v29 }
 0x2ae   :  { %3736 = vmatprep.subr.bf16.mxu0 %v4176_v27  ;;  %3746 = vmatprep.subr.bf16.mxu1 %v4180_v30  ;;  %v1279_v30 = vsub.s32 3, %v5480_v37 }
 0x2b0   :  { %v1280_v33 = vrot.slane %v5487_v25, %v1279_v30 }
 0x2b1   :  { %3737 = vmatpush3.bf16.msra.mxu0 %v4177_v23  ;;  %3747 = vmatpush3.bf16.msra.mxu1 %v4181_v31  ;;  %v1275_v31 = vsub.s32 2, %v5480_v37 }
 0x2b2   :  { %3748 = vmatprep.subr.bf16.mxu1 %v4182_v32 }
 0x2b3   :  { %v1276_v22 = vrot.slane %v5487_v25, %v1275_v31 }
 0x2b5   :  { %3749 = vmatpush3.bf16.msra.mxu1 %v4183_v21 }
 0x2b6   :  { %3750 = vmatprep.subr.bf16.mxu1 %v4184_v34 }
 0x2b9   :  { %3751 = vmatpush3.bf16.msra.mxu1 %v4185_v35 }
 0x2ba   :  { %3752 = vmatprep.subr.bf16.mxu1 %v4186_v41 }
 0x2bd   :  { %3753 = vmatpush3.bf16.msra.mxu1 %v4187_v42 }
 0x2be   :  { %3754 = vmatprep.subr.bf16.mxu1 %v4188_v48 }
 0x2c1   :  { %3755 = vmatpush3.bf16.msra.mxu1 %v4189_v51 }
 0x2c2   :  { %3756 = vmatprep.subr.bf16.mxu1 %v4190_v56 }
 0x2c5   :  { %3757 = vmatpush3.bf16.msra.mxu1 %v4191_v61 }
 0x2c6   :  { %3758 = vmatprep.subr.bf16.mxu1 %v4192_v3 }
 0x2c9   :  { %3759 = vmatpush3.bf16.msra.mxu1 %v4193_v47 }
 0x2ec   :  { %v2568_v49 = vpop.f32.mrf.mxu1 }
 0x2ee   :  { %v2570_v57 = vpop.f32.mrf.mxu1 }
 0x2f0   :  { %v2572_v4 = vpop.f32.mrf.mxu1 }
 0x2f2   :  { %v2574_v10 = vpop.f32.mrf.mxu1 }
 0x2f4   :  { %v2525_v60 = vpop.f32.mrf.mxu0 }
 0x2f5   :  { %v2526_v58 = vadd.f32 %v2525_v60, %v2483_v0 }
 0x2f6   :  { %v2527_v1 = vpop.f32.mrf.mxu0 }
 0x2f7   :  { %v2528_v2 = vadd.f32 %v2527_v1, %v2485_v63  ;;  %v2569_v11 = vadd.f32 %v2568_v49, %v2526_v58 }
 0x2f8   :  { %v2529_v15 = vpop.f32.mrf.mxu0 }
 0x2f9   :  { %v2530_v59 = vadd.f32 %v2529_v15, %v2487_v50  ;;  %v2571_v7 = vadd.f32 %v2570_v57, %v2528_v2  ;;  %v2749_v19 = vmax.f32 %v2569_v11, 0.0 }
 0x2fa   :  { %v2531_v6 = vpop.f32.mrf.mxu0 }
 0x2fb   :  { %v2573_v8 = vadd.f32 %v2572_v4, %v2530_v59  ;;  %v2532_v9 = vadd.f32 %v2531_v6, %v2489_v5  ;;  %v2750_v17 = vmax.f32 %v2571_v7, 0.0  ;;  %v3381_v4 = vld [vmem:[%s5534_s6] ss:$0 sm:$0xff] }
 0x2fd   :  { %v2575_v12 = vadd.f32 %v2574_v10, %v2532_v9  ;;  %v2753_v14 = vmax.f32 %v2573_v8, 0.0 }
 0x2ff   :  { %v2754_v18 = vmax.f32 %v2575_v12, 0.0  ;;  %v2757_v24 = vpack.c.bf16 %v2753_v14, %v2749_v19 }
 0x301   :  { %v2758_v20 = vpack.c.bf16 %v2754_v18, %v2750_v17 }
 0x303   :  { %3056 = vmatprep.mubr.bf16.mxu0 %v2758_v20 }
 0x304   :  { %3057 = vmatmul.mubr.bf16.vlgmr.msra.gmra.mxu0 %v2757_v24 }
 0x32c   :  { %v2611_v27 = vpop.f32.mrf.mxu1 }
 0x32d   :  { %v2612_v38 = vadd.f32 %v2611_v27, %v1276_v22 }
 0x32e   :  { %v2613_v28 = vpop.f32.mrf.mxu1 }
 0x32f   :  { %v2614_v36 = vadd.f32 %v2613_v28, %v1280_v33 }
 0x330   :  { %v2615_v32 = vpop.f32.mrf.mxu1 }
 0x331   :  { %v2616_v13 = vadd.f32 %v2615_v32, %v1276_v22 }
 0x332   :  { %v2617_v35 = vpop.f32.mrf.mxu1 }
 0x333   :  { %v2618_v43 = vadd.f32 %v2617_v35, %v1280_v33 }
 0x334   :  { %v2654_v26 = vpop.f32.mrf.mxu0 }
 0x335   :  { %v2655_v41 = vadd.f32 %v2654_v26, %v2612_v38 }
 0x336   :  { %v2656_v23 = vpop.f32.mrf.mxu0 }
 0x337   :  { %v2657_v40 = vadd.f32 %v2656_v23, %v2614_v36 }
 0x338   :  { %v2658_v29 = vpop.f32.mrf.mxu0 }
 0x339   :  { %v2659_v44 = vadd.f32 %v2658_v29, %v2616_v13 }
 0x33a   :  { %v2660_v21 = vpop.f32.mrf.mxu0 }
 0x33b   :  { %v2661_v49 = vadd.f32 %v2660_v21, %v2618_v43 }
 0x354   :  { %v2740_v34 = vpop.f32.mrf.mxu0 }
 0x356   :  { %v2742_v16 = vpop.f32.mrf.mxu0 }
 0x358   :  { %v2744_v37 = vpop.f32.mrf.mxu0 }
 0x35a   :  { %v2746_v55 = vpop.f32.mrf.mxu0 }
 0x36c   :  { %v2697_v39 = vpop.f32.mrf.mxu1 }
 0x36d   :  { %v2698_v46 = vadd.f32 %v2697_v39, %v2655_v41 }
 0x36e   :  { %v2699_v42 = vpop.f32.mrf.mxu1 }
 0x36f   :  { %v2700_v45 = vadd.f32 %v2699_v42, %v2657_v40  ;;  %v2741_v56 = vadd.f32 %v2740_v34, %v2698_v46 }
 0x370   :  { %v2701_v48 = vpop.f32.mrf.mxu1 }
 0x371   :  { %v2702_v51 = vadd.f32 %v2701_v48, %v2659_v44  ;;  %v2743_v25 = vadd.f32 %v2742_v16, %v2700_v45  ;;  %v2751_v63 = vmax.f32 %v2741_v56, 0.0 }
 0x372   :  { %v2703_v52 = vpop.f32.mrf.mxu1 }
 0x373   :  { %v2745_v53 = vadd.f32 %v2744_v37, %v2702_v51  ;;  %v2704_v54 = vadd.f32 %v2703_v52, %v2661_v49  ;;  %v2752_v61 = vmax.f32 %v2743_v25, 0.0 }
 0x375   :  { %v2747_v57 = vadd.f32 %v2746_v55, %v2704_v54  ;;  %v2755_v60 = vmax.f32 %v2745_v53, 0.0 }
 0x377   :  { %v2756_v62 = vmax.f32 %v2747_v57, 0.0  ;;  %v2759_v1 = vpack.c.bf16 %v2755_v60, %v2751_v63 }
 0x379   :  { %v2760_v0 = vpack.c.bf16 %v2756_v62, %v2752_v61 }
 0x37b   :  { %3097 = vmatprep.mubr.bf16.mxu1 %v2760_v0 }
 0x37c   :  { %3098 = vmatmul.mubr.bf16.vlgmr.msra.gmra.mxu1 %v2759_v1 }
 0x3c4   :  { %v3738_v2 = vpop.f32.mrf.mxu0 }
 0x3c6   :  { %v3739_v50 = vpop.f32.mrf.mxu0 }
 0x3c7   :  { %v3740_v47 = vadd.f32 %v3739_v50, %v3738_v2 }
 0x3c8   :  { %v3741_v3 = vpop.f32.mrf.mxu0 }
 0x3c9   :  { %v3059_v5 = vadd.f32 %v3740_v47, %v3381_v4 }
 0x3ca   :  { %v3742_v58 = vpop.f32.mrf.mxu0 }
 0x3cb   :  { %v3743_v6 = vadd.f32 %v3742_v58, %v3741_v3 }
 0x3cd   :  { %v3062_v11 = vadd.f32 %v3743_v6, %v3381_v4 }
 0x43c   :  { %v3760_v15 = vpop.f32.mrf.mxu1 }
 0x43e   :  { %v3761_v59 = vpop.f32.mrf.mxu1 }
 0x43f   :  { %v3762_v7 = vadd.f32 %v3761_v59, %v3760_v15 }
 0x440   :  { %v3763_v8 = vpop.f32.mrf.mxu1 }
 0x441   :  { %v3100_v9 = vadd.f32 %v3762_v7, %v3059_v5 }
 0x442   :  { %v3764_v10 = vpop.f32.mrf.mxu1 }
 0x443   :  { %3106 = vst [vmem:[%s5535_s7] sm:$0xff] %v3100_v9  ;;  %v3765_v12 = vadd.f32 %v3764_v10, %v3763_v8 }
 0x445   :  { %v3103_v14 = vadd.f32 %v3765_v12, %v3062_v11 }
 0x447   :  { %3107 = vst [vmem:[%s5535_s7 + $0x8] sm:$0xff] %v3103_v14 }

// kernel: _lambda_.1
= control target key start
LH: loop header
LB: loop body
LE: loop exit
PB: predicated region body
PF: predicated region fallthrough
CT: control target
= control target key end

     0   :  { %vm217_vm0 = vcmask 523264   ;;  %vm283_vm1 = vcmask 1048064   ;;  %s5528_s1 = inlined_call_operand.vmem [shape: bf16[256,64], index: 1, kind: input, shape index: {}]   ;;  %s5529_s0 = inlined_call_operand.vmem [shape: bf16[16,3584], index: 0, kind: input, shape index: {}]   ;;  %s5530_s2 = inlined_call_operand.vmem [shape: f32[1,64], index: 2, kind: input, shape index: {}]   ;;  %s5531_s3 = inlined_call_operand.vmem [shape: bf16[896,512], index: 3, kind: input, shape index: {}]   ;;  %s5532_s5 = inlined_call_operand.vmem [shape: bf16[512,128], index: 5, kind: input, shape index: {}]   ;;  %s5533_s4 = inlined_call_operand.vmem [shape: f32[1,512], index: 4, kind: input, shape index: {}]   ;;  %s5534_s6 = inlined_call_operand.vmem [shape: f32[1,128], index: 6, kind: input, shape index: {}]   ;;  %s5535_s7 = inlined_call_operand.vmem [shape: f32[16,128], index: 7, kind: output, shape index: {}]  }
   0x1   :  { %v4240_v0 = vld [vmem:[%s5528_s1 + $0x78] sm:$0xff]   ;;  %v4251_v2 = vld [vmem:[%s5528_s1 + $0x70] sm:$0xff]   ;;  %v4265_v4 = vld [vmem:[%s5528_s1 + $0x68] sm:$0xff]  }
   0x2   :  { %v4245_v1 = vld [vmem:[%s5528_s1 + $0x38] sm:$0xff]   ;;  %3436 = vmatprep.subr.bf16.mxu1 %v4240_v0  ;;  %3414 = vmatprep.subr.bf16.mxu0 %v4240_v0  ;;  %v4258_v3 = vld [vmem:[%s5528_s1 + $0x30] sm:$0xff]   ;;  %v4272_v5 = vld [vmem:[%s5528_s1 + $0x28] sm:$0xff]  }
   0x3   :  { %3437 = vmatpush3.bf16.msra.mxu1 %v4245_v1  ;;  %3415 = vmatpush3.bf16.msra.mxu0 %v4245_v1  ;;  %v4279_v6 = vld [vmem:[%s5528_s1 + $0x60] sm:$0xff]   ;;  %v4293_v8 = vld [vmem:[%s5528_s1 + $0x58] sm:$0xff]   ;;  %v4307_v10 = vld [vmem:[%s5528_s1 + $0x50] sm:$0xff]  }
   0x4   :  { %3438 = vmatprep.subr.bf16.mxu1 %v4251_v2  ;;  %3416 = vmatprep.subr.bf16.mxu0 %v4251_v2  ;;  %v4286_v7 = vld [vmem:[%s5528_s1 + $0x20] sm:$0xff]   ;;  %v4300_v9 = vld [vmem:[%s5528_s1 + $0x18] sm:$0xff]   ;;  %v4317_v12 = vld [vmem:[%s5528_s1 + $0x10] sm:$0xff]  }
   0x5   :  { %v3786_v11 = vld [vmem:[%s5529_s0 + $0xc] ss:$112 sps:$4 sm:$0xff]   ;;  %v4335_v15 = vld [vmem:[%s5528_s1 + $0x40] sm:$0xff]   ;;  %v3784_v18 = vld [vmem:[%s5529_s0 + $0x8] ss:$112 sps:$4 sm:$0xff]  }
   0x6   :  { %264 = vmatprep.mubr.bf16.mxu1 %v3786_v11  ;;  %v4323_v13 = vld [vmem:[%s5528_s1 + $0x48] sm:$0xff]   ;;  %v3798_v16 = vld [vmem:[%s5529_s0 + $0x4] ss:$112 sps:$4 sm:$0xff]   ;;  %v3796_v20 = vld [vmem:[%s5529_s0] ss:$112 sps:$4 sm:$0xff]  }
   0x7   :  { %3439 = vmatpush3.bf16.msra.mxu1 %v4258_v3  ;;  %3417 = vmatpush3.bf16.msra.mxu0 %v4258_v3  ;;  %v4329_v14 = vld [vmem:[%s5528_s1 + $0x8] sm:$0xff]   ;;  %v4346_v17 = vld [vmem:[%s5528_s1] sm:$0xff]  }
   0x8   :  { %3440 = vmatprep.subr.bf16.mxu1 %v4265_v4  ;;  %3418 = vmatprep.subr.bf16.mxu0 %v4265_v4  ;;  %v3789_v19 = vld [vmem:[%s5529_s0 + $0x1c] ss:$112 sps:$4 sm:$0xff]   ;;  %v3804_v21 = vld [vmem:[%s5529_s0 + $0x14] ss:$112 sps:$4 sm:$0xff]   ;;  %v3787_v22 = vld [vmem:[%s5529_s0 + $0x18] ss:$112 sps:$4 sm:$0xff]  }
   0x9   :  { %206 = vmatprep.mubr.bf16.mxu0 %v3798_v16  ;;  %v3792_v23 = vld [vmem:[%s5529_s0 + $0x2c] ss:$112 sps:$4 sm:$0xff]   ;;  %v3802_v24 = vld [vmem:[%s5529_s0 + $0x10] ss:$112 sps:$4 sm:$0xff]   ;;  %v3810_v25 = vld [vmem:[%s5529_s0 + $0x24] ss:$112 sps:$4 sm:$0xff]  }
   0xa   :  { %v3790_v26 = vld [vmem:[%s5529_s0 + $0x28] ss:$112 sps:$4 sm:$0xff]   ;;  %v3795_v27 = vld [vmem:[%s5529_s0 + $0x3c] ss:$112 sps:$4 sm:$0xff]   ;;  %v3808_v28 = vld [vmem:[%s5529_s0 + $0x20] ss:$112 sps:$4 sm:$0xff]  }
   0xb   :  { %3441 = vmatpush3.bf16.msra.mxu1 %v4272_v5  ;;  %3419 = vmatpush3.bf16.msra.mxu0 %v4272_v5  ;;  %v3816_v29 = vld [vmem:[%s5529_s0 + $0x34] ss:$112 sps:$4 sm:$0xff]   ;;  %v3793_v30 = vld [vmem:[%s5529_s0 + $0x38] ss:$112 sps:$4 sm:$0xff]   ;;  %v3801_v31 = vld [vmem:[%s5529_s0 + $0x4c] ss:$112 sps:$4 sm:$0xff]  }
   0xc   :  { %3442 = vmatprep.subr.bf16.mxu1 %v4279_v6  ;;  %3420 = vmatprep.subr.bf16.mxu0 %v4279_v6  ;;  %v3814_v32 = vld [vmem:[%s5529_s0 + $0x30] ss:$112 sps:$4 sm:$0xff]   ;;  %v3819_v33 = vld [vmem:[%s5529_s0 + $0x44] ss:$112 sps:$4 sm:$0xff]   ;;  %v3799_v34 = vld [vmem:[%s5529_s0 + $0x48] ss:$112 sps:$4 sm:$0xff]  }
   0xd   :  { %v3807_v35 = vld [vmem:[%s5529_s0 + $0x5c] ss:$112 sps:$4 sm:$0xff]   ;;  %v3817_v36 = vld [vmem:[%s5529_s0 + $0x40] ss:$112 sps:$4 sm:$0xff]   ;;  %v3822_v37 = vld [vmem:[%s5529_s0 + $0x54] ss:$112 sps:$4 sm:$0xff]  }
   0xe   :  { %v3805_v38 = vld [vmem:[%s5529_s0 + $0x58] ss:$112 sps:$4 sm:$0xff]   ;;  %v3813_v39 = vld [vmem:[%s5529_s0 + $0x6c] ss:$112 sps:$4 sm:$0xff]   ;;  %v3820_v40 = vld [vmem:[%s5529_s0 + $0x50] ss:$112 sps:$4 sm:$0xff]  }
   0xf   :  { %3443 = vmatpush3.bf16.msra.mxu1 %v4286_v7  ;;  %3421 = vmatpush3.bf16.msra.mxu0 %v4286_v7  ;;  %v3825_v41 = vld [vmem:[%s5529_s0 + $0x64] ss:$112 sps:$4 sm:$0xff]   ;;  %v3811_v42 = vld [vmem:[%s5529_s0 + $0x68] ss:$112 sps:$4 sm:$0xff]   ;;  %v3823_v43 = vld [vmem:[%s5529_s0 + $0x60] ss:$112 sps:$4 sm:$0xff]  }
  0x10   :  { %3444 = vmatprep.subr.bf16.mxu1 %v4293_v8  ;;  %3422 = vmatprep.subr.bf16.mxu0 %v4293_v8  ;;  %v4630_v50 = vld [vmem:[%s5530_s2] ss:$0 sm:$0xff]  ;;  %s4195_s0 = smov 64  }
  0x13   :  { %3445 = vmatpush3.bf16.msra.mxu1 %v4300_v9  ;;  %3423 = vmatpush3.bf16.msra.mxu0 %v4300_v9 }
  0x14   :  { %3446 = vmatprep.subr.bf16.mxu1 %v4307_v10  ;;  %3424 = vmatprep.subr.bf16.mxu0 %v4307_v10 }
  0x17   :  { %3447 = vmatpush3.bf16.msra.mxu1 %v4317_v12  ;;  %3425 = vmatpush3.bf16.msra.mxu0 %v4317_v12 }
  0x18   :  { %3448 = vmatprep.subr.bf16.mxu1 %v4323_v13  ;;  %3426 = vmatprep.subr.bf16.mxu0 %v4323_v13 }
  0x1b   :  { %3449 = vmatpush3.bf16.msra.mxu1 %v4329_v14  ;;  %3427 = vmatpush3.bf16.msra.mxu0 %v4329_v14 }
  0x1c   :  { %3450 = vmatprep.subr.bf16.mxu1 %v4335_v15  ;;  %3428 = vmatprep.subr.bf16.mxu0 %v4335_v15 }
  0x1f   :  { %3451 = vmatpush3.bf16.msra.mxu1 %v4346_v17  ;;  %3429 = vmatpush3.bf16.msra.mxu0 %v4346_v17 }
  0x20   :  { %3480 = vmatprep.subr.bf16.mxu1 %v4240_v0  ;;  %3458 = vmatprep.subr.bf16.mxu0 %v4240_v0 }
  0x22   :  { %265 = vmatmul.mubr.bf16.vlgmr.msra.gmra.mxu1 %v3784_v18  ;;  %207 = vmatmul.mubr.bf16.vlgmr.msra.gmra.mxu0 %v3796_v20  ;;  %v3831_v18 = vld [vmem:[%s5531_s3 + $0xe4] ss:$16 sps:$4 sm:$0xff]  }
  0x23   :  { %3481 = vmatpush3.bf16.msra.mxu1 %v4245_v1  ;;  %387 = vmatprep.mubr.bf16.mxu1 %v3789_v19  ;;  %v3832_v19 = vld [vmem:[%s5531_s3 + $0x2c0] ss:$16 sps:$4 sm:$0xff]   ;;  %v3834_v20 = vld [vmem:[%s5531_s3 + $0x2c4] ss:$16 sps:$4 sm:$0xff]  }
  0x24   :  { %3482 = vmatprep.subr.bf16.mxu1 %v4251_v2  ;;  %3459 = vmatpush3.bf16.msra.mxu0 %v4245_v1 }
  0x25   :  { %3460 = vmatprep.subr.bf16.mxu0 %v4251_v2  ;;  %330 = vmatprep.mubr.bf16.mxu0 %v3804_v21 }
  0x27   :  { %3483 = vmatpush3.bf16.msra.mxu1 %v4258_v3 }
  0x28   :  { %3484 = vmatprep.subr.bf16.mxu1 %v4265_v4  ;;  %3461 = vmatpush3.bf16.msra.mxu0 %v4258_v3 }
  0x29   :  { %3462 = vmatprep.subr.bf16.mxu0 %v4265_v4 }
  0x2b   :  { %3485 = vmatpush3.bf16.msra.mxu1 %v4272_v5 }
  0x2c   :  { %3486 = vmatprep.subr.bf16.mxu1 %v4279_v6  ;;  %3463 = vmatpush3.bf16.msra.mxu0 %v4272_v5 }
  0x2d   :  { %3464 = vmatprep.subr.bf16.mxu0 %v4279_v6 }
  0x2f   :  { %3487 = vmatpush3.bf16.msra.mxu1 %v4286_v7 }
  0x30   :  { %3488 = vmatprep.subr.bf16.mxu1 %v4293_v8  ;;  %3465 = vmatpush3.bf16.msra.mxu0 %v4286_v7 }
  0x31   :  { %3466 = vmatprep.subr.bf16.mxu0 %v4293_v8 }
  0x33   :  { %3489 = vmatpush3.bf16.msra.mxu1 %v4300_v9 }
  0x34   :  { %3490 = vmatprep.subr.bf16.mxu1 %v4307_v10  ;;  %3467 = vmatpush3.bf16.msra.mxu0 %v4300_v9 }
  0x35   :  { %3468 = vmatprep.subr.bf16.mxu0 %v4307_v10 }
  0x37   :  { %3491 = vmatpush3.bf16.msra.mxu1 %v4317_v12 }
  0x38   :  { %3492 = vmatprep.subr.bf16.mxu1 %v4323_v13  ;;  %3469 = vmatpush3.bf16.msra.mxu0 %v4317_v12 }
  0x39   :  { %3470 = vmatprep.subr.bf16.mxu0 %v4323_v13 }
  0x3b   :  { %3493 = vmatpush3.bf16.msra.mxu1 %v4329_v14 }
  0x3c   :  { %3494 = vmatprep.subr.bf16.mxu1 %v4335_v15  ;;  %3471 = vmatpush3.bf16.msra.mxu0 %v4329_v14 }
  0x3d   :  { %3472 = vmatprep.subr.bf16.mxu0 %v4335_v15 }
  0x3f   :  { %3495 = vmatpush3.bf16.msra.mxu1 %v4346_v17 }
  0x40   :  { %3524 = vmatprep.subr.bf16.mxu1 %v4240_v0  ;;  %3473 = vmatpush3.bf16.msra.mxu0 %v4346_v17 }
  0x41   :  { %3502 = vmatprep.subr.bf16.mxu0 %v4240_v0 }
  0x42   :  { %388 = vmatmul.mubr.bf16.vlgmr.msra.gmra.mxu1 %v3787_v22  ;;  %v3835_v22 = vld [vmem:[%s5531_s3 + $0xc0] ss:$16 sps:$4 sm:$0xff]  }
  0x43   :  { %3525 = vmatpush3.bf16.msra.mxu1 %v4245_v1  ;;  %509 = vmatprep.mubr.bf16.mxu1 %v3792_v23  ;;  %v3837_v23 = vld [vmem:[%s5531_s3 + $0xc4] ss:$16 sps:$4 sm:$0xff]  }
  0x44   :  { %3526 = vmatprep.subr.bf16.mxu1 %v4251_v2  ;;  %331 = vmatmul.mubr.bf16.vlgmr.msra.gmra.mxu0 %v3802_v24  ;;  %v3840_v24 = vld [vmem:[%s5531_s3 + $0x2a4] ss:$16 sps:$4 sm:$0xff]  }
  0x45   :  { %3503 = vmatpush3.bf16.msra.mxu0 %v4245_v1  ;;  %452 = vmatprep.mubr.bf16.mxu0 %v3810_v25  ;;  %v3838_v25 = vld [vmem:[%s5531_s3 + $0x2a0] ss:$16 sps:$4 sm:$0xff]  }
  0x46   :  { %3504 = vmatprep.subr.bf16.mxu0 %v4251_v2 }
  0x47   :  { %3527 = vmatpush3.bf16.msra.mxu1 %v4258_v3 }
  0x48   :  { %3528 = vmatprep.subr.bf16.mxu1 %v4265_v4 }
  0x49   :  { %3505 = vmatpush3.bf16.msra.mxu0 %v4258_v3 }
  0x4a   :  { %3506 = vmatprep.subr.bf16.mxu0 %v4265_v4 }
  0x4b   :  { %3529 = vmatpush3.bf16.msra.mxu1 %v4272_v5 }
  0x4c   :  { %3530 = vmatprep.subr.bf16.mxu1 %v4279_v6 }
  0x4d   :  { %3507 = vmatpush3.bf16.msra.mxu0 %v4272_v5 }
  0x4e   :  { %3508 = vmatprep.subr.bf16.mxu0 %v4279_v6 }
  0x4f   :  { %3531 = vmatpush3.bf16.msra.mxu1 %v4286_v7 }
  0x50   :  { %3532 = vmatprep.subr.bf16.mxu1 %v4293_v8 }
  0x51   :  { %3509 = vmatpush3.bf16.msra.mxu0 %v4286_v7 }
  0x52   :  { %3510 = vmatprep.subr.bf16.mxu0 %v4293_v8 }
  0x53   :  { %3533 = vmatpush3.bf16.msra.mxu1 %v4300_v9 }
  0x54   :  { %3534 = vmatprep.subr.bf16.mxu1 %v4307_v10 }
  0x55   :  { %3511 = vmatpush3.bf16.msra.mxu0 %v4300_v9 }
  0x56   :  { %3512 = vmatprep.subr.bf16.mxu0 %v4307_v10 }
  0x57   :  { %3535 = vmatpush3.bf16.msra.mxu1 %v4317_v12 }
  0x58   :  { %3536 = vmatprep.subr.bf16.mxu1 %v4323_v13 }
  0x59   :  { %3513 = vmatpush3.bf16.msra.mxu0 %v4317_v12 }
  0x5a   :  { %3514 = vmatprep.subr.bf16.mxu0 %v4323_v13 }
  0x5b   :  { %3537 = vmatpush3.bf16.msra.mxu1 %v4329_v14 }
  0x5c   :  { %3538 = vmatprep.subr.bf16.mxu1 %v4335_v15 }
  0x5d   :  { %3515 = vmatpush3.bf16.msra.mxu0 %v4329_v14 }
  0x5e   :  { %3516 = vmatprep.subr.bf16.mxu0 %v4335_v15 }
  0x5f   :  { %3539 = vmatpush3.bf16.msra.mxu1 %v4346_v17 }
  0x60   :  { %3568 = vmatprep.subr.bf16.mxu1 %v4240_v0 }
  0x61   :  { %3517 = vmatpush3.bf16.msra.mxu0 %v4346_v17 }
  0x62   :  { %510 = vmatmul.mubr.bf16.vlgmr.msra.gmra.mxu1 %v3790_v26  ;;  %3546 = vmatprep.subr.bf16.mxu0 %v4240_v0  ;;  %v3843_v26 = vld [vmem:[%s5531_s3 + $0xa4] ss:$16 sps:$4 sm:$0xff]  }
  0x63   :  { %3569 = vmatpush3.bf16.msra.mxu1 %v4245_v1  ;;  %631 = vmatprep.mubr.bf16.mxu1 %v3795_v27  ;;  %v3841_v27 = vld [vmem:[%s5531_s3 + $0xa0] ss:$16 sps:$4 sm:$0xff]  }
  0x64   :  { %3570 = vmatprep.subr.bf16.mxu1 %v4251_v2  ;;  %453 = vmatmul.mubr.bf16.vlgmr.msra.gmra.mxu0 %v3808_v28  ;;  %v3846_v28 = vld [vmem:[%s5531_s3 + $0x284] ss:$16 sps:$4 sm:$0xff]  }
  0x65   :  { %3547 = vmatpush3.bf16.msra.mxu0 %v4245_v1  ;;  %574 = vmatprep.mubr.bf16.mxu0 %v3816_v29  ;;  %v3844_v29 = vld [vmem:[%s5531_s3 + $0x280] ss:$16 sps:$4 sm:$0xff]  }
  0x66   :  { %3548 = vmatprep.subr.bf16.mxu0 %v4251_v2 }
  0x67   :  { %3571 = vmatpush3.bf16.msra.mxu1 %v4258_v3 }
  0x68   :  { %3572 = vmatprep.subr.bf16.mxu1 %v4265_v4 }
  0x69   :  { %3549 = vmatpush3.bf16.msra.mxu0 %v4258_v3 }
  0x6a   :  { %3550 = vmatprep.subr.bf16.mxu0 %v4265_v4 }
  0x6b   :  { %3573 = vmatpush3.bf16.msra.mxu1 %v4272_v5 }
  0x6c   :  { %3574 = vmatprep.subr.bf16.mxu1 %v4279_v6 }
  0x6d   :  { %3551 = vmatpush3.bf16.msra.mxu0 %v4272_v5 }
  0x6e   :  { %3552 = vmatprep.subr.bf16.mxu0 %v4279_v6 }
  0x6f   :  { %3575 = vmatpush3.bf16.msra.mxu1 %v4286_v7 }
  0x70   :  { %3576 = vmatprep.subr.bf16.mxu1 %v4293_v8 }
  0x71   :  { %3553 = vmatpush3.bf16.msra.mxu0 %v4286_v7 }
  0x72   :  { %3554 = vmatprep.subr.bf16.mxu0 %v4293_v8 }
  0x73   :  { %3577 = vmatpush3.bf16.msra.mxu1 %v4300_v9 }
  0x74   :  { %3578 = vmatprep.subr.bf16.mxu1 %v4307_v10 }
  0x75   :  { %3555 = vmatpush3.bf16.msra.mxu0 %v4300_v9 }
  0x76   :  { %3556 = vmatprep.subr.bf16.mxu0 %v4307_v10 }
  0x77   :  { %3579 = vmatpush3.bf16.msra.mxu1 %v4317_v12 }
  0x78   :  { %3580 = vmatprep.subr.bf16.mxu1 %v4323_v13 }
  0x79   :  { %3557 = vmatpush3.bf16.msra.mxu0 %v4317_v12 }
  0x7a   :  { %3558 = vmatprep.subr.bf16.mxu0 %v4323_v13 }
  0x7b   :  { %3581 = vmatpush3.bf16.msra.mxu1 %v4329_v14 }
  0x7c   :  { %3582 = vmatprep.subr.bf16.mxu1 %v4335_v15 }
  0x7d   :  { %3559 = vmatpush3.bf16.msra.mxu0 %v4329_v14 }
  0x7e   :  { %3560 = vmatprep.subr.bf16.mxu0 %v4335_v15 }
  0x7f   :  { %3583 = vmatpush3.bf16.msra.mxu1 %v4346_v17 }
  0x80   :  { %3612 = vmatprep.subr.bf16.mxu1 %v4240_v0 }
  0x81   :  { %3561 = vmatpush3.bf16.msra.mxu0 %v4346_v17 }
  0x82   :  { %632 = vmatmul.mubr.bf16.vlgmr.msra.gmra.mxu1 %v3793_v30  ;;  %3590 = vmatprep.subr.bf16.mxu0 %v4240_v0  ;;  %v3849_v30 = vld [vmem:[%s5531_s3 + $0x84] ss:$16 sps:$4 sm:$0xff]  }
  0x83   :  { %3613 = vmatpush3.bf16.msra.mxu1 %v4245_v1  ;;  %753 = vmatprep.mubr.bf16.mxu1 %v3801_v31  ;;  %v3847_v31 = vld [vmem:[%s5531_s3 + $0x80] ss:$16 sps:$4 sm:$0xff]  }
  0x84   :  { %3614 = vmatprep.subr.bf16.mxu1 %v4251_v2  ;;  %575 = vmatmul.mubr.bf16.vlgmr.msra.gmra.mxu0 %v3814_v32  ;;  %v3852_v32 = vld [vmem:[%s5531_s3 + $0x264] ss:$16 sps:$4 sm:$0xff]  }
  0x85   :  { %3591 = vmatpush3.bf16.msra.mxu0 %v4245_v1  ;;  %696 = vmatprep.mubr.bf16.mxu0 %v3819_v33  ;;  %v3850_v33 = vld [vmem:[%s5531_s3 + $0x260] ss:$16 sps:$4 sm:$0xff]  }
  0x86   :  { %3592 = vmatprep.subr.bf16.mxu0 %v4251_v2 }
  0x87   :  { %3615 = vmatpush3.bf16.msra.mxu1 %v4258_v3 }
  0x88   :  { %3616 = vmatprep.subr.bf16.mxu1 %v4265_v4 }
  0x89   :  { %3593 = vmatpush3.bf16.msra.mxu0 %v4258_v3 }
  0x8a   :  { %3594 = vmatprep.subr.bf16.mxu0 %v4265_v4 }
  0x8b   :  { %3617 = vmatpush3.bf16.msra.mxu1 %v4272_v5 }
  0x8c   :  { %3618 = vmatprep.subr.bf16.mxu1 %v4279_v6 }
  0x8d   :  { %3595 = vmatpush3.bf16.msra.mxu0 %v4272_v5 }
  0x8e   :  { %3596 = vmatprep.subr.bf16.mxu0 %v4279_v6 }
  0x8f   :  { %3619 = vmatpush3.bf16.msra.mxu1 %v4286_v7 }
  0x90   :  { %3620 = vmatprep.subr.bf16.mxu1 %v4293_v8 }
  0x91   :  { %3597 = vmatpush3.bf16.msra.mxu0 %v4286_v7 }
  0x92   :  { %3598 = vmatprep.subr.bf16.mxu0 %v4293_v8 }
  0x93   :  { %3621 = vmatpush3.bf16.msra.mxu1 %v4300_v9 }
  0x94   :  { %3622 = vmatprep.subr.bf16.mxu1 %v4307_v10 }
  0x95   :  { %3599 = vmatpush3.bf16.msra.mxu0 %v4300_v9 }
  0x96   :  { %3600 = vmatprep.subr.bf16.mxu0 %v4307_v10 }
  0x97   :  { %3623 = vmatpush3.bf16.msra.mxu1 %v4317_v12 }
  0x98   :  { %3624 = vmatprep.subr.bf16.mxu1 %v4323_v13 }
  0x99   :  { %3601 = vmatpush3.bf16.msra.mxu0 %v4317_v12 }
  0x9a   :  { %3602 = vmatprep.subr.bf16.mxu0 %v4323_v13 }
  0x9b   :  { %3625 = vmatpush3.bf16.msra.mxu1 %v4329_v14 }
  0x9c   :  { %3626 = vmatprep.subr.bf16.mxu1 %v4335_v15 }
  0x9d   :  { %3603 = vmatpush3.bf16.msra.mxu0 %v4329_v14 }
  0x9e   :  { %3604 = vmatprep.subr.bf16.mxu0 %v4335_v15 }
  0x9f   :  { %3627 = vmatpush3.bf16.msra.mxu1 %v4346_v17 }
  0xa0   :  { %3656 = vmatprep.subr.bf16.mxu1 %v4240_v0 }
  0xa1   :  { %3605 = vmatpush3.bf16.msra.mxu0 %v4346_v17 }
  0xa2   :  { %754 = vmatmul.mubr.bf16.vlgmr.msra.gmra.mxu1 %v3799_v34  ;;  %3634 = vmatprep.subr.bf16.mxu0 %v4240_v0  ;;  %v3853_v34 = vld [vmem:[%s5531_s3 + $0x60] ss:$16 sps:$4 sm:$0xff]  }
  0xa3   :  { %3657 = vmatpush3.bf16.msra.mxu1 %v4245_v1  ;;  %875 = vmatprep.mubr.bf16.mxu1 %v3807_v35  ;;  %v3855_v35 = vld [vmem:[%s5531_s3 + $0x64] ss:$16 sps:$4 sm:$0xff]  }
  0xa4   :  { %3658 = vmatprep.subr.bf16.mxu1 %v4251_v2  ;;  %697 = vmatmul.mubr.bf16.vlgmr.msra.gmra.mxu0 %v3817_v36  ;;  %v3856_v36 = vld [vmem:[%s5531_s3 + $0x240] ss:$16 sps:$4 sm:$0xff]  }
  0xa5   :  { %3635 = vmatpush3.bf16.msra.mxu0 %v4245_v1  ;;  %818 = vmatprep.mubr.bf16.mxu0 %v3822_v37  ;;  %v3858_v37 = vld [vmem:[%s5531_s3 + $0x244] ss:$16 sps:$4 sm:$0xff]  }
  0xa6   :  { %3636 = vmatprep.subr.bf16.mxu0 %v4251_v2 }
  0xa7   :  { %3659 = vmatpush3.bf16.msra.mxu1 %v4258_v3 }
  0xa8   :  { %3660 = vmatprep.subr.bf16.mxu1 %v4265_v4 }
  0xa9   :  { %3637 = vmatpush3.bf16.msra.mxu0 %v4258_v3 }
  0xaa   :  { %3638 = vmatprep.subr.bf16.mxu0 %v4265_v4 }
  0xab   :  { %3661 = vmatpush3.bf16.msra.mxu1 %v4272_v5 }
  0xac   :  { %3662 = vmatprep.subr.bf16.mxu1 %v4279_v6 }
  0xad   :  { %3639 = vmatpush3.bf16.msra.mxu0 %v4272_v5 }
  0xae   :  { %3640 = vmatprep.subr.bf16.mxu0 %v4279_v6 }
  0xaf   :  { %3663 = vmatpush3.bf16.msra.mxu1 %v4286_v7 }
  0xb0   :  { %3664 = vmatprep.subr.bf16.mxu1 %v4293_v8 }
  0xb1   :  { %3641 = vmatpush3.bf16.msra.mxu0 %v4286_v7 }
  0xb2   :  { %3642 = vmatprep.subr.bf16.mxu0 %v4293_v8 }
  0xb3   :  { %3665 = vmatpush3.bf16.msra.mxu1 %v4300_v9 }
  0xb4   :  { %3666 = vmatprep.subr.bf16.mxu1 %v4307_v10 }
  0xb5   :  { %3643 = vmatpush3.bf16.msra.mxu0 %v4300_v9 }
  0xb6   :  { %3644 = vmatprep.subr.bf16.mxu0 %v4307_v10 }
  0xb7   :  { %3667 = vmatpush3.bf16.msra.mxu1 %v4317_v12 }
  0xb8   :  { %3668 = vmatprep.subr.bf16.mxu1 %v4323_v13 }
  0xb9   :  { %3645 = vmatpush3.bf16.msra.mxu0 %v4317_v12 }
  0xba   :  { %3646 = vmatprep.subr.bf16.mxu0 %v4323_v13 }
  0xbb   :  { %3669 = vmatpush3.bf16.msra.mxu1 %v4329_v14 }
  0xbc   :  { %3670 = vmatprep.subr.bf16.mxu1 %v4335_v15 }
  0xbd   :  { %3647 = vmatpush3.bf16.msra.mxu0 %v4329_v14 }
  0xbe   :  { %3648 = vmatprep.subr.bf16.mxu0 %v4335_v15 }
  0xbf   :  { %3671 = vmatpush3.bf16.msra.mxu1 %v4346_v17 }
  0xc0   :  { %3700 = vmatprep.subr.bf16.mxu1 %v4240_v0 }
  0xc1   :  { %3649 = vmatpush3.bf16.msra.mxu0 %v4346_v17 }
  0xc2   :  { %876 = vmatmul.mubr.bf16.vlgmr.msra.gmra.mxu1 %v3805_v38  ;;  %3678 = vmatprep.subr.bf16.mxu0 %v4240_v0 }
  0xc3   :  { %3701 = vmatpush3.bf16.msra.mxu1 %v4245_v1  ;;  %997 = vmatprep.mubr.bf16.mxu1 %v3813_v39  ;;  %v3861_v39 = vld [vmem:[%s5531_s3 + $0x44] ss:$16 sps:$4 sm:$0xff]  }
  0xc4   :  { %3702 = vmatprep.subr.bf16.mxu1 %v4251_v2  ;;  %819 = vmatmul.mubr.bf16.vlgmr.msra.gmra.mxu0 %v3820_v40  ;;  %v3859_v40 = vld [vmem:[%s5531_s3 + $0x40] ss:$16 sps:$4 sm:$0xff]  }
  0xc5   :  { %3679 = vmatpush3.bf16.msra.mxu0 %v4245_v1  ;;  %940 = vmatprep.mubr.bf16.mxu0 %v3825_v41  ;;  %v3864_v41 = vld [vmem:[%s5531_s3 + $0x224] ss:$16 sps:$4 sm:$0xff]  }
  0xc6   :  { %3680 = vmatprep.subr.bf16.mxu0 %v4251_v2 }
  0xc7   :  { %3703 = vmatpush3.bf16.msra.mxu1 %v4258_v3 }
  0xc8   :  { %3704 = vmatprep.subr.bf16.mxu1 %v4265_v4 }
  0xc9   :  { %3681 = vmatpush3.bf16.msra.mxu0 %v4258_v3 }
  0xca   :  { %3682 = vmatprep.subr.bf16.mxu0 %v4265_v4 }
  0xcb   :  { %3705 = vmatpush3.bf16.msra.mxu1 %v4272_v5 }
  0xcc   :  { %3706 = vmatprep.subr.bf16.mxu1 %v4279_v6 }
  0xcd   :  { %3683 = vmatpush3.bf16.msra.mxu0 %v4272_v5 }
  0xce   :  { %3684 = vmatprep.subr.bf16.mxu0 %v4279_v6 }
  0xcf   :  { %3707 = vmatpush3.bf16.msra.mxu1 %v4286_v7 }
  0xd0   :  { %3708 = vmatprep.subr.bf16.mxu1 %v4293_v8 }
  0xd1   :  { %3685 = vmatpush3.bf16.msra.mxu0 %v4286_v7 }
  0xd2   :  { %3686 = vmatprep.subr.bf16.mxu0 %v4293_v8 }
  0xd3   :  { %3709 = vmatpush3.bf16.msra.mxu1 %v4300_v9 }
  0xd4   :  { %3710 = vmatprep.subr.bf16.mxu1 %v4307_v10 }
  0xd5   :  { %3687 = vmatpush3.bf16.msra.mxu0 %v4300_v9 }
  0xd6   :  { %3688 = vmatprep.subr.bf16.mxu0 %v4307_v10 }
  0xd7   :  { %3711 = vmatpush3.bf16.msra.mxu1 %v4317_v12 }
  0xd8   :  { %3712 = vmatprep.subr.bf16.mxu1 %v4323_v13 }
  0xd9   :  { %3689 = vmatpush3.bf16.msra.mxu0 %v4317_v12 }
  0xda   :  { %3690 = vmatprep.subr.bf16.mxu0 %v4323_v13  ;;  %v3828_v13 = vld [vmem:[%s5531_s3 + $0x2e4] ss:$16 sps:$4 sm:$0xff]  }
  0xdb   :  { %3713 = vmatpush3.bf16.msra.mxu1 %v4329_v14 }
  0xdc   :  { %3714 = vmatprep.subr.bf16.mxu1 %v4335_v15 }
  0xdd   :  { %3691 = vmatpush3.bf16.msra.mxu0 %v4329_v14  ;;  %v3826_v14 = vld [vmem:[%s5531_s3 + $0x2e0] ss:$16 sps:$4 sm:$0xff]  }
  0xde   :  { %3692 = vmatprep.subr.bf16.mxu0 %v4335_v15 }
  0xdf   :  { %3715 = vmatpush3.bf16.msra.mxu1 %v4346_v17 }
  0xe0   :  { %2448 = vmatprep.subr.bf16.mxu1 %v3828_v13  ;;  %v3882_v13 = vld [vmem:[%s5531_s3 + $0x3c4] ss:$16 sps:$4 sm:$0xff]  }
  0xe1   :  { %3693 = vmatpush3.bf16.msra.mxu0 %v4346_v17  ;;  %v3829_v17 = vld [vmem:[%s5531_s3 + $0xe0] ss:$16 sps:$4 sm:$0xff]  }
  0xe2   :  { %v3452_v44 = vpop.f32.mrf.mxu1  ;;  %998 = vmatmul.mubr.bf16.vlgmr.msra.gmra.mxu1 %v3811_v42  ;;  %v3430_v46 = vpop.f32.mrf.mxu0  ;;  %2405 = vmatprep.subr.bf16.mxu0 %v3831_v18  ;;  %v3888_v18 = vld [vmem:[%s5531_s3 + $0x3a4] ss:$16 sps:$4 sm:$0xff]  }
  0xe3   :  { %2449 = vmatpush1.bf16.msra.mxu1 %v3826_v14 }
  0xe4   :  { %v3453_v45 = vpop.f32.mrf.mxu1  ;;  %941 = vmatmul.mubr.bf16.vlgmr.msra.gmra.mxu0 %v3823_v43  ;;  %v3431_v48 = vpop.f32.mrf.mxu0  ;;  %2450 = vmatprep.subr.bf16.mxu1 %v3834_v20  ;;  %v3889_v20 = vld [vmem:[%s5531_s3 + $0x1a0] ss:$16 sps:$4 sm:$0xff]  }
  0xe5   :  { %v4625_v47 = vadd.f32 %v3453_v45, %v3452_v44  ;;  %v3432_v49 = vadd.f32 %v3431_v48, %v3430_v46  ;;  %2406 = vmatpush1.bf16.msra.mxu0 %v3829_v17  ;;  %v3862_v44 = vld [vmem:[%s5531_s3 + $0x220] ss:$16 sps:$4 sm:$0xff]  }
  0xe6   :  { %v3433_v51 = vpop.f32.mrf.mxu0  ;;  %v4636_v58 = vpop.f32.mrf.mxu1  ;;  %2407 = vmatprep.subr.bf16.mxu0 %v3837_v23  ;;  %v3886_v17 = vld [vmem:[%s5531_s3 + $0x3a0] ss:$16 sps:$4 sm:$0xff]  }
  0xe7   :  { %v209_v52 = vadd.f32 %v3432_v49, %v4630_v50  ;;  %2451 = vmatpush1.bf16.msra.mxu1 %v3832_v19  ;;  %v3867_v49 = vld [vmem:[%s5531_s3 + $0x24] ss:$16 sps:$4 sm:$0xff]   ;;  %v3895_v23 = vld [vmem:[%s5531_s3 + $0x180] ss:$16 sps:$4 sm:$0xff]  }
  0xe8   :  { %v3434_v53 = vpop.f32.mrf.mxu0  ;;  %v4638_v59 = vpop.f32.mrf.mxu1  ;;  %2452 = vmatprep.subr.bf16.mxu1 %v3840_v24  ;;  %v3891_v19 = vld [vmem:[%s5531_s3 + $0x1a4] ss:$16 sps:$4 sm:$0xff]  }
  0xe9   :  { %v215_v54 = vmax.f32 %v209_v52, 0.0  ;;  %v3435_v55 = vadd.f32 %v3434_v53, %v3433_v51  ;;  %2408 = vmatpush1.bf16.msra.mxu0 %v3835_v22  ;;  %v3865_v53 = vld [vmem:[%s5531_s3 + $0x20] ss:$16 sps:$4 sm:$0xff]   ;;  %v3894_v22 = vld [vmem:[%s5531_s3 + $0x384] ss:$16 sps:$4 sm:$0xff]  }
  0xea   :  { %2409 = vmatprep.subr.bf16.mxu0 %v3843_v26  ;;  %v3897_v24 = vld [vmem:[%s5531_s3 + $0x184] ss:$16 sps:$4 sm:$0xff]  }
  0xeb   :  { %v212_v56 = vadd.f32 %v3435_v55, %v4630_v50  ;;  %218 = vst.msk [vmem:[#allocation2] sm:$0xff] %vm217_vm0, %v215_v54  ;;  %2453 = vmatpush1.bf16.msra.mxu1 %v3838_v25  ;;  %v3870_v54 = vld [vmem:[%s5531_s3 + $0x204] ss:$16 sps:$4 sm:$0xff]   ;;  %v3898_v25 = vld [vmem:[%s5531_s3 + $0x360] ss:$16 sps:$4 sm:$0xff]  }
  0xec   :  { %2454 = vmatprep.subr.bf16.mxu1 %v3846_v28  ;;  %v3900_v26 = vld [vmem:[%s5531_s3 + $0x364] ss:$16 sps:$4 sm:$0xff]  }
  0xed   :  { %v216_v57 = vmax.f32 %v212_v56, 0.0  ;;  %2410 = vmatpush1.bf16.msra.mxu0 %v3841_v27  ;;  %v3901_v27 = vld [vmem:[%s5531_s3 + $0x160] ss:$16 sps:$4 sm:$0xff]   ;;  %v3903_v28 = vld [vmem:[%s5531_s3 + $0x164] ss:$16 sps:$4 sm:$0xff]  }
  0xee   :  { %2411 = vmatprep.subr.bf16.mxu0 %v3849_v30  ;;  %v3906_v30 = vld [vmem:[%s5531_s3 + $0x344] ss:$16 sps:$4 sm:$0xff]  }
  0xef   :  { %219 = vst.msk [vmem:[#allocation2 + $0x38] sm:$0xff] %vm217_vm0, %v216_v57  ;;  %2455 = vmatpush1.bf16.msra.mxu1 %v3844_v29  ;;  %v3868_v57 = vld [vmem:[%s5531_s3 + $0x200] ss:$16 sps:$4 sm:$0xff]  }
  0xf0   :  { %2456 = vmatprep.subr.bf16.mxu1 %v3852_v32  ;;  %v3904_v29 = vld [vmem:[%s5531_s3 + $0x340] ss:$16 sps:$4 sm:$0xff]  }
  0xf1   :  { %2412 = vmatpush1.bf16.msra.mxu0 %v3847_v31  ;;  %v3907_v32 = vld [vmem:[%s5531_s3 + $0x140] ss:$16 sps:$4 sm:$0xff]  }
  0xf2   :  { %2413 = vmatprep.subr.bf16.mxu0 %v3855_v35  ;;  %v3912_v35 = vld [vmem:[%s5531_s3 + $0x324] ss:$16 sps:$4 sm:$0xff]  }
  0xf3   :  { %2457 = vmatpush1.bf16.msra.mxu1 %v3850_v33  ;;  %v3909_v33 = vld [vmem:[%s5531_s3 + $0x144] ss:$16 sps:$4 sm:$0xff]  }
  0xf4   :  { %2458 = vmatprep.subr.bf16.mxu1 %v3858_v37 }
  0xf5   :  { %2414 = vmatpush1.bf16.msra.mxu0 %v3853_v34  ;;  %v3910_v34 = vld [vmem:[%s5531_s3 + $0x320] ss:$16 sps:$4 sm:$0xff]  }
  0xf6   :  { %2415 = vmatprep.subr.bf16.mxu0 %v3861_v39 }
  0xf7   :  { %2459 = vmatpush1.bf16.msra.mxu1 %v3856_v36 }
  0xf8   :  { %2460 = vmatprep.subr.bf16.mxu1 %v3864_v41  ;;  %v3913_v41 = vld [vmem:[%s5531_s3 + $0x120] ss:$16 sps:$4 sm:$0xff]  }
  0xf9   :  { %2416 = vmatpush1.bf16.msra.mxu0 %v3859_v40 }
  0xfa   :  { %2417 = vmatprep.subr.bf16.mxu0 %v3867_v49  ;;  %v3921_v49 = vld [vmem:[%s5531_s3 + $0x104] ss:$16 sps:$4 sm:$0xff]  }
  0xfb   :  { %2461 = vmatpush1.bf16.msra.mxu1 %v3862_v44 }
  0xfc   :  { %2462 = vmatprep.subr.bf16.mxu1 %v3870_v54 }
  0xfd   :  { %2418 = vmatpush1.bf16.msra.mxu0 %v3865_v53 }
  0xff   :  { %2463 = vmatpush1.bf16.msra.mxu1 %v3868_v57 }
 0x102   :  { %v3496_v60 = vpop.f32.mrf.mxu1 }
 0x104   :  { %v3497_v61 = vpop.f32.mrf.mxu1  ;;  %v3474_v62 = vpop.f32.mrf.mxu0 }
 0x105   :  { %v3498_v63 = vadd.f32 %v3497_v61, %v3496_v60  ;;  %v3457_v60 = vadd.f32 %v4638_v59, %v4636_v58  ;;  %v3871_v58 = vld [vmem:[%s5531_s3] ss:$16 sps:$4 sm:$0xff]   ;;  %v3876_v59 = vld [vmem:[%s5531_s3 + $0x3e4] ss:$16 sps:$4 sm:$0xff]  }
 0x106   :  { %v3499_v0 = vpop.f32.mrf.mxu1  ;;  %v3475_v1 = vpop.f32.mrf.mxu0  ;;  %2464 = vmatprep.subr.bf16.mxu1 %v3876_v59 }
 0x107   :  { %v390_v2 = vadd.f32 %v3498_v63, %v4630_v50  ;;  %v3476_v3 = vadd.f32 %v3475_v1, %v3474_v62  ;;  %v3873_v1 = vld [vmem:[%s5531_s3 + $0x4] ss:$16 sps:$4 sm:$0xff]  }
 0x108   :  { %v3500_v4 = vpop.f32.mrf.mxu1  ;;  %v3477_v5 = vpop.f32.mrf.mxu0  ;;  %2419 = vmatprep.subr.bf16.mxu0 %v3873_v1 }
 0x109   :  { %v3501_v6 = vadd.f32 %v3500_v4, %v3499_v0  ;;  %v396_v7 = vmax.f32 %v390_v2, 0.0  ;;  %v333_v8 = vadd.f32 %v3476_v3, %v4630_v50  ;;  %2420 = vmatpush1.bf16.msra.mxu0 %v3871_v58  ;;  %v3945_v58 = vld [vmem:[%s5531_s3 + $0x6e4] ss:$16 sps:$4 sm:$0xff]  }
 0x10a   :  { %v3478_v9 = vpop.f32.mrf.mxu0 }
 0x10b   :  { %400 = vrot.lane.b32.xlu0 %v396_v7, %s4195_s0  ;;  %v393_v10 = vadd.f32 %v3501_v6, %v4630_v50  ;;  %v339_v11 = vmax.f32 %v333_v8, 0.0  ;;  %v3479_v12 = vadd.f32 %v3478_v9, %v3477_v5  ;;  %v3874_v5 = vld [vmem:[%s5531_s3 + $0x3e0] ss:$16 sps:$4 sm:$0xff]   ;;  %v270_v6 = vadd.f32 %v3457_v60, %v4630_v50  ;;  %v3879_v9 = vld [vmem:[%s5531_s3 + $0x1e4] ss:$16 sps:$4 sm:$0xff]  }
 0x10c   :  { %2465 = vmatpush2.bf16.msra.mxu1 %v3874_v5  ;;  %2421 = vmatprep.subr.bf16.mxu0 %v3879_v9 }
 0x10d   :  { %v397_v15 = vmax.f32 %v393_v10, 0.0  ;;  %v336_v16 = vadd.f32 %v3479_v12, %v4630_v50  ;;  %341 = vst.msk [vmem:[#allocation2 + $0x8] sm:$0xff] %vm217_vm0, %v339_v11  ;;  %v3877_v11 = vld [vmem:[%s5531_s3 + $0x1e0] ss:$16 sps:$4 sm:$0xff]   ;;  %v274_v14 = vmax.f32 %v270_v6, 0.0  ;;  %2466 = vmatprep.subr.bf16.mxu1 %v3882_v13 }
 0x10e   :  { %v3880_v12 = vld [vmem:[%s5531_s3 + $0x3c0] ss:$16 sps:$4 sm:$0xff]   ;;  %2422 = vmatpush2.bf16.msra.mxu0 %v3877_v11 }
 0x10f   :  { %402 = vrot.lane.b32.xlu1 %v397_v15, %s4195_s0  ;;  %v340_v21 = vmax.f32 %v336_v16, 0.0  ;;  %v3885_v15 = vld [vmem:[%s5531_s3 + $0x1c4] ss:$16 sps:$4 sm:$0xff]   ;;  %v3883_v16 = vld [vmem:[%s5531_s3 + $0x1c0] ss:$16 sps:$4 sm:$0xff]  }
 0x110   :  { %2467 = vmatpush2.bf16.msra.mxu1 %v3880_v12  ;;  %2423 = vmatprep.subr.bf16.mxu0 %v3885_v15 }
 0x111   :  { %342 = vst.msk [vmem:[#allocation2 + $0x40] sm:$0xff] %vm217_vm0, %v340_v21  ;;  %2468 = vmatprep.subr.bf16.mxu1 %v3888_v18  ;;  %v3892_v21 = vld [vmem:[%s5531_s3 + $0x380] ss:$16 sps:$4 sm:$0xff]  }
 0x112   :  { %2424 = vmatpush2.bf16.msra.mxu0 %v3883_v16 }
 0x113   :  { %2425 = vmatprep.subr.bf16.mxu0 %v3891_v19 }
 0x114   :  { %2469 = vmatpush2.bf16.msra.mxu1 %v3886_v17 }
 0x115   :  { %2470 = vmatprep.subr.bf16.mxu1 %v3894_v22 }
 0x116   :  { %2426 = vmatpush2.bf16.msra.mxu0 %v3889_v20 }
 0x117   :  { %2427 = vmatprep.subr.bf16.mxu0 %v3897_v24 }
 0x118   :  { %2471 = vmatpush2.bf16.msra.mxu1 %v3892_v21 }
 0x119   :  { %2472 = vmatprep.subr.bf16.mxu1 %v3900_v26 }
 0x11a   :  { %2428 = vmatpush2.bf16.msra.mxu0 %v3895_v23 }
 0x11b   :  { %2429 = vmatprep.subr.bf16.mxu0 %v3903_v28 }
 0x11c   :  { %2473 = vmatpush2.bf16.msra.mxu1 %v3898_v25 }
 0x11d   :  { %2474 = vmatprep.subr.bf16.mxu1 %v3906_v30 }
 0x11e   :  { %2430 = vmatpush2.bf16.msra.mxu0 %v3901_v27 }
 0x11f   :  { %2431 = vmatprep.subr.bf16.mxu0 %v3909_v33 }
 0x120   :  { %2475 = vmatpush2.bf16.msra.mxu1 %v3904_v29 }
 0x121   :  { %2476 = vmatprep.subr.bf16.mxu1 %v3912_v35 }
 0x122   :  { %v3540_v38 = vpop.f32.mrf.mxu1  ;;  %2432 = vmatpush2.bf16.msra.mxu0 %v3907_v32 }
 0x124   :  { %v3541_v42 = vpop.f32.mrf.mxu1  ;;  %v3518_v43 = vpop.f32.mrf.mxu0  ;;  %2477 = vmatpush2.bf16.msra.mxu1 %v3910_v34 }
 0x125   :  { %v3542_v45 = vadd.f32 %v3541_v42, %v3540_v38  ;;  %v3915_v42 = vld [vmem:[%s5531_s3 + $0x124] ss:$16 sps:$4 sm:$0xff]  }
 0x126   :  { %v3543_v46 = vpop.f32.mrf.mxu1  ;;  %v3519_v48 = vpop.f32.mrf.mxu0  ;;  %2433 = vmatprep.subr.bf16.mxu0 %v3915_v42 }
 0x127   :  { %v512_v51 = vadd.f32 %v3542_v45, %v4630_v50  ;;  %v3520_v52 = vadd.f32 %v3519_v48, %v3518_v43  ;;  %v3916_v43 = vld [vmem:[%s5531_s3 + $0x300] ss:$16 sps:$4 sm:$0xff]   ;;  %2434 = vmatpush2.bf16.msra.mxu0 %v3913_v41 }
 0x128   :  { %v3544_v55 = vpop.f32.mrf.mxu1  ;;  %v3521_v56 = vpop.f32.mrf.mxu0  ;;  %v3919_v48 = vld [vmem:[%s5531_s3 + $0x100] ss:$16 sps:$4 sm:$0xff]   ;;  %2435 = vmatprep.subr.bf16.mxu0 %v3921_v49 }
 0x129   :  { %v518_v61 = vmax.f32 %v512_v51, 0.0  ;;  %v3545_v62 = vadd.f32 %v3544_v55, %v3543_v46  ;;  %v455_v63 = vadd.f32 %v3520_v52, %v4630_v50  ;;  %v3918_v46 = vld [vmem:[%s5531_s3 + $0x304] ss:$16 sps:$4 sm:$0xff]  }
 0x12a   :  { %v3522_v0 = vpop.f32.mrf.mxu0  ;;  %2478 = vmatprep.subr.bf16.mxu1 %v3918_v46 }
 0x12b   :  { %v515_v2 = vadd.f32 %v3545_v62, %v4630_v50  ;;  %522 = vrot.lane.b32.xlu1 %v518_v61, %s4195_s0  ;;  %v461_v3 = vmax.f32 %v455_v63, 0.0  ;;  %v3523_v4 = vadd.f32 %v3522_v0, %v3521_v56  ;;  %2479 = vmatpush2.bf16.msra.mxu1 %v3916_v43  ;;  %v267_v62 = vadd.f32 %v4625_v47, %v4630_v50 }
 0x12c   :  { %2436 = vmatpush2.bf16.msra.mxu0 %v3919_v48  ;;  %2534 = vmatprep.subr.bf16.mxu1 %v3945_v58 }
 0x12d   :  { %v519_v7 = vmax.f32 %v515_v2, 0.0  ;;  %463 = vst.msk [vmem:[#allocation2 + $0x10] sm:$0xff] %vm217_vm0, %v461_v3  ;;  %v458_v8 = vadd.f32 %v3523_v4, %v4630_v50  ;;  %v3924_v2 = vld [vmem:[%s5531_s3 + $0x4e4] ss:$16 sps:$4 sm:$0xff]   ;;  %v273_v3 = vmax.f32 %v267_v62, 0.0 }
 0x12e   :  { %2491 = vmatprep.subr.bf16.mxu0 %v3924_v2 }
 0x12f   :  { %524 = vrot.lane.b32.xlu1 %v519_v7, %s4195_s0  ;;  %v462_v10 = vmax.f32 %v458_v8, 0.0 }
 0x131   :  { %464 = vst.msk [vmem:[#allocation2 + $0x48] sm:$0xff] %vm217_vm0, %v462_v10 }
 0x133   :  { %279 = vrot.lane.b32.xlu1 %v274_v14, %s4195_s0 }
 0x142   :  { %v3584_v31 = vpop.f32.mrf.mxu1 }
 0x144   :  { %v3585_v36 = vpop.f32.mrf.mxu1  ;;  %v3562_v37 = vpop.f32.mrf.mxu0 }
 0x145   :  { %v3586_v38 = vadd.f32 %v3585_v36, %v3584_v31 }
 0x146   :  { %v3587_v39 = vpop.f32.mrf.mxu1  ;;  %v3563_v40 = vpop.f32.mrf.mxu0 }
 0x147   :  { %v634_v44 = vadd.f32 %v3586_v38, %v4630_v50  ;;  %v3564_v45 = vadd.f32 %v3563_v40, %v3562_v37 }
 0x148   :  { %v3588_v51 = vpop.f32.mrf.mxu1  ;;  %v3565_v52 = vpop.f32.mrf.mxu0 }
 0x149   :  { %v640_v53 = vmax.f32 %v634_v44, 0.0  ;;  %v3589_v54 = vadd.f32 %v3588_v51, %v3587_v39  ;;  %v577_v55 = vadd.f32 %v3564_v45, %v4630_v50 }
 0x14a   :  { %v3566_v56 = vpop.f32.mrf.mxu0 }
 0x14b   :  { %v637_v57 = vadd.f32 %v3589_v54, %v4630_v50  ;;  %644 = vrot.lane.b32.xlu0 %v640_v53, %s4195_s0  ;;  %v583_v60 = vmax.f32 %v577_v55, 0.0  ;;  %v3567_v61 = vadd.f32 %v3566_v56, %v3565_v52  ;;  %v4194_v56 = vld [vmem:[%s5530_s2] ss:$0 sm:$0xff] }
 0x14d   :  { %v641_v63 = vmax.f32 %v637_v57, 0.0  ;;  %585 = vst.msk [vmem:[#allocation2 + $0x18] sm:$0xff] %vm217_vm0, %v583_v60  ;;  %v580_v0 = vadd.f32 %v3567_v61, %v4630_v50 }
 0x14f   :  { %646 = vrot.lane.b32.xlu0 %v641_v63, %s4195_s0  ;;  %v584_v1 = vmax.f32 %v580_v0, 0.0 }
 0x151   :  { %586 = vst.msk [vmem:[#allocation2 + $0x50] sm:$0xff] %vm217_vm0, %v584_v1 }
 0x153   :  { %277 = vrot.lane.b32.xlu0 %v273_v3, %s4195_s0 }
 0x162   :  { %v3628_v15 = vpop.f32.mrf.mxu1 }
 0x164   :  { %v3606_v47 = vpop.f32.mrf.mxu0  ;;  %v3629_v22 = vpop.f32.mrf.mxu1 }
 0x165   :  { %v3630_v48 = vadd.f32 %v3629_v22, %v3628_v15  ;;  %v3943_v15 = vld [vmem:[%s5531_s3 + $0x6e0] ss:$16 sps:$4 sm:$0xff]   ;;  %v3927_v22 = vld [vmem:[%s5531_s3 + $0x4c4] ss:$16 sps:$4 sm:$0xff]  }
 0x166   :  { %v3607_v4 = vpop.f32.mrf.mxu0  ;;  %v3631_v28 = vpop.f32.mrf.mxu1 }
 0x167   :  { %v3608_v59 = vadd.f32 %v3607_v4, %v3606_v47  ;;  %v756_v0 = vadd.f32 %v4194_v56, %v3630_v48  ;;  %v3940_v48 = vld [vmem:[%s5531_s3 + $0x420] ss:$16 sps:$4 sm:$0xff]  }
 0x168   :  { %v3609_v5 = vpop.f32.mrf.mxu0  ;;  %v3632_v30 = vpop.f32.mrf.mxu1 }
 0x169   :  { %v699_v6 = vadd.f32 %v3608_v59, %v4630_v50  ;;  %v3633_v1 = vadd.f32 %v3632_v30, %v3631_v28  ;;  %v762_v58 = vmax.f32 %v756_v0, 0.0  ;;  %v3930_v28 = vld [vmem:[%s5531_s3 + $0x4a4] ss:$16 sps:$4 sm:$0xff]  }
 0x16a   :  { %v3610_v7 = vpop.f32.mrf.mxu0  ;;  %v3963_v30 = vld [vmem:[%s5531_s3 + $0x684] ss:$16 sps:$4 sm:$0xff]  }
 0x16b   :  { %v705_v8 = vmax.f32 %v699_v6, 0.0  ;;  %v3611_v9 = vadd.f32 %v3610_v7, %v3609_v5  ;;  %v759_v59 = vadd.f32 %v4194_v56, %v3633_v1  ;;  %v3978_v0 = vld [vmem:[%s5531_s3 + $0x564] ss:$16 sps:$4 sm:$0xff]   ;;  %v3976_v1 = vld [vmem:[%s5531_s3 + $0x560] ss:$16 sps:$4 sm:$0xff]  }
 0x16d   :  { %707 = vst.msk [vmem:[#allocation2 + $0x20] sm:$0xff] %vm217_vm0, %v705_v8  ;;  %v702_v10 = vadd.f32 %v3611_v9, %v4630_v50  ;;  %v763_v6 = vmax.f32 %v759_v59, 0.0  ;;  %v4005_v59 = vld [vmem:[%s5531_s3 + $0x2ec] ss:$16 sps:$4 sm:$0xff]  }
 0x16f   :  { %v706_v11 = vmax.f32 %v702_v10, 0.0 }
 0x171   :  { %708 = vst.msk [vmem:[#allocation2 + $0x58] sm:$0xff] %vm217_vm0, %v706_v11 }
 0x17d   :  { %v401_v12 = vpop.permute.xlu0 %400 }
 0x17e   :  { %406 = vst.msk [vmem:[#allocation2 + $0x8] sm:$0xff] %vm283_vm1, %v401_v12 }
 0x181   :  { %v403_v13 = vpop.permute.xlu1 %402 }
 0x182   :  { %407 = vst.msk [vmem:[#allocation2 + $0x40] sm:$0xff] %vm283_vm1, %v403_v13  ;;  %v3672_v31 = vpop.f32.mrf.mxu1 }
 0x184   :  { %v3650_v14 = vpop.f32.mrf.mxu0  ;;  %v3673_v32 = vpop.f32.mrf.mxu1 }
 0x185   :  { %v1019_v19 = vld [vmem:[#allocation2 + $0x8] sm:$0xff]  ;;  %v3674_v38 = vadd.f32 %v3673_v32, %v3672_v31  ;;  %v3928_v31 = vld [vmem:[%s5531_s3 + $0x4a0] ss:$16 sps:$4 sm:$0xff]   ;;  %v3933_v32 = vld [vmem:[%s5531_s3 + $0x484] ss:$16 sps:$4 sm:$0xff]  }
 0x186   :  { %v3651_v16 = vpop.f32.mrf.mxu0  ;;  %v3675_v33 = vpop.f32.mrf.mxu1 }
 0x187   :  { %v3652_v17 = vadd.f32 %v3651_v16, %v3650_v14  ;;  %v878_v49 = vadd.f32 %v3674_v38, %v4630_v50  ;;  %v3975_v38 = vld [vmem:[%s5531_s3 + $0x644] ss:$16 sps:$4 sm:$0xff]  }
 0x188   :  { %v3653_v18 = vpop.f32.mrf.mxu0  ;;  %v3676_v35 = vpop.f32.mrf.mxu1 }
 0x189   :  { %v1026_v20 = vld [vmem:[#allocation2 + $0x40] sm:$0xff]  ;;  %v821_v21 = vadd.f32 %v3652_v17, %v4630_v50  ;;  %v3677_v53 = vadd.f32 %v3676_v35, %v3675_v33  ;;  %v884_v2 = vmax.f32 %v878_v49, 0.0 }
 0x18a   :  { %v4876_v23 = vpack.c.bf16 %v1026_v20, %v1019_v19  ;;  %v3654_v24 = vpop.f32.mrf.mxu0  ;;  %v3951_v17 = vld [vmem:[%s5531_s3 + $0x6c4] ss:$16 sps:$4 sm:$0xff]   ;;  %v3922_v20 = vld [vmem:[%s5531_s3 + $0x4e0] ss:$16 sps:$4 sm:$0xff]  }
 0x18b   :  { %v827_v25 = vmax.f32 %v821_v21, 0.0  ;;  %v3655_v26 = vadd.f32 %v3654_v24, %v3653_v18  ;;  %v3949_v24 = vld [vmem:[%s5531_s3 + $0x6c0] ss:$16 sps:$4 sm:$0xff]   ;;  %v3948_v49 = vld [vmem:[%s5531_s3 + $0x404] ss:$16 sps:$4 sm:$0xff]  }
 0x18c   :  { %2437 = vmatprep.mubr.bf16.mxu0 %v4876_v23  ;;  %v3961_v33 = vld [vmem:[%s5531_s3 + $0x680] ss:$16 sps:$4 sm:$0xff]  }
 0x18d   :  { %829 = vst.msk [vmem:[#allocation2 + $0x28] sm:$0xff] %vm217_vm0, %v827_v25  ;;  %v824_v27 = vadd.f32 %v3655_v26, %v4630_v50  ;;  %v4196_v25 = vmov 0   ;;  %v3957_v26 = vld [vmem:[%s5531_s3 + $0x6a4] ss:$16 sps:$4 sm:$0xff]   ;;  %v3931_v35 = vld [vmem:[%s5531_s3 + $0x480] ss:$16 sps:$4 sm:$0xff]  }
 0x18f   :  { %v828_v29 = vmax.f32 %v824_v27, 0.0  ;;  %v3925_v27 = vld [vmem:[%s5531_s3 + $0x4c0] ss:$16 sps:$4 sm:$0xff]  }
 0x191   :  { %830 = vst.msk [vmem:[#allocation2 + $0x60] sm:$0xff] %vm217_vm0, %v828_v29  ;;  %v3955_v29 = vld [vmem:[%s5531_s3 + $0x6a0] ss:$16 sps:$4 sm:$0xff]  }
 0x19d   :  { %v523_v34 = vpop.permute.xlu1 %522 }
 0x19e   :  { %528 = vst.msk [vmem:[#allocation2 + $0x10] sm:$0xff] %vm283_vm1, %v523_v34  ;;  %v3969_v34 = vld [vmem:[%s5531_s3 + $0x664] ss:$16 sps:$4 sm:$0xff]  }
 0x1a1   :  { %v525_v36 = vpop.permute.xlu1 %524 }
 0x1a2   :  { %529 = vst.msk [vmem:[#allocation2 + $0x48] sm:$0xff] %vm283_vm1, %v525_v36  ;;  %v3716_v37 = vpop.f32.mrf.mxu1  ;;  %v3936_v36 = vld [vmem:[%s5531_s3 + $0x464] ss:$16 sps:$4 sm:$0xff]  }
 0x1a4   :  { %v3717_v39 = vpop.f32.mrf.mxu1  ;;  %v3694_v40 = vpop.f32.mrf.mxu0 }
 0x1a5   :  { %v3718_v41 = vadd.f32 %v3717_v39, %v3716_v37  ;;  %v280_v42 = vpop.permute.xlu1 %279  ;;  %v1020_v14 = vld [vmem:[#allocation2 + $0x10] sm:$0xff] }
 0x1a6   :  { %285 = vst.msk [vmem:[#allocation2 + $0x38] sm:$0xff] %vm283_vm1, %v280_v42  ;;  %v3719_v43 = vpop.f32.mrf.mxu1  ;;  %v3695_v44 = vpop.f32.mrf.mxu0  ;;  %v3967_v37 = vld [vmem:[%s5531_s3 + $0x660] ss:$16 sps:$4 sm:$0xff]   ;;  %v3981_v42 = vld [vmem:[%s5531_s3 + $0x624] ss:$16 sps:$4 sm:$0xff]  }
 0x1a7   :  { %v1000_v45 = vadd.f32 %v3718_v41, %v4630_v50  ;;  %v3696_v46 = vadd.f32 %v3695_v44, %v3694_v40  ;;  %v881_v50 = vadd.f32 %v4194_v56, %v3677_v53  ;;  %v3934_v39 = vld [vmem:[%s5531_s3 + $0x460] ss:$16 sps:$4 sm:$0xff]   ;;  %v3939_v40 = vld [vmem:[%s5531_s3 + $0x444] ss:$16 sps:$4 sm:$0xff]  }
 0x1a8   :  { %v3720_v51 = vpop.f32.mrf.mxu1  ;;  %v3697_v52 = vpop.f32.mrf.mxu0  ;;  %v3973_v41 = vld [vmem:[%s5531_s3 + $0x640] ss:$16 sps:$4 sm:$0xff]   ;;  %v3942_v44 = vld [vmem:[%s5531_s3 + $0x424] ss:$16 sps:$4 sm:$0xff]  }
 0x1a9   :  { %v1006_v54 = vmax.f32 %v1000_v45, 0.0  ;;  %v3721_v55 = vadd.f32 %v3720_v51, %v3719_v43  ;;  %v943_v57 = vadd.f32 %v4194_v56, %v3696_v46  ;;  %v885_v5 = vmax.f32 %v881_v50, 0.0  ;;  %v1027_v10 = vld [vmem:[#allocation2 + $0x48] sm:$0xff]  ;;  %v3937_v43 = vld [vmem:[%s5531_s3 + $0x440] ss:$16 sps:$4 sm:$0xff]  }
 0x1aa   :  { %v3698_v60 = vpop.f32.mrf.mxu0  ;;  %v4906_v16 = vpack.c.bf16 %v1027_v10, %v1020_v14  ;;  %v3979_v45 = vld [vmem:[%s5531_s3 + $0x620] ss:$16 sps:$4 sm:$0xff]   ;;  %v3987_v46 = vld [vmem:[%s5531_s3 + $0x604] ss:$16 sps:$4 sm:$0xff]  }
 0x1ab   :  { %v1003_v61 = vadd.f32 %v4194_v56, %v3721_v55  ;;  %1010 = vrot.lane.b32.xlu0 %v1006_v54, %s4195_s0  ;;  %v949_v62 = vmax.f32 %v943_v57, 0.0  ;;  %v3699_v63 = vadd.f32 %v3698_v60, %v3697_v52  ;;  %v3985_v51 = vld [vmem:[%s5531_s3 + $0x600] ss:$16 sps:$4 sm:$0xff]   ;;  %v3993_v52 = vld [vmem:[%s5531_s3 + $0xec] ss:$16 sps:$4 sm:$0xff]  }
 0x1ac   :  { %v3946_v53 = vld [vmem:[%s5531_s3 + $0x400] ss:$16 sps:$4 sm:$0xff]   ;;  %v3954_v54 = vld [vmem:[%s5531_s3 + $0x5e4] ss:$16 sps:$4 sm:$0xff]  }
 0x1ad   :  { %v1007_v3 = vmax.f32 %v1003_v61, 0.0  ;;  %951 = vst.msk [vmem:[#allocation2 + $0x30] sm:$0xff] %vm217_vm0, %v949_v62  ;;  %v946_v47 = vadd.f32 %v4194_v56, %v3699_v63  ;;  %v1025_v19 = vld [vmem:[#allocation2 + $0x38] sm:$0xff]  ;;  %v3952_v55 = vld [vmem:[%s5531_s3 + $0x5e0] ss:$16 sps:$4 sm:$0xff]  }
 0x1ae   :  { %v3960_v56 = vld [vmem:[%s5531_s3 + $0x5c4] ss:$16 sps:$4 sm:$0xff]   ;;  %v3958_v57 = vld [vmem:[%s5531_s3 + $0x5c0] ss:$16 sps:$4 sm:$0xff]  }
 0x1af   :  { %1012 = vrot.lane.b32.xlu1 %v1007_v3, %s4195_s0  ;;  %888 = vrot.lane.b32.xlu0 %v884_v2, %s4195_s0  ;;  %v950_v4 = vmax.f32 %v946_v47, 0.0  ;;  %v3966_v60 = vld [vmem:[%s5531_s3 + $0x5a4] ss:$16 sps:$4 sm:$0xff]   ;;  %v3964_v61 = vld [vmem:[%s5531_s3 + $0x5a0] ss:$16 sps:$4 sm:$0xff]  }
 0x1b0   :  { %v3972_v62 = vld [vmem:[%s5531_s3 + $0x584] ss:$16 sps:$4 sm:$0xff]   ;;  %v3970_v63 = vld [vmem:[%s5531_s3 + $0x580] ss:$16 sps:$4 sm:$0xff]  }
 0x1b1   :  { %952 = vst.msk [vmem:[#allocation2 + $0x68] sm:$0xff] %vm217_vm0, %v950_v4  ;;  %v3984_v2 = vld [vmem:[%s5531_s3 + $0x544] ss:$16 sps:$4 sm:$0xff]   ;;  %v3982_v50 = vld [vmem:[%s5531_s3 + $0x540] ss:$16 sps:$4 sm:$0xff]  }
 0x1b2   :  { %v3990_v3 = vld [vmem:[%s5531_s3 + $0x524] ss:$16 sps:$4 sm:$0xff]   ;;  %v3988_v47 = vld [vmem:[%s5531_s3 + $0x520] ss:$16 sps:$4 sm:$0xff]  }
 0x1b3   :  { %890 = vrot.lane.b32.xlu1 %v885_v5, %s4195_s0  ;;  %766 = vrot.lane.b32.xlu0 %v762_v58, %s4195_s0  ;;  %v3996_v4 = vld [vmem:[%s5531_s3 + $0x504] ss:$16 sps:$4 sm:$0xff]   ;;  %v3994_v58 = vld [vmem:[%s5531_s3 + $0x500] ss:$16 sps:$4 sm:$0xff]  }
 0x1b7   :  { %768 = vrot.lane.b32.xlu1 %v763_v6, %s4195_s0 }
 0x1bd   :  { %v645_v7 = vpop.permute.xlu0 %644 }
 0x1be   :  { %650 = vst.msk [vmem:[#allocation2 + $0x18] sm:$0xff] %vm283_vm1, %v645_v7 }
 0x1c1   :  { %v647_v8 = vpop.permute.xlu0 %646 }
 0x1c2   :  { %651 = vst.msk [vmem:[#allocation2 + $0x50] sm:$0xff] %vm283_vm1, %v647_v8 }
 0x1c5   :  { %v278_v9 = vpop.permute.xlu0 %277  ;;  %v1021_v11 = vld [vmem:[#allocation2 + $0x18] sm:$0xff] }
 0x1c6   :  { %284 = vst.msk [vmem:[#allocation2] sm:$0xff] %vm283_vm1, %v278_v9 }
 0x1c9   :  { %v1028_v12 = vld [vmem:[#allocation2 + $0x50] sm:$0xff] }
 0x1ca   :  { %v4901_v13 = vpack.c.bf16 %v1028_v12, %v1021_v11  ;;  %v3991_v11 = vld [vmem:[%s5531_s3 + $0xe8] ss:$16 sps:$4 sm:$0xff]  }
 0x1cc   :  { %2480 = vmatprep.mubr.bf16.mxu1 %v4901_v13 }
 0x1cd   :  { %2481 = vmatmul.mubr.bf16.vlgmr.msra.gmra.mxu1 %v4906_v16  ;;  %v1018_v18 = vld [vmem:[#allocation2] sm:$0xff] }
 0x1ce   :  { %v4916_v21 = vpack.c.bf16 %v1025_v19, %v1018_v18  ;;  %2535 = vmatpush1.bf16.msra.mxu1 %v3943_v15  ;;  %2566 = vmatprep.mubr.bf16.mxu1 %v4196_v25  ;;  %v3997_v18 = vld [vmem:[%s5531_s3 + $0xc8] ss:$16 sps:$4 sm:$0xff]  }
 0x1cf   :  { %2536 = vmatprep.subr.bf16.mxu1 %v3951_v17  ;;  %v3999_v17 = vld [vmem:[%s5531_s3 + $0xcc] ss:$16 sps:$4 sm:$0xff]  }
 0x1d0   :  { %2438 = vmatmul.mubr.bf16.vlgmr.msra.gmra.mxu0 %v4916_v21 }
 0x1d1   :  { %2492 = vmatpush1.bf16.msra.mxu0 %v3922_v20 }
 0x1d2   :  { %2493 = vmatprep.subr.bf16.mxu0 %v3927_v22  ;;  %2537 = vmatpush1.bf16.msra.mxu1 %v3949_v24  ;;  %v4002_v24 = vld [vmem:[%s5531_s3 + $0xac] ss:$16 sps:$4 sm:$0xff]  }
 0x1d3   :  { %2538 = vmatprep.subr.bf16.mxu1 %v3957_v26  ;;  %v4000_v26 = vld [vmem:[%s5531_s3 + $0xa8] ss:$16 sps:$4 sm:$0xff]  }
 0x1d5   :  { %2494 = vmatpush1.bf16.msra.mxu0 %v3925_v27  ;;  %v4003_v27 = vld [vmem:[%s5531_s3 + $0x2e8] ss:$16 sps:$4 sm:$0xff]  }
 0x1d6   :  { %2495 = vmatprep.subr.bf16.mxu0 %v3930_v28  ;;  %2539 = vmatpush1.bf16.msra.mxu1 %v3955_v29 }
 0x1d7   :  { %2540 = vmatprep.subr.bf16.mxu1 %v3963_v30  ;;  %v4011_v30 = vld [vmem:[%s5531_s3 + $0x2cc] ss:$16 sps:$4 sm:$0xff]  }
 0x1d9   :  { %2496 = vmatpush1.bf16.msra.mxu0 %v3928_v31 }
 0x1da   :  { %2497 = vmatprep.subr.bf16.mxu0 %v3933_v32  ;;  %2541 = vmatpush1.bf16.msra.mxu1 %v3961_v33  ;;  %v4006_v32 = vld [vmem:[%s5531_s3 + $0x88] ss:$16 sps:$4 sm:$0xff]  }
 0x1db   :  { %2542 = vmatprep.subr.bf16.mxu1 %v3969_v34  ;;  %v4009_v33 = vld [vmem:[%s5531_s3 + $0x2c8] ss:$16 sps:$4 sm:$0xff]   ;;  %v4014_v34 = vld [vmem:[%s5531_s3 + $0x6c] ss:$16 sps:$4 sm:$0xff]  }
 0x1dd   :  { %2498 = vmatpush1.bf16.msra.mxu0 %v3931_v35  ;;  %v4017_v35 = vld [vmem:[%s5531_s3 + $0x2ac] ss:$16 sps:$4 sm:$0xff]  }
 0x1de   :  { %2499 = vmatprep.subr.bf16.mxu0 %v3936_v36  ;;  %2543 = vmatpush1.bf16.msra.mxu1 %v3967_v37  ;;  %v4012_v36 = vld [vmem:[%s5531_s3 + $0x68] ss:$16 sps:$4 sm:$0xff]  }
 0x1df   :  { %2544 = vmatprep.subr.bf16.mxu1 %v3975_v38  ;;  %v4015_v37 = vld [vmem:[%s5531_s3 + $0x2a8] ss:$16 sps:$4 sm:$0xff]   ;;  %v4020_v38 = vld [vmem:[%s5531_s3 + $0x4c] ss:$16 sps:$4 sm:$0xff]  }
 0x1e1   :  { %2500 = vmatpush1.bf16.msra.mxu0 %v3934_v39  ;;  %v4023_v39 = vld [vmem:[%s5531_s3 + $0x28c] ss:$16 sps:$4 sm:$0xff]  }
 0x1e2   :  { %2501 = vmatprep.subr.bf16.mxu0 %v3939_v40  ;;  %2545 = vmatpush1.bf16.msra.mxu1 %v3973_v41  ;;  %v4021_v40 = vld [vmem:[%s5531_s3 + $0x288] ss:$16 sps:$4 sm:$0xff]   ;;  %v4026_v41 = vld [vmem:[%s5531_s3 + $0x2c] ss:$16 sps:$4 sm:$0xff]  }
 0x1e3   :  { %2546 = vmatprep.subr.bf16.mxu1 %v3981_v42  ;;  %v4029_v42 = vld [vmem:[%s5531_s3 + $0x26c] ss:$16 sps:$4 sm:$0xff]  }
 0x1e5   :  { %2502 = vmatpush1.bf16.msra.mxu0 %v3937_v43  ;;  %v4024_v43 = vld [vmem:[%s5531_s3 + $0x28] ss:$16 sps:$4 sm:$0xff]  }
 0x1e6   :  { %2503 = vmatprep.subr.bf16.mxu0 %v3942_v44  ;;  %2547 = vmatpush1.bf16.msra.mxu1 %v3979_v45  ;;  %v4027_v44 = vld [vmem:[%s5531_s3 + $0x268] ss:$16 sps:$4 sm:$0xff]   ;;  %v4032_v45 = vld [vmem:[%s5531_s3 + $0xc] ss:$16 sps:$4 sm:$0xff]  }
 0x1e7   :  { %2548 = vmatprep.subr.bf16.mxu1 %v3987_v46  ;;  %v4035_v46 = vld [vmem:[%s5531_s3 + $0x24c] ss:$16 sps:$4 sm:$0xff]  }
 0x1e9   :  { %2504 = vmatpush1.bf16.msra.mxu0 %v3940_v48  ;;  %v4030_v48 = vld [vmem:[%s5531_s3 + $0x8] ss:$16 sps:$4 sm:$0xff]  }
 0x1ea   :  { %2505 = vmatprep.subr.bf16.mxu0 %v3948_v49  ;;  %2549 = vmatpush1.bf16.msra.mxu1 %v3985_v51  ;;  %v4033_v49 = vld [vmem:[%s5531_s3 + $0x248] ss:$16 sps:$4 sm:$0xff]   ;;  %v4038_v51 = vld [vmem:[%s5531_s3 + $0x1ec] ss:$16 sps:$4 sm:$0xff]  }
 0x1eb   :  { %2577 = vmatprep.subr.bf16.mxu1 %v3993_v52  ;;  %v4041_v52 = vld [vmem:[%s5531_s3 + $0x22c] ss:$16 sps:$4 sm:$0xff]  }
 0x1ed   :  { %2506 = vmatpush1.bf16.msra.mxu0 %v3946_v53  ;;  %v4036_v53 = vld [vmem:[%s5531_s3 + $0x1e8] ss:$16 sps:$4 sm:$0xff]  }
 0x1ee   :  { %2507 = vmatprep.subr.bf16.mxu0 %v3954_v54  ;;  %v4039_v54 = vld [vmem:[%s5531_s3 + $0x228] ss:$16 sps:$4 sm:$0xff]  }
 0x1f1   :  { %2508 = vmatpush2.bf16.msra.mxu0 %v3952_v55  ;;  %v4044_v55 = vld [vmem:[%s5531_s3 + $0x1cc] ss:$16 sps:$4 sm:$0xff]  }
 0x1f2   :  { %2509 = vmatprep.subr.bf16.mxu0 %v3960_v56  ;;  %v4047_v56 = vld [vmem:[%s5531_s3 + $0x20c] ss:$16 sps:$4 sm:$0xff]  }
 0x1f5   :  { %2510 = vmatpush2.bf16.msra.mxu0 %v3958_v57  ;;  %v4042_v57 = vld [vmem:[%s5531_s3 + $0x1c8] ss:$16 sps:$4 sm:$0xff]  }
 0x1f6   :  { %2511 = vmatprep.subr.bf16.mxu0 %v3966_v60  ;;  %v4045_v60 = vld [vmem:[%s5531_s3 + $0x208] ss:$16 sps:$4 sm:$0xff]  }
 0x1f9   :  { %2512 = vmatpush2.bf16.msra.mxu0 %v3964_v61  ;;  %v4050_v61 = vld [vmem:[%s5531_s3 + $0x1ac] ss:$16 sps:$4 sm:$0xff]  }
 0x1fa   :  { %2513 = vmatprep.subr.bf16.mxu0 %v3972_v62  ;;  %v4053_v62 = vld [vmem:[%s5531_s3 + $0x3ec] ss:$16 sps:$4 sm:$0xff]  }
 0x1fd   :  { %2514 = vmatpush2.bf16.msra.mxu0 %v3970_v63  ;;  %v4048_v63 = vld [vmem:[%s5531_s3 + $0x1a8] ss:$16 sps:$4 sm:$0xff]  }
 0x1fe   :  { %2515 = vmatprep.subr.bf16.mxu0 %v3978_v0  ;;  %v4051_v0 = vld [vmem:[%s5531_s3 + $0x3e8] ss:$16 sps:$4 sm:$0xff]  }
 0x201   :  { %2516 = vmatpush2.bf16.msra.mxu0 %v3976_v1  ;;  %v4056_v1 = vld [vmem:[%s5531_s3 + $0x18c] ss:$16 sps:$4 sm:$0xff]  }
 0x202   :  { %2517 = vmatprep.subr.bf16.mxu0 %v3984_v2  ;;  %v4059_v2 = vld [vmem:[%s5531_s3 + $0x3cc] ss:$16 sps:$4 sm:$0xff]  }
 0x205   :  { %2518 = vmatpush2.bf16.msra.mxu0 %v3982_v50  ;;  %v4054_v50 = vld [vmem:[%s5531_s3 + $0x188] ss:$16 sps:$4 sm:$0xff]  }
 0x206   :  { %2519 = vmatprep.subr.bf16.mxu0 %v3990_v3  ;;  %v4057_v3 = vld [vmem:[%s5531_s3 + $0x3c8] ss:$16 sps:$4 sm:$0xff]  }
 0x209   :  { %2520 = vmatpush2.bf16.msra.mxu0 %v3988_v47  ;;  %v4062_v47 = vld [vmem:[%s5531_s3 + $0x16c] ss:$16 sps:$4 sm:$0xff]  }
 0x20a   :  { %2521 = vmatprep.subr.bf16.mxu0 %v3996_v4  ;;  %v4065_v4 = vld [vmem:[%s5531_s3 + $0x3ac] ss:$16 sps:$4 sm:$0xff]  }
 0x20d   :  { %2522 = vmatpush2.bf16.msra.mxu0 %v3994_v58  ;;  %v4060_v58 = vld [vmem:[%s5531_s3 + $0x168] ss:$16 sps:$4 sm:$0xff]  }
 0x20e   :  { %2620 = vmatprep.subr.bf16.mxu0 %v4005_v59  ;;  %v4063_v59 = vld [vmem:[%s5531_s3 + $0x3a8] ss:$16 sps:$4 sm:$0xff]  }
 0x21d   :  { %v1011_v5 = vpop.permute.xlu0 %1010 }
 0x21e   :  { %1016 = vst.msk [vmem:[#allocation2 + $0x30] sm:$0xff] %vm283_vm1, %v1011_v5  ;;  %v4068_v5 = vld [vmem:[%s5531_s3 + $0x14c] ss:$16 sps:$4 sm:$0xff]  }
 0x221   :  { %v1013_v6 = vpop.permute.xlu1 %1012  ;;  %v889_v7 = vpop.permute.xlu0 %888 }
 0x222   :  { %1017 = vst.msk [vmem:[#allocation2 + $0x68] sm:$0xff] %vm283_vm1, %v1013_v6  ;;  %894 = vst.msk [vmem:[#allocation2 + $0x28] sm:$0xff] %vm283_vm1, %v889_v7  ;;  %v4071_v6 = vld [vmem:[%s5531_s3 + $0x38c] ss:$16 sps:$4 sm:$0xff]   ;;  %v4066_v7 = vld [vmem:[%s5531_s3 + $0x148] ss:$16 sps:$4 sm:$0xff]  }
 0x225   :  { %v891_v8 = vpop.permute.xlu1 %890  ;;  %v767_v9 = vpop.permute.xlu0 %766  ;;  %v1024_v12 = vld [vmem:[#allocation2 + $0x30] sm:$0xff] }
 0x226   :  { %895 = vst.msk [vmem:[#allocation2 + $0x60] sm:$0xff] %vm283_vm1, %v891_v8  ;;  %772 = vst.msk [vmem:[#allocation2 + $0x20] sm:$0xff] %vm283_vm1, %v767_v9  ;;  %v4069_v8 = vld [vmem:[%s5531_s3 + $0x388] ss:$16 sps:$4 sm:$0xff]   ;;  %v4074_v9 = vld [vmem:[%s5531_s3 + $0x12c] ss:$16 sps:$4 sm:$0xff]  }
 0x229   :  { %v769_v10 = vpop.permute.xlu1 %768  ;;  %v1031_v14 = vld [vmem:[#allocation2 + $0x68] sm:$0xff] }
 0x22a   :  { %773 = vst.msk [vmem:[#allocation2 + $0x58] sm:$0xff] %vm283_vm1, %v769_v10  ;;  %v5064_v15 = vpack.c.bf16 %v1031_v14, %v1024_v12  ;;  %v1023_v19 = vld [vmem:[#allocation2 + $0x28] sm:$0xff] }
 0x22b   :  { %v4077_v10 = vld [vmem:[%s5531_s3 + $0x36c] ss:$16 sps:$4 sm:$0xff]   ;;  %v4075_v12 = vld [vmem:[%s5531_s3 + $0x368] ss:$16 sps:$4 sm:$0xff]  }
 0x22c   :  { %2567 = vmatmul.mubr.bf16.vlgmr.msra.gmra.mxu1 %v5064_v15  ;;  %v4080_v14 = vld [vmem:[%s5531_s3 + $0x10c] ss:$16 sps:$4 sm:$0xff]  }
 0x22d   :  { %2578 = vmatpush1.bf16.msra.mxu1 %v3991_v11  ;;  %2609 = vmatprep.mubr.bf16.mxu1 %v4876_v23  ;;  %v1030_v20 = vld [vmem:[#allocation2 + $0x60] sm:$0xff]  ;;  %v4008_v23 = vld [vmem:[%s5531_s3 + $0x8c] ss:$16 sps:$4 sm:$0xff]   ;;  %v4072_v11 = vld [vmem:[%s5531_s3 + $0x128] ss:$16 sps:$4 sm:$0xff]  }
 0x22e   :  { %2579 = vmatprep.subr.bf16.mxu1 %v3999_v17  ;;  %v5074_v22 = vpack.c.bf16 %v1030_v20, %v1023_v19  ;;  %v1022_v28 = vld [vmem:[#allocation2 + $0x20] sm:$0xff]  ;;  %v4083_v17 = vld [vmem:[%s5531_s3 + $0x34c] ss:$16 sps:$4 sm:$0xff]   ;;  %v4081_v19 = vld [vmem:[%s5531_s3 + $0x348] ss:$16 sps:$4 sm:$0xff]  }
 0x22f   :  { %v4086_v20 = vld [vmem:[%s5531_s3 + $0x32c] ss:$16 sps:$4 sm:$0xff]  }
 0x230   :  { %2523 = vmatprep.mubr.bf16.mxu0 %v5074_v22 }
 0x231   :  { %2580 = vmatpush1.bf16.msra.mxu1 %v3997_v18  ;;  %v1029_v29 = vld [vmem:[#allocation2 + $0x58] sm:$0xff] }
 0x232   :  { %2581 = vmatprep.subr.bf16.mxu1 %v4002_v24  ;;  %v5092_v31 = vpack.c.bf16 %v1029_v29, %v1022_v28  ;;  %v4078_v18 = vld [vmem:[%s5531_s3 + $0x108] ss:$16 sps:$4 sm:$0xff]   ;;  %v4089_v24 = vld [vmem:[%s5531_s3 + $0x4ec] ss:$16 sps:$4 sm:$0xff]  }
 0x233   :  { %v4095_v28 = vld [vmem:[%s5531_s3 + $0x4cc] ss:$16 sps:$4 sm:$0xff]   ;;  %v4090_v29 = vld [vmem:[%s5531_s3 + $0x308] ss:$16 sps:$4 sm:$0xff]  }
 0x234   :  { %2524 = vmatmul.mubr.bf16.vlgmr.msra.gmra.mxu0 %v5092_v31 }
 0x235   :  { %2582 = vmatpush1.bf16.msra.mxu1 %v4000_v26  ;;  %2621 = vmatpush1.bf16.msra.mxu0 %v4003_v27  ;;  %v4084_v26 = vld [vmem:[%s5531_s3 + $0x328] ss:$16 sps:$4 sm:$0xff]  }
 0x236   :  { %2652 = vmatprep.mubr.bf16.mxu0 %v4901_v13  ;;  %2583 = vmatprep.subr.bf16.mxu1 %v4008_v23  ;;  %v4018_v13 = vld [vmem:[%s5531_s3 + $0x48] ss:$16 sps:$4 sm:$0xff]   ;;  %v4092_v23 = vld [vmem:[%s5531_s3 + $0x30c] ss:$16 sps:$4 sm:$0xff]  }
 0x237   :  { %2622 = vmatprep.subr.bf16.mxu0 %v4011_v30  ;;  %v4087_v27 = vld [vmem:[%s5531_s3 + $0x4e8] ss:$16 sps:$4 sm:$0xff]  }
 0x238   :  { %v4093_v30 = vld [vmem:[%s5531_s3 + $0x4c8] ss:$16 sps:$4 sm:$0xff]  }
 0x239   :  { %2584 = vmatpush1.bf16.msra.mxu1 %v4006_v32  ;;  %2623 = vmatpush1.bf16.msra.mxu0 %v4009_v33  ;;  %v4098_v32 = vld [vmem:[%s5531_s3 + $0x4ac] ss:$16 sps:$4 sm:$0xff]   ;;  %v4096_v33 = vld [vmem:[%s5531_s3 + $0x4a8] ss:$16 sps:$4 sm:$0xff]  }
 0x23a   :  { %2585 = vmatprep.subr.bf16.mxu1 %v4014_v34  ;;  %2624 = vmatprep.subr.bf16.mxu0 %v4017_v35  ;;  %v4104_v34 = vld [vmem:[%s5531_s3 + $0x48c] ss:$16 sps:$4 sm:$0xff]  }
 0x23b   :  { %v4107_v35 = vld [vmem:[%s5531_s3 + $0x6cc] ss:$16 sps:$4 sm:$0xff]  }
 0x23d   :  { %2586 = vmatpush1.bf16.msra.mxu1 %v4012_v36  ;;  %2625 = vmatpush1.bf16.msra.mxu0 %v4015_v37  ;;  %v4102_v36 = vld [vmem:[%s5531_s3 + $0x488] ss:$16 sps:$4 sm:$0xff]  }
 0x23e   :  { %2587 = vmatprep.subr.bf16.mxu1 %v4020_v38  ;;  %2626 = vmatprep.subr.bf16.mxu0 %v4023_v39  ;;  %v4105_v37 = vld [vmem:[%s5531_s3 + $0x6c8] ss:$16 sps:$4 sm:$0xff]   ;;  %v4110_v38 = vld [vmem:[%s5531_s3 + $0x46c] ss:$16 sps:$4 sm:$0xff]  }
 0x23f   :  { %v4108_v39 = vld [vmem:[%s5531_s3 + $0x468] ss:$16 sps:$4 sm:$0xff]  }
 0x241   :  { %2588 = vmatpush1.bf16.msra.mxu1 %v4018_v13  ;;  %2627 = vmatpush1.bf16.msra.mxu0 %v4021_v40  ;;  %v4111_v13 = vld [vmem:[%s5531_s3 + $0x6a8] ss:$16 sps:$4 sm:$0xff]   ;;  %v4116_v40 = vld [vmem:[%s5531_s3 + $0x44c] ss:$16 sps:$4 sm:$0xff]  }
 0x242   :  { %2589 = vmatprep.subr.bf16.mxu1 %v4026_v41  ;;  %2628 = vmatprep.subr.bf16.mxu0 %v4029_v42  ;;  %v4114_v41 = vld [vmem:[%s5531_s3 + $0x448] ss:$16 sps:$4 sm:$0xff]  }
 0x243   :  { %v4117_v42 = vld [vmem:[%s5531_s3 + $0x688] ss:$16 sps:$4 sm:$0xff]  }
 0x245   :  { %2590 = vmatpush1.bf16.msra.mxu1 %v4024_v43  ;;  %2629 = vmatpush1.bf16.msra.mxu0 %v4027_v44  ;;  %v4122_v43 = vld [vmem:[%s5531_s3 + $0x42c] ss:$16 sps:$4 sm:$0xff]  }
 0x246   :  { %2591 = vmatprep.subr.bf16.mxu1 %v4032_v45  ;;  %2630 = vmatprep.subr.bf16.mxu0 %v4035_v46  ;;  %v4125_v44 = vld [vmem:[%s5531_s3 + $0x66c] ss:$16 sps:$4 sm:$0xff]   ;;  %v4120_v45 = vld [vmem:[%s5531_s3 + $0x428] ss:$16 sps:$4 sm:$0xff]  }
 0x247   :  { %v4123_v46 = vld [vmem:[%s5531_s3 + $0x668] ss:$16 sps:$4 sm:$0xff]  }
 0x249   :  { %2592 = vmatpush1.bf16.msra.mxu1 %v4030_v48  ;;  %2631 = vmatpush1.bf16.msra.mxu0 %v4033_v49  ;;  %v4128_v48 = vld [vmem:[%s5531_s3 + $0x40c] ss:$16 sps:$4 sm:$0xff]  }
 0x24a   :  { %2593 = vmatprep.subr.bf16.mxu1 %v4038_v51  ;;  %2632 = vmatprep.subr.bf16.mxu0 %v4041_v52  ;;  %v4131_v49 = vld [vmem:[%s5531_s3 + $0x64c] ss:$16 sps:$4 sm:$0xff]   ;;  %v4126_v51 = vld [vmem:[%s5531_s3 + $0x408] ss:$16 sps:$4 sm:$0xff]  }
 0x24b   :  { %v4129_v52 = vld [vmem:[%s5531_s3 + $0x648] ss:$16 sps:$4 sm:$0xff]  }
 0x24d   :  { %2594 = vmatpush2.bf16.msra.mxu1 %v4036_v53  ;;  %2633 = vmatpush1.bf16.msra.mxu0 %v4039_v54  ;;  %v4134_v53 = vld [vmem:[%s5531_s3 + $0x5ec] ss:$16 sps:$4 sm:$0xff]  }
 0x24e   :  { %2595 = vmatprep.subr.bf16.mxu1 %v4044_v55  ;;  %2634 = vmatprep.subr.bf16.mxu0 %v4047_v56  ;;  %v4137_v54 = vld [vmem:[%s5531_s3 + $0x62c] ss:$16 sps:$4 sm:$0xff]   ;;  %v4132_v55 = vld [vmem:[%s5531_s3 + $0x5e8] ss:$16 sps:$4 sm:$0xff]  }
 0x24f   :  { %v4135_v56 = vld [vmem:[%s5531_s3 + $0x628] ss:$16 sps:$4 sm:$0xff]  }
 0x251   :  { %2596 = vmatpush2.bf16.msra.mxu1 %v4042_v57  ;;  %2635 = vmatpush1.bf16.msra.mxu0 %v4045_v60  ;;  %v4140_v57 = vld [vmem:[%s5531_s3 + $0x5cc] ss:$16 sps:$4 sm:$0xff]  }
 0x252   :  { %2597 = vmatprep.subr.bf16.mxu1 %v4050_v61  ;;  %2636 = vmatprep.subr.bf16.mxu0 %v4053_v62  ;;  %v4143_v60 = vld [vmem:[%s5531_s3 + $0x60c] ss:$16 sps:$4 sm:$0xff]   ;;  %v4138_v61 = vld [vmem:[%s5531_s3 + $0x5c8] ss:$16 sps:$4 sm:$0xff]  }
 0x253   :  { %v4141_v62 = vld [vmem:[%s5531_s3 + $0x608] ss:$16 sps:$4 sm:$0xff]  }
 0x255   :  { %2598 = vmatpush2.bf16.msra.mxu1 %v4048_v63  ;;  %2637 = vmatpush2.bf16.msra.mxu0 %v4051_v0  ;;  %v4146_v63 = vld [vmem:[%s5531_s3 + $0x5ac] ss:$16 sps:$4 sm:$0xff]  }
 0x256   :  { %2599 = vmatprep.subr.bf16.mxu1 %v4056_v1  ;;  %2638 = vmatprep.subr.bf16.mxu0 %v4059_v2  ;;  %v4162_v0 = vld [vmem:[%s5532_s5 + $0x78] sm:$0xff]  }
 0x257   :  { %v4144_v1 = vld [vmem:[%s5531_s3 + $0x5a8] ss:$16 sps:$4 sm:$0xff]  }
 0x258   :  { %v4163_v2 = vld [vmem:[%s5532_s5 + $0x38] sm:$0xff]  }
 0x259   :  { %2600 = vmatpush2.bf16.msra.mxu1 %v4054_v50  ;;  %2639 = vmatpush2.bf16.msra.mxu0 %v4057_v3  ;;  %v4149_v50 = vld [vmem:[%s5531_s3 + $0x58c] ss:$16 sps:$4 sm:$0xff]   ;;  %v4164_v3 = vld [vmem:[%s5532_s5 + $0x70] sm:$0xff]  }
 0x25a   :  { %2601 = vmatprep.subr.bf16.mxu1 %v4062_v47  ;;  %2640 = vmatprep.subr.bf16.mxu0 %v4065_v4  ;;  %v4147_v47 = vld [vmem:[%s5531_s3 + $0x588] ss:$16 sps:$4 sm:$0xff]   ;;  %v4165_v4 = vld [vmem:[%s5532_s5 + $0x30] sm:$0xff]  }
 0x25d   :  { %2602 = vmatpush2.bf16.msra.mxu1 %v4060_v58  ;;  %2641 = vmatpush2.bf16.msra.mxu0 %v4063_v59  ;;  %v4152_v58 = vld [vmem:[%s5531_s3 + $0x56c] ss:$16 sps:$4 sm:$0xff]   ;;  %v4150_v59 = vld [vmem:[%s5531_s3 + $0x568] ss:$16 sps:$4 sm:$0xff]  }
 0x25e   :  { %2603 = vmatprep.subr.bf16.mxu1 %v4068_v5  ;;  %2642 = vmatprep.subr.bf16.mxu0 %v4071_v6  ;;  %v4167_v5 = vld [vmem:[%s5532_s5 + $0x28] sm:$0xff]  }
 0x25f   :  { %v4155_v6 = vld [vmem:[%s5531_s3 + $0x54c] ss:$16 sps:$4 sm:$0xff]  }
 0x261   :  { %2604 = vmatpush2.bf16.msra.mxu1 %v4066_v7  ;;  %2643 = vmatpush2.bf16.msra.mxu0 %v4069_v8  ;;  %v4168_v7 = vld [vmem:[%s5532_s5 + $0x60] sm:$0xff]   ;;  %v4153_v8 = vld [vmem:[%s5531_s3 + $0x548] ss:$16 sps:$4 sm:$0xff]  }
 0x262   :  { %2605 = vmatprep.subr.bf16.mxu1 %v4074_v9  ;;  %2644 = vmatprep.subr.bf16.mxu0 %v4077_v10  ;;  %v4169_v9 = vld [vmem:[%s5532_s5 + $0x20] sm:$0xff]   ;;  %v4158_v10 = vld [vmem:[%s5531_s3 + $0x52c] ss:$16 sps:$4 sm:$0xff]  }
 0x265   :  { %2606 = vmatpush2.bf16.msra.mxu1 %v4072_v11  ;;  %2645 = vmatpush2.bf16.msra.mxu0 %v4075_v12  ;;  %v4170_v11 = vld [vmem:[%s5532_s5 + $0x58] sm:$0xff]  }
 0x266   :  { %2607 = vmatprep.subr.bf16.mxu1 %v4080_v14  ;;  %2646 = vmatprep.subr.bf16.mxu0 %v4083_v17  ;;  %v4156_v12 = vld [vmem:[%s5531_s3 + $0x528] ss:$16 sps:$4 sm:$0xff]   ;;  %v4161_v17 = vld [vmem:[%s5531_s3 + $0x50c] ss:$16 sps:$4 sm:$0xff]  }
 0x267   :  { %v4171_v14 = vld [vmem:[%s5532_s5 + $0x18] sm:$0xff]  }
 0x269   :  { %2608 = vmatpush2.bf16.msra.mxu1 %v4078_v18  ;;  %2647 = vmatpush2.bf16.msra.mxu0 %v4081_v19  ;;  %v4172_v18 = vld [vmem:[%s5532_s5 + $0x50] sm:$0xff]   ;;  %v4159_v19 = vld [vmem:[%s5531_s3 + $0x508] ss:$16 sps:$4 sm:$0xff]  }
 0x26a   :  { %2648 = vmatprep.subr.bf16.mxu0 %v4086_v20  ;;  %2663 = vmatprep.subr.bf16.mxu1 %v4089_v24  ;;  %v4173_v20 = vld [vmem:[%s5532_s5 + $0x10] sm:$0xff]   ;;  %v4174_v24 = vld [vmem:[%s5532_s5 + $0x48] sm:$0xff]  }
 0x26c   :  { %2610 = vmatmul.mubr.bf16.vlgmr.msra.gmra.mxu1 %v4916_v21  ;;  %v4101_v21 = vld [vmem:[%s5531_s3 + $0x6ec] ss:$16 sps:$4 sm:$0xff]  }
 0x26d   :  { %2649 = vmatpush2.bf16.msra.mxu0 %v4084_v26  ;;  %2664 = vmatpush1.bf16.msra.mxu1 %v4087_v27  ;;  %v4175_v26 = vld [vmem:[%s5532_s5 + $0x8] sm:$0xff]   ;;  %v4176_v27 = vld [vmem:[%s5532_s5 + $0x40] sm:$0xff]  }
 0x26e   :  { %2695 = vmatprep.mubr.bf16.mxu1 %v5074_v22  ;;  %2650 = vmatprep.subr.bf16.mxu0 %v4092_v23  ;;  %v4099_v22 = vld [vmem:[%s5531_s3 + $0x6e8] ss:$16 sps:$4 sm:$0xff]   ;;  %v4177_v23 = vld [vmem:[%s5532_s5] sm:$0xff]  }
 0x26f   :  { %2665 = vmatprep.subr.bf16.mxu1 %v4095_v28  ;;  %v4178_v28 = vld [vmem:[%s5532_s5 + $0xf8] sm:$0xff]  }
 0x271   :  { %2651 = vmatpush2.bf16.msra.mxu0 %v4090_v29  ;;  %2666 = vmatpush1.bf16.msra.mxu1 %v4093_v30  ;;  %v4179_v29 = vld [vmem:[%s5532_s5 + $0xb8] sm:$0xff]   ;;  %v4180_v30 = vld [vmem:[%s5532_s5 + $0xf0] sm:$0xff]  }
 0x272   :  { %2667 = vmatprep.subr.bf16.mxu1 %v4098_v32  ;;  %2706 = vmatprep.subr.bf16.mxu0 %v4101_v21  ;;  %v4182_v32 = vld [vmem:[%s5532_s5 + $0xe8] sm:$0xff]  }
 0x273   :  { %v4183_v21 = vld [vmem:[%s5532_s5 + $0xa8] sm:$0xff]  }
 0x274   :  { %2653 = vmatmul.mubr.bf16.vlgmr.msra.gmra.mxu0 %v4906_v16  ;;  %v4113_v16 = vld [vmem:[%s5531_s3 + $0x6ac] ss:$16 sps:$4 sm:$0xff]  }
 0x275   :  { %2668 = vmatpush1.bf16.msra.mxu1 %v4096_v33  ;;  %2707 = vmatpush1.bf16.msra.mxu0 %v4099_v22  ;;  %v1265_v22 = vlaneseq }
 0x276   :  { %2669 = vmatprep.subr.bf16.mxu1 %v4104_v34  ;;  %2708 = vmatprep.subr.bf16.mxu0 %v4107_v35  ;;  %v4184_v34 = vld [vmem:[%s5532_s5 + $0xe0] sm:$0xff]  }
 0x277   :  { %2738 = vmatprep.mubr.bf16.mxu0 %v4196_v25  ;;  %v4119_v25 = vld [vmem:[%s5531_s3 + $0x68c] ss:$16 sps:$4 sm:$0xff]   ;;  %v4185_v35 = vld [vmem:[%s5532_s5 + $0xa0] sm:$0xff]  }
 0x279   :  { %2670 = vmatpush1.bf16.msra.mxu1 %v4102_v36  ;;  %2709 = vmatpush1.bf16.msra.mxu0 %v4105_v37  ;;  %v5480_v37 = vshrl.u32 %v1265_v22, 7 }
 0x27a   :  { %2671 = vmatprep.subr.bf16.mxu1 %v4110_v38  ;;  %2710 = vmatprep.subr.bf16.mxu0 %v4113_v16 }
 0x27b   :  { %v1271_v16 = vsub.s32 1, %v5480_v37 }
 0x27d   :  { %2672 = vmatpush1.bf16.msra.mxu1 %v4108_v39  ;;  %2711 = vmatpush1.bf16.msra.mxu0 %v4111_v13  ;;  %v1267_v39 = vsub.s32 0, %v5480_v37 }
 0x27e   :  { %2673 = vmatprep.subr.bf16.mxu1 %v4116_v40  ;;  %2712 = vmatprep.subr.bf16.mxu0 %v4119_v25  ;;  %v5487_v25 = vld [vmem:[%s5533_s4] sm:$0xf] }
 0x281   :  { %2674 = vmatpush1.bf16.msra.mxu1 %v4114_v41  ;;  %2713 = vmatpush1.bf16.msra.mxu0 %v4117_v42  ;;  %v4186_v41 = vld [vmem:[%s5532_s5 + $0xd8] sm:$0xff]  }
 0x282   :  { %2675 = vmatprep.subr.bf16.mxu1 %v4122_v43  ;;  %2714 = vmatprep.subr.bf16.mxu0 %v4125_v44  ;;  %v4187_v42 = vld [vmem:[%s5532_s5 + $0x98] sm:$0xff]   ;;  %v1272_v43 = vrot.slane %v5487_v25, %v1271_v16  ;;  %v1268_v44 = vrot.slane %v5487_v25, %v1267_v39 }
 0x285   :  { %2676 = vmatpush1.bf16.msra.mxu1 %v4120_v45  ;;  %2715 = vmatpush1.bf16.msra.mxu0 %v4123_v46 }
 0x286   :  { %2677 = vmatprep.subr.bf16.mxu1 %v4128_v48  ;;  %2716 = vmatprep.subr.bf16.mxu0 %v4131_v49  ;;  %v4188_v48 = vld [vmem:[%s5532_s5 + $0xd0] sm:$0xff]  }
 0x289   :  { %2678 = vmatpush1.bf16.msra.mxu1 %v4126_v51  ;;  %2717 = vmatpush1.bf16.msra.mxu0 %v4129_v52  ;;  %v4189_v51 = vld [vmem:[%s5532_s5 + $0x90] sm:$0xff]  }
 0x28a   :  { %2679 = vmatprep.subr.bf16.mxu1 %v4134_v53  ;;  %2718 = vmatprep.subr.bf16.mxu0 %v4137_v54 }
 0x28d   :  { %2680 = vmatpush2.bf16.msra.mxu1 %v4132_v55  ;;  %2719 = vmatpush1.bf16.msra.mxu0 %v4135_v56  ;;  %v2482_v33 = vpop.f32.mrf.mxu1  ;;  %v4190_v56 = vld [vmem:[%s5532_s5 + $0xc8] sm:$0xff]  }
 0x28e   :  { %2681 = vmatprep.subr.bf16.mxu1 %v4140_v57  ;;  %2720 = vmatprep.subr.bf16.mxu0 %v4143_v60 }
 0x28f   :  { %v2484_v36 = vpop.f32.mrf.mxu1 }
 0x290   :  { %v2439_v38 = vpop.f32.mrf.mxu0 }
 0x291   :  { %2682 = vmatpush2.bf16.msra.mxu1 %v4138_v61  ;;  %2721 = vmatpush1.bf16.msra.mxu0 %v4141_v62  ;;  %v2486_v13 = vpop.f32.mrf.mxu1  ;;  %v2440_v53 = vadd.f32 %v2439_v38, %v1268_v44  ;;  %v4191_v61 = vld [vmem:[%s5532_s5 + $0x88] sm:$0xff]  }
 0x292   :  { %2683 = vmatprep.subr.bf16.mxu1 %v4146_v63  ;;  %3722 = vmatprep.subr.bf16.mxu0 %v4162_v0  ;;  %v2441_v40 = vpop.f32.mrf.mxu0 }
 0x293   :  { %v2488_v45 = vpop.f32.mrf.mxu1  ;;  %v2442_v52 = vadd.f32 %v2441_v40, %v1272_v43  ;;  %v2483_v0 = vadd.f32 %v2482_v33, %v2440_v53 }
 0x294   :  { %2739 = vmatmul.mubr.bf16.vlgmr.msra.gmra.mxu0 %v5064_v15  ;;  %v4166_v15 = vld [vmem:[%s5532_s5 + $0x68] sm:$0xff]   ;;  %v2443_v46 = vpop.f32.mrf.mxu0 }
 0x295   :  { %2684 = vmatpush2.bf16.msra.mxu1 %v4144_v1  ;;  %3723 = vmatpush3.bf16.msra.mxu0 %v4163_v2  ;;  %v2444_v55 = vadd.f32 %v2443_v46, %v1268_v44  ;;  %v2485_v63 = vadd.f32 %v2484_v36, %v2442_v52 }
 0x296   :  { %2685 = vmatprep.subr.bf16.mxu1 %v4149_v50  ;;  %3724 = vmatprep.subr.bf16.mxu0 %v4164_v3  ;;  %v2445_v54 = vpop.f32.mrf.mxu0  ;;  %v4192_v3 = vld [vmem:[%s5532_s5 + $0xc0] sm:$0xff]  }
 0x297   :  { %v2446_v62 = vadd.f32 %v2445_v54, %v1272_v43  ;;  %v2487_v50 = vadd.f32 %v2486_v13, %v2444_v55 }
 0x299   :  { %2686 = vmatpush2.bf16.msra.mxu1 %v4147_v47  ;;  %3725 = vmatpush3.bf16.msra.mxu0 %v4165_v4  ;;  %v4193_v47 = vld [vmem:[%s5532_s5 + $0x80] sm:$0xff]  }
 0x29a   :  { %2687 = vmatprep.subr.bf16.mxu1 %v4152_v58  ;;  %3726 = vmatprep.subr.bf16.mxu0 %v4166_v15 }
 0x29d   :  { %2688 = vmatpush2.bf16.msra.mxu1 %v4150_v59  ;;  %3727 = vmatpush3.bf16.msra.mxu0 %v4167_v5  ;;  %v2489_v5 = vadd.f32 %v2488_v45, %v2446_v62 }
 0x29e   :  { %2689 = vmatprep.subr.bf16.mxu1 %v4155_v6  ;;  %3728 = vmatprep.subr.bf16.mxu0 %v4168_v7 }
 0x2a1   :  { %2690 = vmatpush2.bf16.msra.mxu1 %v4153_v8  ;;  %3729 = vmatpush3.bf16.msra.mxu0 %v4169_v9 }
 0x2a2   :  { %2691 = vmatprep.subr.bf16.mxu1 %v4158_v10  ;;  %3730 = vmatprep.subr.bf16.mxu0 %v4170_v11 }
 0x2a5   :  { %2692 = vmatpush2.bf16.msra.mxu1 %v4156_v12  ;;  %3731 = vmatpush3.bf16.msra.mxu0 %v4171_v14 }
 0x2a6   :  { %2693 = vmatprep.subr.bf16.mxu1 %v4161_v17  ;;  %3732 = vmatprep.subr.bf16.mxu0 %v4172_v18 }
 0x2a9   :  { %2694 = vmatpush2.bf16.msra.mxu1 %v4159_v19  ;;  %3733 = vmatpush3.bf16.msra.mxu0 %v4173_v20 }
 0x2aa   :  { %3734 = vmatprep.subr.bf16.mxu0 %v4174_v24  ;;  %3744 = vmatprep.subr.bf16.mxu1 %v4178_v28 }
 0x2ac   :  { %2696 = vmatmul.mubr.bf16.vlgmr.msra.gmra.mxu1 %v5092_v31  ;;  %v4181_v31 = vld [vmem:[%s5532_s5 + $0xb0] sm:$0xff]  }
 0x2ad   :  { %3735 = vmatpush3.bf16.msra.mxu0 %v4175_v26  ;;  %3745 = vmatpush3.bf16.msra.mxu1 %v4179_v29 }
 0x2ae   :  { %3736 = vmatprep.subr.bf16.mxu0 %v4176_v27  ;;  %3746 = vmatprep.subr.bf16.mxu1 %v4180_v30  ;;  %v1279_v30 = vsub.s32 3, %v5480_v37 }
 0x2b0   :  { %v1280_v33 = vrot.slane %v5487_v25, %v1279_v30 }
 0x2b1   :  { %3737 = vmatpush3.bf16.msra.mxu0 %v4177_v23  ;;  %3747 = vmatpush3.bf16.msra.mxu1 %v4181_v31  ;;  %v1275_v31 = vsub.s32 2, %v5480_v37 }
 0x2b2   :  { %3748 = vmatprep.subr.bf16.mxu1 %v4182_v32 }
 0x2b3   :  { %v1276_v22 = vrot.slane %v5487_v25, %v1275_v31 }
 0x2b5   :  { %3749 = vmatpush3.bf16.msra.mxu1 %v4183_v21 }
 0x2b6   :  { %3750 = vmatprep.subr.bf16.mxu1 %v4184_v34 }
 0x2b9   :  { %3751 = vmatpush3.bf16.msra.mxu1 %v4185_v35 }
 0x2ba   :  { %3752 = vmatprep.subr.bf16.mxu1 %v4186_v41 }
 0x2bd   :  { %3753 = vmatpush3.bf16.msra.mxu1 %v4187_v42 }
 0x2be   :  { %3754 = vmatprep.subr.bf16.mxu1 %v4188_v48 }
 0x2c1   :  { %3755 = vmatpush3.bf16.msra.mxu1 %v4189_v51 }
 0x2c2   :  { %3756 = vmatprep.subr.bf16.mxu1 %v4190_v56 }
 0x2c5   :  { %3757 = vmatpush3.bf16.msra.mxu1 %v4191_v61 }
 0x2c6   :  { %3758 = vmatprep.subr.bf16.mxu1 %v4192_v3 }
 0x2c9   :  { %3759 = vmatpush3.bf16.msra.mxu1 %v4193_v47 }
 0x2ec   :  { %v2568_v49 = vpop.f32.mrf.mxu1 }
 0x2ee   :  { %v2570_v57 = vpop.f32.mrf.mxu1 }
 0x2f0   :  { %v2572_v4 = vpop.f32.mrf.mxu1 }
 0x2f2   :  { %v2574_v10 = vpop.f32.mrf.mxu1 }
 0x2f4   :  { %v2525_v60 = vpop.f32.mrf.mxu0 }
 0x2f5   :  { %v2526_v58 = vadd.f32 %v2525_v60, %v2483_v0 }
 0x2f6   :  { %v2527_v1 = vpop.f32.mrf.mxu0 }
 0x2f7   :  { %v2528_v2 = vadd.f32 %v2527_v1, %v2485_v63  ;;  %v2569_v11 = vadd.f32 %v2568_v49, %v2526_v58 }
 0x2f8   :  { %v2529_v15 = vpop.f32.mrf.mxu0 }
 0x2f9   :  { %v2530_v59 = vadd.f32 %v2529_v15, %v2487_v50  ;;  %v2571_v7 = vadd.f32 %v2570_v57, %v2528_v2  ;;  %v2749_v19 = vmax.f32 %v2569_v11, 0.0 }
 0x2fa   :  { %v2531_v6 = vpop.f32.mrf.mxu0 }
 0x2fb   :  { %v2573_v8 = vadd.f32 %v2572_v4, %v2530_v59  ;;  %v2532_v9 = vadd.f32 %v2531_v6, %v2489_v5  ;;  %v2750_v17 = vmax.f32 %v2571_v7, 0.0  ;;  %v3381_v4 = vld [vmem:[%s5534_s6] ss:$0 sm:$0xff] }
 0x2fd   :  { %v2575_v12 = vadd.f32 %v2574_v10, %v2532_v9  ;;  %v2753_v14 = vmax.f32 %v2573_v8, 0.0 }
 0x2ff   :  { %v2754_v18 = vmax.f32 %v2575_v12, 0.0  ;;  %v2757_v24 = vpack.c.bf16 %v2753_v14, %v2749_v19 }
 0x301   :  { %v2758_v20 = vpack.c.bf16 %v2754_v18, %v2750_v17 }
 0x303   :  { %3056 = vmatprep.mubr.bf16.mxu0 %v2758_v20 }
 0x304   :  { %3057 = vmatmul.mubr.bf16.vlgmr.msra.gmra.mxu0 %v2757_v24 }
 0x32c   :  { %v2611_v27 = vpop.f32.mrf.mxu1 }
 0x32d   :  { %v2612_v38 = vadd.f32 %v2611_v27, %v1276_v22 }
 0x32e   :  { %v2613_v28 = vpop.f32.mrf.mxu1 }
 0x32f   :  { %v2614_v36 = vadd.f32 %v2613_v28, %v1280_v33 }
 0x330   :  { %v2615_v32 = vpop.f32.mrf.mxu1 }
 0x331   :  { %v2616_v13 = vadd.f32 %v2615_v32, %v1276_v22 }
 0x332   :  { %v2617_v35 = vpop.f32.mrf.mxu1 }
 0x333   :  { %v2618_v43 = vadd.f32 %v2617_v35, %v1280_v33 }
 0x334   :  { %v2654_v26 = vpop.f32.mrf.mxu0 }
 0x335   :  { %v2655_v41 = vadd.f32 %v2654_v26, %v2612_v38 }
 0x336   :  { %v2656_v23 = vpop.f32.mrf.mxu0 }
 0x337   :  { %v2657_v40 = vadd.f32 %v2656_v23, %v2614_v36 }
 0x338   :  { %v2658_v29 = vpop.f32.mrf.mxu0 }
 0x339   :  { %v2659_v44 = vadd.f32 %v2658_v29, %v2616_v13 }
 0x33a   :  { %v2660_v21 = vpop.f32.mrf.mxu0 }
 0x33b   :  { %v2661_v49 = vadd.f32 %v2660_v21, %v2618_v43 }
 0x354   :  { %v2740_v34 = vpop.f32.mrf.mxu0 }
 0x356   :  { %v2742_v16 = vpop.f32.mrf.mxu0 }
 0x358   :  { %v2744_v37 = vpop.f32.mrf.mxu0 }
 0x35a   :  { %v2746_v55 = vpop.f32.mrf.mxu0 }
 0x36c   :  { %v2697_v39 = vpop.f32.mrf.mxu1 }
 0x36d   :  { %v2698_v46 = vadd.f32 %v2697_v39, %v2655_v41 }
 0x36e   :  { %v2699_v42 = vpop.f32.mrf.mxu1 }
 0x36f   :  { %v2700_v45 = vadd.f32 %v2699_v42, %v2657_v40  ;;  %v2741_v56 = vadd.f32 %v2740_v34, %v2698_v46 }
 0x370   :  { %v2701_v48 = vpop.f32.mrf.mxu1 }
 0x371   :  { %v2702_v51 = vadd.f32 %v2701_v48, %v2659_v44  ;;  %v2743_v25 = vadd.f32 %v2742_v16, %v2700_v45  ;;  %v2751_v63 = vmax.f32 %v2741_v56, 0.0 }
 0x372   :  { %v2703_v52 = vpop.f32.mrf.mxu1 }
 0x373   :  { %v2745_v53 = vadd.f32 %v2744_v37, %v2702_v51  ;;  %v2704_v54 = vadd.f32 %v2703_v52, %v2661_v49  ;;  %v2752_v61 = vmax.f32 %v2743_v25, 0.0 }
 0x375   :  { %v2747_v57 = vadd.f32 %v2746_v55, %v2704_v54  ;;  %v2755_v60 = vmax.f32 %v2745_v53, 0.0 }
 0x377   :  { %v2756_v62 = vmax.f32 %v2747_v57, 0.0  ;;  %v2759_v1 = vpack.c.bf16 %v2755_v60, %v2751_v63 }
 0x379   :  { %v2760_v0 = vpack.c.bf16 %v2756_v62, %v2752_v61 }
 0x37b   :  { %3097 = vmatprep.mubr.bf16.mxu1 %v2760_v0 }
 0x37c   :  { %3098 = vmatmul.mubr.bf16.vlgmr.msra.gmra.mxu1 %v2759_v1 }
 0x3c4   :  { %v3738_v2 = vpop.f32.mrf.mxu0 }
 0x3c6   :  { %v3739_v50 = vpop.f32.mrf.mxu0 }
 0x3c7   :  { %v3740_v47 = vadd.f32 %v3739_v50, %v3738_v2 }
 0x3c8   :  { %v3741_v3 = vpop.f32.mrf.mxu0 }
 0x3c9   :  { %v3059_v5 = vadd.f32 %v3740_v47, %v3381_v4 }
 0x3ca   :  { %v3742_v58 = vpop.f32.mrf.mxu0 }
 0x3cb   :  { %v3743_v6 = vadd.f32 %v3742_v58, %v3741_v3 }
 0x3cd   :  { %v3062_v11 = vadd.f32 %v3743_v6, %v3381_v4 }
 0x43c   :  { %v3760_v15 = vpop.f32.mrf.mxu1 }
 0x43e   :  { %v3761_v59 = vpop.f32.mrf.mxu1 }
 0x43f   :  { %v3762_v7 = vadd.f32 %v3761_v59, %v3760_v15 }
 0x440   :  { %v3763_v8 = vpop.f32.mrf.mxu1 }
 0x441   :  { %v3100_v9 = vadd.f32 %v3762_v7, %v3059_v5 }
 0x442   :  { %v3764_v10 = vpop.f32.mrf.mxu1 }
 0x443   :  { %3106 = vst [vmem:[%s5535_s7] sm:$0xff] %v3100_v9  ;;  %v3765_v12 = vadd.f32 %v3764_v10, %v3763_v8 }
 0x445   :  { %v3103_v14 = vadd.f32 %v3765_v12, %v3062_v11 }
 0x447   :  { %3107 = vst [vmem:[%s5535_s7 + $0x8] sm:$0xff] %v3103_v14 }

</bundles_post_ra>
